<compile_context>
chip_gen: v6e
topology: v6e:2x2x1
jax: 0.10.0
libtpu: 0.0.40
codegen_flags: <defaults>
</compile_context>

<pallas_src>
import math
import functools

import jax
import jax.numpy as jnp
from jax.experimental import pallas as pl
from jax.experimental.pallas import tpu as pltpu


# ----------------------------------------------------------------------------- #
# Kernel 1: EvolveGCN-O weight evolution (mat_GRU_cell applied T times).
# Batch independent -> computed once per layer, NOT per sample.
# ----------------------------------------------------------------------------- #

def _evolve_weights_kernel(q0_ref, wall_ref, uur_ref, uh_ref,
                           bu_ref, br_ref, bh_ref, o_ref, *, steps, fin):
    """mat_GRU_cell applied `steps` times to the GCN weight.

    Gate matmuls are packed: Wall = [Wu; Wr; Wh] (3*fin, fin), Uur = [Uu; Ur] (2*fin, fin).
    Writes the evolved weight after every step to o_ref[t] (shape (steps, fin, fout)).
    """
    q = q0_ref[...]                                              # (fin, fout)
    wall, uur, uh = wall_ref[...], uur_ref[...], uh_ref[...]
    bu, br, bh = bu_ref[...], br_ref[...], bh_ref[...]
    for t in range(steps):
        wq = jnp.dot(wall, q, preferred_element_type=jnp.float32)   # (3*fin, fout)
        uq = jnp.dot(uur, q, preferred_element_type=jnp.float32)    # (2*fin, fout)
        upd = jax.nn.sigmoid(wq[:fin] + uq[:fin] + bu)
        rst = jax.nn.sigmoid(wq[fin:2 * fin] + uq[fin:] + br)
        hcap = jnp.tanh(wq[2 * fin:]
                        + jnp.dot(uh, rst * q, preferred_element_type=jnp.float32)
                        + bh)
        q = (1.0 - upd) * q + upd * hcap
        o_ref[t] = q


def evolve_gcn_weights(layer, steps):
    fin, fout = layer["q0"].shape
    kernel = functools.partial(_evolve_weights_kernel, steps=steps, fin=fin)
    return pl.pallas_call(
        kernel,
        out_shape=jax.ShapeDtypeStruct((steps, fin, fout), jnp.float32),
        in_specs=[pl.BlockSpec(memory_space=pltpu.MemorySpace.VMEM)] * 7,
        out_specs=pl.BlockSpec(memory_space=pltpu.MemorySpace.VMEM),
    )(layer["q0"], layer["wall"], layer["uur"], layer["uh"],
      layer["bu"], layer["br"], layer["bh"])


# ----------------------------------------------------------------------------- #
# Kernel 2: fused per-sample forward (grid = (B,), everything VMEM resident).
# ----------------------------------------------------------------------------- #

def _state_former_kernel(frames_ref, traj_ref, w12_ref, b12_ref, *refs,
                         num_layers, hidden, d_node, d_frame):
    """One batch sample end-to-end: adjacency -> EGCN -> node attn -> frame attn -> logits."""
    wl_refs = refs[:num_layers]
    (wqkv_n_ref, bqkv_n_ref, wqkv_f_ref, bqkv_f_ref,
     pwt_ref, pwn_ref, pb_ref, o_ref) = refs[num_layers:]

    frames = frames_ref[...]                                     # (T, N, F0)
    T, N, F0 = frames.shape

    def softmax_last(s):
        s = s - jnp.max(s, axis=-1, keepdims=True)
        e = jnp.exp(s)
        return e * pl.reciprocal(jnp.sum(e, axis=-1, keepdims=True), approx=True)

    # --- edge_generating: learned adjacency for all T frames (packed W1|W2) -------
    ab = jnp.dot(frames.reshape(T * N, F0), w12_ref[...],
                 preferred_element_type=jnp.float32) + b12_ref[...]
    ab = ab.reshape(T, N, 2 * hidden)
    ads = softmax_last(
        jnp.einsum('tnh,tmh->tnm', ab[..., :hidden], ab[..., hidden:],
                   preferred_element_type=jnp.float32))          # (T, N, N)

    # --- EGCN: stacked GRCU layers with pre-evolved per-frame GCN weights ---------
    embs = frames
    for li in range(num_layers):
        w_seq = wl_refs[li][...]                                 # (T, fin, fout)
        xw = jnp.einsum('tnf,tfo->tno', embs, w_seq,
                        preferred_element_type=jnp.float32)
        embs = jnp.maximum(
            jnp.einsum('tnm,tmo->tno', ads, xw,
                       preferred_element_type=jnp.float32), 0.0)  # relu(Ahat @ (X @ W))

    # --- per-frame node self-attention + mean over nodes (packed QKV) -------------
    f_last = embs.shape[-1]
    qkv = jnp.dot(embs.reshape(T * N, f_last), wqkv_n_ref[...],
                  preferred_element_type=jnp.float32) + bqkv_n_ref[...]
    qkv = qkv.reshape(T, N, 3 * d_node)
    q = qkv[..., :d_node]
    k = qkv[..., d_node:2 * d_node]
    v = qkv[..., 2 * d_node:]
    p = softmax_last(jnp.einsum('tnh,tmh->tnm', q, k,
                                preferred_element_type=jnp.float32)
                     * (1.0 / math.sqrt(d_node)))
    att = jnp.einsum('tnm,tmh->tnh', p, v, preferred_element_type=jnp.float32)
    natt = jnp.mean(att, axis=1)                                 # (T, d_node)

    # --- frame attention + mean over frames (packed QKV) --------------------------
    qkvf = jnp.dot(natt, wqkv_f_ref[...],
                   preferred_element_type=jnp.float32) + bqkv_f_ref[...]
    qf = qkvf[:, :d_frame]
    kf = qkvf[:, d_frame:2 * d_frame]
    vf = qkvf[:, 2 * d_frame:]
    pf = softmax_last(jnp.dot(qf, kf.T, preferred_element_type=jnp.float32)
                      * (1.0 / math.sqrt(d_frame)))
    attf = jnp.dot(pf, vf, preferred_element_type=jnp.float32)
    frame_feat = jnp.mean(attf, axis=0, keepdims=True)           # (1, d_frame)

    # --- predictor: cat(trajectory, node_feat) @ W + b, as a split matmul ---------
    o_ref[...] = (jnp.dot(traj_ref[...], pwt_ref[...], preferred_element_type=jnp.float32)
                  + jnp.dot(frame_feat, pwn_ref[...], preferred_element_type=jnp.float32)
                  + pb_ref[...])


def _full_spec(arr):
    zeros = (0,) * arr.ndim
    return pl.BlockSpec(arr.shape, lambda b, _z=zeros: _z if False else zeros)


# ----------------------------------------------------------------------------- #
# Parameter initialization (deterministic; shapes from the module's __init__,
# packed once here so kernels see wide lane-dense matmuls).
# ----------------------------------------------------------------------------- #

def _linear_init(key, fan_in, fan_out):
    kw, kb = jax.random.split(key)
    stdv = 1.0 / math.sqrt(fan_in)
    w = jax.random.uniform(kw, (fan_in, fan_out), jnp.float32, -stdv, stdv)
    b = jax.random.uniform(kb, (1, fan_out), jnp.float32, -stdv, stdv)
    return w, b


def _gate_init(key, rows):
    kw, ku = jax.random.split(key)
    stdv = 1.0 / math.sqrt(rows)
    W = jax.random.uniform(kw, (rows, rows), jnp.float32, -stdv, stdv)
    U = jax.random.uniform(ku, (rows, rows), jnp.float32, -stdv, stdv)
    return W, U


def _grcu_init(key, fin, fout):
    ku, kr, kh, kg = jax.random.split(key, 4)
    Wu, Uu = _gate_init(ku, fin)
    Wr, Ur = _gate_init(kr, fin)
    Wh, Uh = _gate_init(kh, fin)
    stdv = 1.0 / math.sqrt(fout)
    q0 = jax.random.uniform(kg, (fin, fout), jnp.float32, -stdv, stdv)
    zeros = jnp.zeros((fin, fout), jnp.float32)
    return {
        "q0": q0,
        "wall": jnp.concatenate([Wu, Wr, Wh], axis=0),   # (3*fin, fin)
        "uur": jnp.concatenate([Uu, Ur], axis=0),        # (2*fin, fin)
        "uh": Uh,                                        # (fin, fin)
        "bu": zeros, "br": zeros, "bh": zeros,           # GRU gate biases are zeros
    }


def _attn_init(key, fin, fout):
    kq, kk, kv = jax.random.split(key, 3)
    wq, bq = _linear_init(kq, fin, fout)
    wk, bk = _linear_init(kk, fin, fout)
    wv, bv = _linear_init(kv, fin, fout)
    return {"wqkv": jnp.concatenate([wq, wk, wv], axis=1),   # (fin, 3*fout)
            "bqkv": jnp.concatenate([bq, bk, bv], axis=1)}   # (1, 3*fout)


def init_params(key, feat_gcn, hidden=48, traj_dim=36, n_classes=13):
    keys = jax.random.split(key, 6)
    in_feat = feat_gcn[0]
    w1, b1 = _linear_init(keys[0], in_feat, hidden)
    w2, b2 = _linear_init(keys[1], in_feat, hidden)
    grcu = [_grcu_init(jax.random.fold_in(keys[2], i), feat_gcn[i - 1], feat_gcn[i])
            for i in range(1, len(feat_gcn))]
    pw, pb = _linear_init(keys[5], traj_dim + 256, n_classes)
    return {
        "edge": {"w12": jnp.concatenate([w1, w2], axis=1),   # (in, 2*hidden)
                 "b12": jnp.concatenate([b1, b2], axis=1)},  # (1, 2*hidden)
        "grcu": grcu,
        "node_attn": _attn_init(keys[3], feat_gcn[-1], 128),
        "frame_attn": _attn_init(keys[4], 128, 256),
        "pred": {"w_traj": pw[:traj_dim],                    # (36, 13)
                 "w_node": pw[traj_dim:],                    # (256, 13)
                 "b": pb},                                   # (1, 13)
    }


# ----------------------------------------------------------------------------- #
# state_former forward
# ----------------------------------------------------------------------------- #

def state_former_forward(trajectory_feature, nodes, params):
    """
    trajectory_feature: (B, 36) precomputed trajectory feature (see TODO above)
    nodes:              (B, T, N, 6) per-sample, per-frame node features
    returns:            (B, 13)
    """
    B, T, N, F = nodes.shape

    # time_information_embedding ('one-hot'): append the frame-index one-hot to every node.
    one_hot = jnp.broadcast_to(jnp.eye(T, dtype=jnp.float32)[None, :, None, :],
                               (B, T, N, T))
    frames = jnp.concatenate([nodes.astype(jnp.float32), one_hot], axis=-1)  # (B,T,N,F+T)
    F0 = F + T

    # EvolveGCN-O: weight evolution depends only on layer params -> once per layer.
    evolved = [evolve_gcn_weights(layer, T) for layer in params["grcu"]]
    num_layers = len(evolved)

    edge, na, fa, pr = (params["edge"], params["node_attn"],
                        params["frame_attn"], params["pred"])
    hidden = edge["w12"].shape[1] // 2
    d_node = na["wqkv"].shape[1] // 3
    d_frame = fa["wqkv"].shape[1] // 3
    traj_dim = pr["w_traj"].shape[0]
    n_classes = pr["b"].shape[1]

    traj = trajectory_feature.astype(jnp.float32).reshape(B, 1, traj_dim)

    weight_args = [edge["w12"], edge["b12"], *evolved,
                   na["wqkv"], na["bqkv"], fa["wqkv"], fa["bqkv"],
                   pr["w_traj"], pr["w_node"], pr["b"]]

    in_specs = ([pl.BlockSpec((None, T, N, F0), lambda b: (b, 0, 0, 0)),
                 pl.BlockSpec((None, 1, traj_dim), lambda b: (b, 0, 0))]
                + [_full_spec(a) for a in weight_args])

    kernel = functools.partial(_state_former_kernel, num_layers=num_layers,
                               hidden=hidden, d_node=d_node, d_frame=d_frame)

    out = pl.pallas_call(
        kernel,
        grid=(B,),
        out_shape=jax.ShapeDtypeStruct((B, 1, n_classes), jnp.float32),
        in_specs=in_specs,
        out_specs=pl.BlockSpec((None, 1, n_classes), lambda b: (b, 0, 0)),
        compiler_params=pltpu.CompilerParams(dimension_semantics=("parallel",)),
    )(frames, traj, *weight_args)
    return out.reshape(B, n_classes)


# ----------------------------------------------------------------------------- #

if __name__ == "__main__":
    key = jax.random.PRNGKey(0)
    k_nodes, k_traj, k_params = jax.random.split(key, 3)

    B, T, N = 2, 5, 8          # T fixed to 5 by the one-hot time embedding
    feat_gcn = [11, 16, 32]    # feat_gcn[0] forced to 6 + 5 (trajectory=True, 'one-hot')

    nodes = jax.random.normal(k_nodes, (B, T, N, 6), dtype=jnp.float32)
    trajectory_feature = jax.random.normal(k_traj, (B, 36), dtype=jnp.float32)
    params = init_params(k_params, feat_gcn)

    fwd = jax.jit(state_former_forward)
    out = fwd(trajectory_feature, nodes, params)
    out = jax.block_until_ready(out)

    assert out.shape == (B, 13) and out.dtype == jnp.float32
    assert bool(jnp.all(jnp.isfinite(out)))
    print("KERNEL_OK")
</pallas_src>

<mosaic_0001>
module attributes {stable_mosaic.version = 11 : i64} {
  func.func @_evolve_weights_kernel(%arg0: memref<11x16xf32, #tpu.memory_space<vmem>>, %arg1: memref<33x11xf32, #tpu.memory_space<vmem>>, %arg2: memref<22x11xf32, #tpu.memory_space<vmem>>, %arg3: memref<11x11xf32, #tpu.memory_space<vmem>>, %arg4: memref<11x16xf32, #tpu.memory_space<vmem>>, %arg5: memref<11x16xf32, #tpu.memory_space<vmem>>, %arg6: memref<11x16xf32, #tpu.memory_space<vmem>>, %arg7: memref<5x11x16xf32, #tpu.memory_space<vmem>>) attributes {dimension_semantics = [], scalar_prefetch = 0 : i64, scratch_operands = 0 : i64, tpu.core_type = #tpu.core_type<tc>} {
    %c0 = arith.constant 0 : index
    %c0_0 = arith.constant 0 : index
    %0 = vector.load %arg0[%c0, %c0_0] : memref<11x16xf32, #tpu.memory_space<vmem>>, vector<11x16xf32>
    %c0_1 = arith.constant 0 : index
    %c0_2 = arith.constant 0 : index
    %1 = vector.load %arg1[%c0_1, %c0_2] : memref<33x11xf32, #tpu.memory_space<vmem>>, vector<33x11xf32>
    %c0_3 = arith.constant 0 : index
    %c0_4 = arith.constant 0 : index
    %2 = vector.load %arg2[%c0_3, %c0_4] : memref<22x11xf32, #tpu.memory_space<vmem>>, vector<22x11xf32>
    %c0_5 = arith.constant 0 : index
    %c0_6 = arith.constant 0 : index
    %3 = vector.load %arg3[%c0_5, %c0_6] : memref<11x11xf32, #tpu.memory_space<vmem>>, vector<11x11xf32>
    %c0_7 = arith.constant 0 : index
    %c0_8 = arith.constant 0 : index
    %4 = vector.load %arg4[%c0_7, %c0_8] : memref<11x16xf32, #tpu.memory_space<vmem>>, vector<11x16xf32>
    %c0_9 = arith.constant 0 : index
    %c0_10 = arith.constant 0 : index
    %5 = vector.load %arg5[%c0_9, %c0_10] : memref<11x16xf32, #tpu.memory_space<vmem>>, vector<11x16xf32>
    %c0_11 = arith.constant 0 : index
    %c0_12 = arith.constant 0 : index
    %6 = vector.load %arg6[%c0_11, %c0_12] : memref<11x16xf32, #tpu.memory_space<vmem>>, vector<11x16xf32>
    %cst = arith.constant dense<0.000000e+00> : vector<33x16xf32>
    %7 = tpu.matmul %1, %0, %cst {dimension_numbers = #tpu.dot_dimension_numbers<[1], [0], [0], [1], [0, 0, 1, 1], [], []>} : vector<33x11xf32>, vector<11x16xf32>, vector<33x16xf32> -> vector<33x16xf32>
    %cst_13 = arith.constant dense<0.000000e+00> : vector<22x16xf32>
    %8 = tpu.matmul %2, %0, %cst_13 {dimension_numbers = #tpu.dot_dimension_numbers<[1], [0], [0], [1], [0, 0, 1, 1], [], []>} : vector<22x11xf32>, vector<11x16xf32>, vector<22x16xf32> -> vector<22x16xf32>
    %9 = vector.extract_strided_slice %7 {offsets = [0, 0], sizes = [11, 16], strides = [1, 1]} : vector<33x16xf32> to vector<11x16xf32>
    %10 = vector.extract_strided_slice %8 {offsets = [0, 0], sizes = [11, 16], strides = [1, 1]} : vector<22x16xf32> to vector<11x16xf32>
    %11 = arith.addf %9, %10 : vector<11x16xf32>
    %12 = arith.addf %11, %4 : vector<11x16xf32>
    %13 = arith.negf %12 : vector<11x16xf32>
    %14 = math.exp %13 : vector<11x16xf32>
    %cst_14 = arith.constant 1.000000e+00 : f32
    %15 = vector.broadcast %cst_14 : f32 to vector<11x16xf32>
    %16 = arith.addf %15, %14 : vector<11x16xf32>
    %17 = arith.divf %15, %16 : vector<11x16xf32>
    %18 = vector.extract_strided_slice %7 {offsets = [11, 0], sizes = [11, 16], strides = [1, 1]} : vector<33x16xf32> to vector<11x16xf32>
    %19 = vector.extract_strided_slice %8 {offsets = [11, 0], sizes = [11, 16], strides = [1, 1]} : vector<22x16xf32> to vector<11x16xf32>
    %20 = arith.addf %18, %19 : vector<11x16xf32>
    %21 = arith.addf %20, %5 : vector<11x16xf32>
    %22 = arith.negf %21 : vector<11x16xf32>
    %23 = math.exp %22 : vector<11x16xf32>
    %cst_15 = arith.constant 1.000000e+00 : f32
    %24 = vector.broadcast %cst_15 : f32 to vector<11x16xf32>
    %25 = arith.addf %24, %23 : vector<11x16xf32>
    %26 = arith.divf %24, %25 : vector<11x16xf32>
    %27 = vector.extract_strided_slice %7 {offsets = [22, 0], sizes = [11, 16], strides = [1, 1]} : vector<33x16xf32> to vector<11x16xf32>
    %28 = arith.mulf %26, %0 : vector<11x16xf32>
    %cst_16 = arith.constant dense<0.000000e+00> : vector<11x16xf32>
    %29 = tpu.matmul %3, %28, %cst_16 {dimension_numbers = #tpu.dot_dimension_numbers<[1], [0], [0], [1], [0, 0, 1, 1], [], []>} : vector<11x11xf32>, vector<11x16xf32>, vector<11x16xf32> -> vector<11x16xf32>
    %30 = arith.addf %27, %29 : vector<11x16xf32>
    %31 = arith.addf %30, %6 : vector<11x16xf32>
    %32 = math.tanh %31 : vector<11x16xf32>
    %cst_17 = arith.constant 1.000000e+00 : f32
    %33 = vector.broadcast %cst_17 : f32 to vector<11x16xf32>
    %34 = arith.subf %33, %17 : vector<11x16xf32>
    %35 = arith.mulf %34, %0 : vector<11x16xf32>
    %36 = arith.mulf %17, %32 : vector<11x16xf32>
    %37 = arith.addf %35, %36 : vector<11x16xf32>
    %c0_18 = arith.constant 0 : index
    %c0_19 = arith.constant 0 : index
    %c0_20 = arith.constant 0 : index
    %38 = vector.load %arg7[%c0_18, %c0_19, %c0_20] : memref<5x11x16xf32, #tpu.memory_space<vmem>>, vector<1x11x16xf32>
    %39 = vector.shape_cast %38 : vector<1x11x16xf32> to vector<11x16xf32>
    %40 = vector.shape_cast %37 : vector<11x16xf32> to vector<1x11x16xf32>
    tpu.vector_store %arg7[%c0_18, %c0_19, %c0_20], %40 {strides = array<i32>} : memref<5x11x16xf32, #tpu.memory_space<vmem>>, vector<1x11x16xf32>,
    %cst_21 = arith.constant dense<0.000000e+00> : vector<33x16xf32>
    %41 = tpu.matmul %1, %37, %cst_21 {dimension_numbers = #tpu.dot_dimension_numbers<[1], [0], [0], [1], [0, 0, 1, 1], [], []>} : vector<33x11xf32>, vector<11x16xf32>, vector<33x16xf32> -> vector<33x16xf32>
    %cst_22 = arith.constant dense<0.000000e+00> : vector<22x16xf32>
    %42 = tpu.matmul %2, %37, %cst_22 {dimension_numbers = #tpu.dot_dimension_numbers<[1], [0], [0], [1], [0, 0, 1, 1], [], []>} : vector<22x11xf32>, vector<11x16xf32>, vector<22x16xf32> -> vector<22x16xf32>
    %43 = vector.extract_strided_slice %41 {offsets = [0, 0], sizes = [11, 16], strides = [1, 1]} : vector<33x16xf32> to vector<11x16xf32>
    %44 = vector.extract_strided_slice %42 {offsets = [0, 0], sizes = [11, 16], strides = [1, 1]} : vector<22x16xf32> to vector<11x16xf32>
    %45 = arith.addf %43, %44 : vector<11x16xf32>
    %46 = arith.addf %45, %4 : vector<11x16xf32>
    %47 = arith.negf %46 : vector<11x16xf32>
    %48 = math.exp %47 : vector<11x16xf32>
    %cst_23 = arith.constant 1.000000e+00 : f32
    %49 = vector.broadcast %cst_23 : f32 to vector<11x16xf32>
    %50 = arith.addf %49, %48 : vector<11x16xf32>
    %51 = arith.divf %49, %50 : vector<11x16xf32>
    %52 = vector.extract_strided_slice %41 {offsets = [11, 0], sizes = [11, 16], strides = [1, 1]} : vector<33x16xf32> to vector<11x16xf32>
    %53 = vector.extract_strided_slice %42 {offsets = [11, 0], sizes = [11, 16], strides = [1, 1]} : vector<22x16xf32> to vector<11x16xf32>
    %54 = arith.addf %52, %53 : vector<11x16xf32>
    %55 = arith.addf %54, %5 : vector<11x16xf32>
    %56 = arith.negf %55 : vector<11x16xf32>
    %57 = math.exp %56 : vector<11x16xf32>
    %cst_24 = arith.constant 1.000000e+00 : f32
    %58 = vector.broadcast %cst_24 : f32 to vector<11x16xf32>
    %59 = arith.addf %58, %57 : vector<11x16xf32>
    %60 = arith.divf %58, %59 : vector<11x16xf32>
    %61 = vector.extract_strided_slice %41 {offsets = [22, 0], sizes = [11, 16], strides = [1, 1]} : vector<33x16xf32> to vector<11x16xf32>
    %62 = arith.mulf %60, %37 : vector<11x16xf32>
    %cst_25 = arith.constant dense<0.000000e+00> : vector<11x16xf32>
    %63 = tpu.matmul %3, %62, %cst_25 {dimension_numbers = #tpu.dot_dimension_numbers<[1], [0], [0], [1], [0, 0, 1, 1], [], []>} : vector<11x11xf32>, vector<11x16xf32>, vector<11x16xf32> -> vector<11x16xf32>
    %64 = arith.addf %61, %63 : vector<11x16xf32>
    %65 = arith.addf %64, %6 : vector<11x16xf32>
    %66 = math.tanh %65 : vector<11x16xf32>
    %cst_26 = arith.constant 1.000000e+00 : f32
    %67 = vector.broadcast %cst_26 : f32 to vector<11x16xf32>
    %68 = arith.subf %67, %51 : vector<11x16xf32>
    %69 = arith.mulf %68, %37 : vector<11x16xf32>
    %70 = arith.mulf %51, %66 : vector<11x16xf32>
    %71 = arith.addf %69, %70 : vector<11x16xf32>
    %c1 = arith.constant 1 : index
    %c0_27 = arith.constant 0 : index
    %c0_28 = arith.constant 0 : index
    %72 = vector.load %arg7[%c1, %c0_27, %c0_28] : memref<5x11x16xf32, #tpu.memory_space<vmem>>, vector<1x11x16xf32>
    %73 = vector.shape_cast %72 : vector<1x11x16xf32> to vector<11x16xf32>
    %74 = vector.shape_cast %71 : vector<11x16xf32> to vector<1x11x16xf32>
    tpu.vector_store %arg7[%c1, %c0_27, %c0_28], %74 {strides = array<i32>} : memref<5x11x16xf32, #tpu.memory_space<vmem>>, vector<1x11x16xf32>,
    %cst_29 = arith.constant dense<0.000000e+00> : vector<33x16xf32>
    %75 = tpu.matmul %1, %71, %cst_29 {dimension_numbers = #tpu.dot_dimension_numbers<[1], [0], [0], [1], [0, 0, 1, 1], [], []>} : vector<33x11xf32>, vector<11x16xf32>, vector<33x16xf32> -> vector<33x16xf32>
    %cst_30 = arith.constant dense<0.000000e+00> : vector<22x16xf32>
    %76 = tpu.matmul %2, %71, %cst_30 {dimension_numbers = #tpu.dot_dimension_numbers<[1], [0], [0], [1], [0, 0, 1, 1], [], []>} : vector<22x11xf32>, vector<11x16xf32>, vector<22x16xf32> -> vector<22x16xf32>
    %77 = vector.extract_strided_slice %75 {offsets = [0, 0], sizes = [11, 16], strides = [1, 1]} : vector<33x16xf32> to vector<11x16xf32>
    %78 = vector.extract_strided_slice %76 {offsets = [0, 0], sizes = [11, 16], strides = [1, 1]} : vector<22x16xf32> to vector<11x16xf32>
    %79 = arith.addf %77, %78 : vector<11x16xf32>
    %80 = arith.addf %79, %4 : vector<11x16xf32>
    %81 = arith.negf %80 : vector<11x16xf32>
    %82 = math.exp %81 : vector<11x16xf32>
    %cst_31 = arith.constant 1.000000e+00 : f32
    %83 = vector.broadcast %cst_31 : f32 to vector<11x16xf32>
    %84 = arith.addf %83, %82 : vector<11x16xf32>
    %85 = arith.divf %83, %84 : vector<11x16xf32>
    %86 = vector.extract_strided_slice %75 {offsets = [11, 0], sizes = [11, 16], strides = [1, 1]} : vector<33x16xf32> to vector<11x16xf32>
    %87 = vector.extract_strided_slice %76 {offsets = [11, 0], sizes = [11, 16], strides = [1, 1]} : vector<22x16xf32> to vector<11x16xf32>
    %88 = arith.addf %86, %87 : vector<11x16xf32>
    %89 = arith.addf %88, %5 : vector<11x16xf32>
    %90 = arith.negf %89 : vector<11x16xf32>
    %91 = math.exp %90 : vector<11x16xf32>
    %cst_32 = arith.constant 1.000000e+00 : f32
    %92 = vector.broadcast %cst_32 : f32 to vector<11x16xf32>
    %93 = arith.addf %92, %91 : vector<11x16xf32>
    %94 = arith.divf %92, %93 : vector<11x16xf32>
    %95 = vector.extract_strided_slice %75 {offsets = [22, 0], sizes = [11, 16], strides = [1, 1]} : vector<33x16xf32> to vector<11x16xf32>
    %96 = arith.mulf %94, %71 : vector<11x16xf32>
    %cst_33 = arith.constant dense<0.000000e+00> : vector<11x16xf32>
    %97 = tpu.matmul %3, %96, %cst_33 {dimension_numbers = #tpu.dot_dimension_numbers<[1], [0], [0], [1], [0, 0, 1, 1], [], []>} : vector<11x11xf32>, vector<11x16xf32>, vector<11x16xf32> -> vector<11x16xf32>
    %98 = arith.addf %95, %97 : vector<11x16xf32>
    %99 = arith.addf %98, %6 : vector<11x16xf32>
    %100 = math.tanh %99 : vector<11x16xf32>
    %cst_34 = arith.constant 1.000000e+00 : f32
    %101 = vector.broadcast %cst_34 : f32 to vector<11x16xf32>
    %102 = arith.subf %101, %85 : vector<11x16xf32>
    %103 = arith.mulf %102, %71 : vector<11x16xf32>
    %104 = arith.mulf %85, %100 : vector<11x16xf32>
    %105 = arith.addf %103, %104 : vector<11x16xf32>
    %c2 = arith.constant 2 : index
    %c0_35 = arith.constant 0 : index
    %c0_36 = arith.constant 0 : index
    %106 = vector.load %arg7[%c2, %c0_35, %c0_36] : memref<5x11x16xf32, #tpu.memory_space<vmem>>, vector<1x11x16xf32>
    %107 = vector.shape_cast %106 : vector<1x11x16xf32> to vector<11x16xf32>
    %108 = vector.shape_cast %105 : vector<11x16xf32> to vector<1x11x16xf32>
    tpu.vector_store %arg7[%c2, %c0_35, %c0_36], %108 {strides = array<i32>} : memref<5x11x16xf32, #tpu.memory_space<vmem>>, vector<1x11x16xf32>,
    %cst_37 = arith.constant dense<0.000000e+00> : vector<33x16xf32>
    %109 = tpu.matmul %1, %105, %cst_37 {dimension_numbers = #tpu.dot_dimension_numbers<[1], [0], [0], [1], [0, 0, 1, 1], [], []>} : vector<33x11xf32>, vector<11x16xf32>, vector<33x16xf32> -> vector<33x16xf32>
    %cst_38 = arith.constant dense<0.000000e+00> : vector<22x16xf32>
    %110 = tpu.matmul %2, %105, %cst_38 {dimension_numbers = #tpu.dot_dimension_numbers<[1], [0], [0], [1], [0, 0, 1, 1], [], []>} : vector<22x11xf32>, vector<11x16xf32>, vector<22x16xf32> -> vector<22x16xf32>
    %111 = vector.extract_strided_slice %109 {offsets = [0, 0], sizes = [11, 16], strides = [1, 1]} : vector<33x16xf32> to vector<11x16xf32>
    %112 = vector.extract_strided_slice %110 {offsets = [0, 0], sizes = [11, 16], strides = [1, 1]} : vector<22x16xf32> to vector<11x16xf32>
    %113 = arith.addf %111, %112 : vector<11x16xf32>
    %114 = arith.addf %113, %4 : vector<11x16xf32>
    %115 = arith.negf %114 : vector<11x16xf32>
    %116 = math.exp %115 : vector<11x16xf32>
    %cst_39 = arith.constant 1.000000e+00 : f32
    %117 = vector.broadcast %cst_39 : f32 to vector<11x16xf32>
    %118 = arith.addf %117, %116 : vector<11x16xf32>
    %119 = arith.divf %117, %118 : vector<11x16xf32>
    %120 = vector.extract_strided_slice %109 {offsets = [11, 0], sizes = [11, 16], strides = [1, 1]} : vector<33x16xf32> to vector<11x16xf32>
    %121 = vector.extract_strided_slice %110 {offsets = [11, 0], sizes = [11, 16], strides = [1, 1]} : vector<22x16xf32> to vector<11x16xf32>
    %122 = arith.addf %120, %121 : vector<11x16xf32>
    %123 = arith.addf %122, %5 : vector<11x16xf32>
    %124 = arith.negf %123 : vector<11x16xf32>
    %125 = math.exp %124 : vector<11x16xf32>
    %cst_40 = arith.constant 1.000000e+00 : f32
    %126 = vector.broadcast %cst_40 : f32 to vector<11x16xf32>
    %127 = arith.addf %126, %125 : vector<11x16xf32>
    %128 = arith.divf %126, %127 : vector<11x16xf32>
    %129 = vector.extract_strided_slice %109 {offsets = [22, 0], sizes = [11, 16], strides = [1, 1]} : vector<33x16xf32> to vector<11x16xf32>
    %130 = arith.mulf %128, %105 : vector<11x16xf32>
    %cst_41 = arith.constant dense<0.000000e+00> : vector<11x16xf32>
    %131 = tpu.matmul %3, %130, %cst_41 {dimension_numbers = #tpu.dot_dimension_numbers<[1], [0], [0], [1], [0, 0, 1, 1], [], []>} : vector<11x11xf32>, vector<11x16xf32>, vector<11x16xf32> -> vector<11x16xf32>
    %132 = arith.addf %129, %131 : vector<11x16xf32>
    %133 = arith.addf %132, %6 : vector<11x16xf32>
    %134 = math.tanh %133 : vector<11x16xf32>
    %cst_42 = arith.constant 1.000000e+00 : f32
    %135 = vector.broadcast %cst_42 : f32 to vector<11x16xf32>
    %136 = arith.subf %135, %119 : vector<11x16xf32>
    %137 = arith.mulf %136, %105 : vector<11x16xf32>
    %138 = arith.mulf %119, %134 : vector<11x16xf32>
    %139 = arith.addf %137, %138 : vector<11x16xf32>
    %c3 = arith.constant 3 : index
    %c0_43 = arith.constant 0 : index
    %c0_44 = arith.constant 0 : index
    %140 = vector.load %arg7[%c3, %c0_43, %c0_44] : memref<5x11x16xf32, #tpu.memory_space<vmem>>, vector<1x11x16xf32>
    %141 = vector.shape_cast %140 : vector<1x11x16xf32> to vector<11x16xf32>
    %142 = vector.shape_cast %139 : vector<11x16xf32> to vector<1x11x16xf32>
    tpu.vector_store %arg7[%c3, %c0_43, %c0_44], %142 {strides = array<i32>} : memref<5x11x16xf32, #tpu.memory_space<vmem>>, vector<1x11x16xf32>,
    %cst_45 = arith.constant dense<0.000000e+00> : vector<33x16xf32>
    %143 = tpu.matmul %1, %139, %cst_45 {dimension_numbers = #tpu.dot_dimension_numbers<[1], [0], [0], [1], [0, 0, 1, 1], [], []>} : vector<33x11xf32>, vector<11x16xf32>, vector<33x16xf32> -> vector<33x16xf32>
    %cst_46 = arith.constant dense<0.000000e+00> : vector<22x16xf32>
    %144 = tpu.matmul %2, %139, %cst_46 {dimension_numbers = #tpu.dot_dimension_numbers<[1], [0], [0], [1], [0, 0, 1, 1], [], []>} : vector<22x11xf32>, vector<11x16xf32>, vector<22x16xf32> -> vector<22x16xf32>
    %145 = vector.extract_strided_slice %143 {offsets = [0, 0], sizes = [11, 16], strides = [1, 1]} : vector<33x16xf32> to vector<11x16xf32>
    %146 = vector.extract_strided_slice %144 {offsets = [0, 0], sizes = [11, 16], strides = [1, 1]} : vector<22x16xf32> to vector<11x16xf32>
    %147 = arith.addf %145, %146 : vector<11x16xf32>
    %148 = arith.addf %147, %4 : vector<11x16xf32>
    %149 = arith.negf %148 : vector<11x16xf32>
    %150 = math.exp %149 : vector<11x16xf32>
    %cst_47 = arith.constant 1.000000e+00 : f32
    %151 = vector.broadcast %cst_47 : f32 to vector<11x16xf32>
    %152 = arith.addf %151, %150 : vector<11x16xf32>
    %153 = arith.divf %151, %152 : vector<11x16xf32>
    %154 = vector.extract_strided_slice %143 {offsets = [11, 0], sizes = [11, 16], strides = [1, 1]} : vector<33x16xf32> to vector<11x16xf32>
    %155 = vector.extract_strided_slice %144 {offsets = [11, 0], sizes = [11, 16], strides = [1, 1]} : vector<22x16xf32> to vector<11x16xf32>
    %156 = arith.addf %154, %155 : vector<11x16xf32>
    %157 = arith.addf %156, %5 : vector<11x16xf32>
    %158 = arith.negf %157 : vector<11x16xf32>
    %159 = math.exp %158 : vector<11x16xf32>
    %cst_48 = arith.constant 1.000000e+00 : f32
    %160 = vector.broadcast %cst_48 : f32 to vector<11x16xf32>
    %161 = arith.addf %160, %159 : vector<11x16xf32>
    %162 = arith.divf %160, %161 : vector<11x16xf32>
    %163 = vector.extract_strided_slice %143 {offsets = [22, 0], sizes = [11, 16], strides = [1, 1]} : vector<33x16xf32> to vector<11x16xf32>
    %164 = arith.mulf %162, %139 : vector<11x16xf32>
    %cst_49 = arith.constant dense<0.000000e+00> : vector<11x16xf32>
    %165 = tpu.matmul %3, %164, %cst_49 {dimension_numbers = #tpu.dot_dimension_numbers<[1], [0], [0], [1], [0, 0, 1, 1], [], []>} : vector<11x11xf32>, vector<11x16xf32>, vector<11x16xf32> -> vector<11x16xf32>
    %166 = arith.addf %163, %165 : vector<11x16xf32>
    %167 = arith.addf %166, %6 : vector<11x16xf32>
    %168 = math.tanh %167 : vector<11x16xf32>
    %cst_50 = arith.constant 1.000000e+00 : f32
    %169 = vector.broadcast %cst_50 : f32 to vector<11x16xf32>
    %170 = arith.subf %169, %153 : vector<11x16xf32>
    %171 = arith.mulf %170, %139 : vector<11x16xf32>
    %172 = arith.mulf %153, %168 : vector<11x16xf32>
    %173 = arith.addf %171, %172 : vector<11x16xf32>
    %c4 = arith.constant 4 : index
    %c0_51 = arith.constant 0 : index
    %c0_52 = arith.constant 0 : index
    %174 = vector.load %arg7[%c4, %c0_51, %c0_52] : memref<5x11x16xf32, #tpu.memory_space<vmem>>, vector<1x11x16xf32>
    %175 = vector.shape_cast %174 : vector<1x11x16xf32> to vector<11x16xf32>
    %176 = vector.shape_cast %173 : vector<11x16xf32> to vector<1x11x16xf32>
    tpu.vector_store %arg7[%c4, %c0_51, %c0_52], %176 {strides = array<i32>} : memref<5x11x16xf32, #tpu.memory_space<vmem>>, vector<1x11x16xf32>,
    return
  }
}

module attributes {stable_mosaic.version = 11 : i64} {
  func.func @_evolve_weights_kernel(%arg0: memref<16x32xf32, #tpu.memory_space<vmem>>, %arg1: memref<48x16xf32, #tpu.memory_space<vmem>>, %arg2: memref<32x16xf32, #tpu.memory_space<vmem>>, %arg3: memref<16x16xf32, #tpu.memory_space<vmem>>, %arg4: memref<16x32xf32, #tpu.memory_space<vmem>>, %arg5: memref<16x32xf32, #tpu.memory_space<vmem>>, %arg6: memref<16x32xf32, #tpu.memory_space<vmem>>, %arg7: memref<5x16x32xf32, #tpu.memory_space<vmem>>) attributes {dimension_semantics = [], scalar_prefetch = 0 : i64, scratch_operands = 0 : i64, tpu.core_type = #tpu.core_type<tc>} {
    %c0 = arith.constant 0 : index
    %c0_0 = arith.constant 0 : index
    %0 = vector.load %arg0[%c0, %c0_0] : memref<16x32xf32, #tpu.memory_space<vmem>>, vector<16x32xf32>
    %c0_1 = arith.constant 0 : index
    %c0_2 = arith.constant 0 : index
    %1 = vector.load %arg1[%c0_1, %c0_2] : memref<48x16xf32, #tpu.memory_space<vmem>>, vector<48x16xf32>
    %c0_3 = arith.constant 0 : index
    %c0_4 = arith.constant 0 : index
    %2 = vector.load %arg2[%c0_3, %c0_4] : memref<32x16xf32, #tpu.memory_space<vmem>>, vector<32x16xf32>
    %c0_5 = arith.constant 0 : index
    %c0_6 = arith.constant 0 : index
    %3 = vector.load %arg3[%c0_5, %c0_6] : memref<16x16xf32, #tpu.memory_space<vmem>>, vector<16x16xf32>
    %c0_7 = arith.constant 0 : index
    %c0_8 = arith.constant 0 : index
    %4 = vector.load %arg4[%c0_7, %c0_8] : memref<16x32xf32, #tpu.memory_space<vmem>>, vector<16x32xf32>
    %c0_9 = arith.constant 0 : index
    %c0_10 = arith.constant 0 : index
    %5 = vector.load %arg5[%c0_9, %c0_10] : memref<16x32xf32, #tpu.memory_space<vmem>>, vector<16x32xf32>
    %c0_11 = arith.constant 0 : index
    %c0_12 = arith.constant 0 : index
    %6 = vector.load %arg6[%c0_11, %c0_12] : memref<16x32xf32, #tpu.memory_space<vmem>>, vector<16x32xf32>
    %cst = arith.constant dense<0.000000e+00> : vector<48x32xf32>
    %7 = tpu.matmul %1, %0, %cst {dimension_numbers = #tpu.dot_dimension_numbers<[1], [0], [0], [1], [0, 0, 1, 1], [], []>} : vector<48x16xf32>, vector<16x32xf32>, vector<48x32xf32> -> vector<48x32xf32>
    %cst_13 = arith.constant dense<0.000000e+00> : vector<32x32xf32>
    %8 = tpu.matmul %2, %0, %cst_13 {dimension_numbers = #tpu.dot_dimension_numbers<[1], [0], [0], [1], [0, 0, 1, 1], [], []>} : vector<32x16xf32>, vector<16x32xf32>, vector<32x32xf32> -> vector<32x32xf32>
    %9 = vector.extract_strided_slice %7 {offsets = [0, 0], sizes = [16, 32], strides = [1, 1]} : vector<48x32xf32> to vector<16x32xf32>
    %10 = vector.extract_strided_slice %8 {offsets = [0, 0], sizes = [16, 32], strides = [1, 1]} : vector<32x32xf32> to vector<16x32xf32>
    %11 = arith.addf %9, %10 : vector<16x32xf32>
    %12 = arith.addf %11, %4 : vector<16x32xf32>
    %13 = arith.negf %12 : vector<16x32xf32>
    %14 = math.exp %13 : vector<16x32xf32>
    %cst_14 = arith.constant 1.000000e+00 : f32
    %15 = vector.broadcast %cst_14 : f32 to vector<16x32xf32>
    %16 = arith.addf %15, %14 : vector<16x32xf32>
    %17 = arith.divf %15, %16 : vector<16x32xf32>
    %18 = vector.extract_strided_slice %7 {offsets = [16, 0], sizes = [16, 32], strides = [1, 1]} : vector<48x32xf32> to vector<16x32xf32>
    %19 = vector.extract_strided_slice %8 {offsets = [16, 0], sizes = [16, 32], strides = [1, 1]} : vector<32x32xf32> to vector<16x32xf32>
    %20 = arith.addf %18, %19 : vector<16x32xf32>
    %21 = arith.addf %20, %5 : vector<16x32xf32>
    %22 = arith.negf %21 : vector<16x32xf32>
    %23 = math.exp %22 : vector<16x32xf32>
    %cst_15 = arith.constant 1.000000e+00 : f32
    %24 = vector.broadcast %cst_15 : f32 to vector<16x32xf32>
    %25 = arith.addf %24, %23 : vector<16x32xf32>
    %26 = arith.divf %24, %25 : vector<16x32xf32>
    %27 = vector.extract_strided_slice %7 {offsets = [32, 0], sizes = [16, 32], strides = [1, 1]} : vector<48x32xf32> to vector<16x32xf32>
    %28 = arith.mulf %26, %0 : vector<16x32xf32>
    %cst_16 = arith.constant dense<0.000000e+00> : vector<16x32xf32>
    %29 = tpu.matmul %3, %28, %cst_16 {dimension_numbers = #tpu.dot_dimension_numbers<[1], [0], [0], [1], [0, 0, 1, 1], [], []>} : vector<16x16xf32>, vector<16x32xf32>, vector<16x32xf32> -> vector<16x32xf32>
    %30 = arith.addf %27, %29 : vector<16x32xf32>
    %31 = arith.addf %30, %6 : vector<16x32xf32>
    %32 = math.tanh %31 : vector<16x32xf32>
    %cst_17 = arith.constant 1.000000e+00 : f32
    %33 = vector.broadcast %cst_17 : f32 to vector<16x32xf32>
    %34 = arith.subf %33, %17 : vector<16x32xf32>
    %35 = arith.mulf %34, %0 : vector<16x32xf32>
    %36 = arith.mulf %17, %32 : vector<16x32xf32>
    %37 = arith.addf %35, %36 : vector<16x32xf32>
    %c0_18 = arith.constant 0 : index
    %c0_19 = arith.constant 0 : index
    %c0_20 = arith.constant 0 : index
    %38 = vector.load %arg7[%c0_18, %c0_19, %c0_20] : memref<5x16x32xf32, #tpu.memory_space<vmem>>, vector<1x16x32xf32>
    %39 = vector.shape_cast %38 : vector<1x16x32xf32> to vector<16x32xf32>
    %40 = vector.shape_cast %37 : vector<16x32xf32> to vector<1x16x32xf32>
    tpu.vector_store %arg7[%c0_18, %c0_19, %c0_20], %40 {strides = array<i32>} : memref<5x16x32xf32, #tpu.memory_space<vmem>>, vector<1x16x32xf32>,
    %cst_21 = arith.constant dense<0.000000e+00> : vector<48x32xf32>
    %41 = tpu.matmul %1, %37, %cst_21 {dimension_numbers = #tpu.dot_dimension_numbers<[1], [0], [0], [1], [0, 0, 1, 1], [], []>} : vector<48x16xf32>, vector<16x32xf32>, vector<48x32xf32> -> vector<48x32xf32>
    %cst_22 = arith.constant dense<0.000000e+00> : vector<32x32xf32>
    %42 = tpu.matmul %2, %37, %cst_22 {dimension_numbers = #tpu.dot_dimension_numbers<[1], [0], [0], [1], [0, 0, 1, 1], [], []>} : vector<32x16xf32>, vector<16x32xf32>, vector<32x32xf32> -> vector<32x32xf32>
    %43 = vector.extract_strided_slice %41 {offsets = [0, 0], sizes = [16, 32], strides = [1, 1]} : vector<48x32xf32> to vector<16x32xf32>
    %44 = vector.extract_strided_slice %42 {offsets = [0, 0], sizes = [16, 32], strides = [1, 1]} : vector<32x32xf32> to vector<16x32xf32>
    %45 = arith.addf %43, %44 : vector<16x32xf32>
    %46 = arith.addf %45, %4 : vector<16x32xf32>
    %47 = arith.negf %46 : vector<16x32xf32>
    %48 = math.exp %47 : vector<16x32xf32>
    %cst_23 = arith.constant 1.000000e+00 : f32
    %49 = vector.broadcast %cst_23 : f32 to vector<16x32xf32>
    %50 = arith.addf %49, %48 : vector<16x32xf32>
    %51 = arith.divf %49, %50 : vector<16x32xf32>
    %52 = vector.extract_strided_slice %41 {offsets = [16, 0], sizes = [16, 32], strides = [1, 1]} : vector<48x32xf32> to vector<16x32xf32>
    %53 = vector.extract_strided_slice %42 {offsets = [16, 0], sizes = [16, 32], strides = [1, 1]} : vector<32x32xf32> to vector<16x32xf32>
    %54 = arith.addf %52, %53 : vector<16x32xf32>
    %55 = arith.addf %54, %5 : vector<16x32xf32>
    %56 = arith.negf %55 : vector<16x32xf32>
    %57 = math.exp %56 : vector<16x32xf32>
    %cst_24 = arith.constant 1.000000e+00 : f32
    %58 = vector.broadcast %cst_24 : f32 to vector<16x32xf32>
    %59 = arith.addf %58, %57 : vector<16x32xf32>
    %60 = arith.divf %58, %59 : vector<16x32xf32>
    %61 = vector.extract_strided_slice %41 {offsets = [32, 0], sizes = [16, 32], strides = [1, 1]} : vector<48x32xf32> to vector<16x32xf32>
    %62 = arith.mulf %60, %37 : vector<16x32xf32>
    %cst_25 = arith.constant dense<0.000000e+00> : vector<16x32xf32>
    %63 = tpu.matmul %3, %62, %cst_25 {dimension_numbers = #tpu.dot_dimension_numbers<[1], [0], [0], [1], [0, 0, 1, 1], [], []>} : vector<16x16xf32>, vector<16x32xf32>, vector<16x32xf32> -> vector<16x32xf32>
    %64 = arith.addf %61, %63 : vector<16x32xf32>
    %65 = arith.addf %64, %6 : vector<16x32xf32>
    %66 = math.tanh %65 : vector<16x32xf32>
    %cst_26 = arith.constant 1.000000e+00 : f32
    %67 = vector.broadcast %cst_26 : f32 to vector<16x32xf32>
    %68 = arith.subf %67, %51 : vector<16x32xf32>
    %69 = arith.mulf %68, %37 : vector<16x32xf32>
    %70 = arith.mulf %51, %66 : vector<16x32xf32>
    %71 = arith.addf %69, %70 : vector<16x32xf32>
    %c1 = arith.constant 1 : index
    %c0_27 = arith.constant 0 : index
    %c0_28 = arith.constant 0 : index
    %72 = vector.load %arg7[%c1, %c0_27, %c0_28] : memref<5x16x32xf32, #tpu.memory_space<vmem>>, vector<1x16x32xf32>
    %73 = vector.shape_cast %72 : vector<1x16x32xf32> to vector<16x32xf32>
    %74 = vector.shape_cast %71 : vector<16x32xf32> to vector<1x16x32xf32>
    tpu.vector_store %arg7[%c1, %c0_27, %c0_28], %74 {strides = array<i32>} : memref<5x16x32xf32, #tpu.memory_space<vmem>>, vector<1x16x32xf32>,
    %cst_29 = arith.constant dense<0.000000e+00> : vector<48x32xf32>
    %75 = tpu.matmul %1, %71, %cst_29 {dimension_numbers = #tpu.dot_dimension_numbers<[1], [0], [0], [1], [0, 0, 1, 1], [], []>} : vector<48x16xf32>, vector<16x32xf32>, vector<48x32xf32> -> vector<48x32xf32>
    %cst_30 = arith.constant dense<0.000000e+00> : vector<32x32xf32>
    %76 = tpu.matmul %2, %71, %cst_30 {dimension_numbers = #tpu.dot_dimension_numbers<[1], [0], [0], [1], [0, 0, 1, 1], [], []>} : vector<32x16xf32>, vector<16x32xf32>, vector<32x32xf32> -> vector<32x32xf32>
    %77 = vector.extract_strided_slice %75 {offsets = [0, 0], sizes = [16, 32], strides = [1, 1]} : vector<48x32xf32> to vector<16x32xf32>
    %78 = vector.extract_strided_slice %76 {offsets = [0, 0], sizes = [16, 32], strides = [1, 1]} : vector<32x32xf32> to vector<16x32xf32>
    %79 = arith.addf %77, %78 : vector<16x32xf32>
    %80 = arith.addf %79, %4 : vector<16x32xf32>
    %81 = arith.negf %80 : vector<16x32xf32>
    %82 = math.exp %81 : vector<16x32xf32>
    %cst_31 = arith.constant 1.000000e+00 : f32
    %83 = vector.broadcast %cst_31 : f32 to vector<16x32xf32>
    %84 = arith.addf %83, %82 : vector<16x32xf32>
    %85 = arith.divf %83, %84 : vector<16x32xf32>
    %86 = vector.extract_strided_slice %75 {offsets = [16, 0], sizes = [16, 32], strides = [1, 1]} : vector<48x32xf32> to vector<16x32xf32>
    %87 = vector.extract_strided_slice %76 {offsets = [16, 0], sizes = [16, 32], strides = [1, 1]} : vector<32x32xf32> to vector<16x32xf32>
    %88 = arith.addf %86, %87 : vector<16x32xf32>
    %89 = arith.addf %88, %5 : vector<16x32xf32>
    %90 = arith.negf %89 : vector<16x32xf32>
    %91 = math.exp %90 : vector<16x32xf32>
    %cst_32 = arith.constant 1.000000e+00 : f32
    %92 = vector.broadcast %cst_32 : f32 to vector<16x32xf32>
    %93 = arith.addf %92, %91 : vector<16x32xf32>
    %94 = arith.divf %92, %93 : vector<16x32xf32>
    %95 = vector.extract_strided_slice %75 {offsets = [32, 0], sizes = [16, 32], strides = [1, 1]} : vector<48x32xf32> to vector<16x32xf32>
    %96 = arith.mulf %94, %71 : vector<16x32xf32>
    %cst_33 = arith.constant dense<0.000000e+00> : vector<16x32xf32>
    %97 = tpu.matmul %3, %96, %cst_33 {dimension_numbers = #tpu.dot_dimension_numbers<[1], [0], [0], [1], [0, 0, 1, 1], [], []>} : vector<16x16xf32>, vector<16x32xf32>, vector<16x32xf32> -> vector<16x32xf32>
    %98 = arith.addf %95, %97 : vector<16x32xf32>
    %99 = arith.addf %98, %6 : vector<16x32xf32>
    %100 = math.tanh %99 : vector<16x32xf32>
    %cst_34 = arith.constant 1.000000e+00 : f32
    %101 = vector.broadcast %cst_34 : f32 to vector<16x32xf32>
    %102 = arith.subf %101, %85 : vector<16x32xf32>
    %103 = arith.mulf %102, %71 : vector<16x32xf32>
    %104 = arith.mulf %85, %100 : vector<16x32xf32>
    %105 = arith.addf %103, %104 : vector<16x32xf32>
    %c2 = arith.constant 2 : index
    %c0_35 = arith.constant 0 : index
    %c0_36 = arith.constant 0 : index
    %106 = vector.load %arg7[%c2, %c0_35, %c0_36] : memref<5x16x32xf32, #tpu.memory_space<vmem>>, vector<1x16x32xf32>
    %107 = vector.shape_cast %106 : vector<1x16x32xf32> to vector<16x32xf32>
    %108 = vector.shape_cast %105 : vector<16x32xf32> to vector<1x16x32xf32>
    tpu.vector_store %arg7[%c2, %c0_35, %c0_36], %108 {strides = array<i32>} : memref<5x16x32xf32, #tpu.memory_space<vmem>>, vector<1x16x32xf32>,
    %cst_37 = arith.constant dense<0.000000e+00> : vector<48x32xf32>
    %109 = tpu.matmul %1, %105, %cst_37 {dimension_numbers = #tpu.dot_dimension_numbers<[1], [0], [0], [1], [0, 0, 1, 1], [], []>} : vector<48x16xf32>, vector<16x32xf32>, vector<48x32xf32> -> vector<48x32xf32>
    %cst_38 = arith.constant dense<0.000000e+00> : vector<32x32xf32>
    %110 = tpu.matmul %2, %105, %cst_38 {dimension_numbers = #tpu.dot_dimension_numbers<[1], [0], [0], [1], [0, 0, 1, 1], [], []>} : vector<32x16xf32>, vector<16x32xf32>, vector<32x32xf32> -> vector<32x32xf32>
    %111 = vector.extract_strided_slice %109 {offsets = [0, 0], sizes = [16, 32], strides = [1, 1]} : vector<48x32xf32> to vector<16x32xf32>
    %112 = vector.extract_strided_slice %110 {offsets = [0, 0], sizes = [16, 32], strides = [1, 1]} : vector<32x32xf32> to vector<16x32xf32>
    %113 = arith.addf %111, %112 : vector<16x32xf32>
    %114 = arith.addf %113, %4 : vector<16x32xf32>
    %115 = arith.negf %114 : vector<16x32xf32>
    %116 = math.exp %115 : vector<16x32xf32>
    %cst_39 = arith.constant 1.000000e+00 : f32
    %117 = vector.broadcast %cst_39 : f32 to vector<16x32xf32>
    %118 = arith.addf %117, %116 : vector<16x32xf32>
    %119 = arith.divf %117, %118 : vector<16x32xf32>
    %120 = vector.extract_strided_slice %109 {offsets = [16, 0], sizes = [16, 32], strides = [1, 1]} : vector<48x32xf32> to vector<16x32xf32>
    %121 = vector.extract_strided_slice %110 {offsets = [16, 0], sizes = [16, 32], strides = [1, 1]} : vector<32x32xf32> to vector<16x32xf32>
    %122 = arith.addf %120, %121 : vector<16x32xf32>
    %123 = arith.addf %122, %5 : vector<16x32xf32>
    %124 = arith.negf %123 : vector<16x32xf32>
    %125 = math.exp %124 : vector<16x32xf32>
    %cst_40 = arith.constant 1.000000e+00 : f32
    %126 = vector.broadcast %cst_40 : f32 to vector<16x32xf32>
    %127 = arith.addf %126, %125 : vector<16x32xf32>
    %128 = arith.divf %126, %127 : vector<16x32xf32>
    %129 = vector.extract_strided_slice %109 {offsets = [32, 0], sizes = [16, 32], strides = [1, 1]} : vector<48x32xf32> to vector<16x32xf32>
    %130 = arith.mulf %128, %105 : vector<16x32xf32>
    %cst_41 = arith.constant dense<0.000000e+00> : vector<16x32xf32>
    %131 = tpu.matmul %3, %130, %cst_41 {dimension_numbers = #tpu.dot_dimension_numbers<[1], [0], [0], [1], [0, 0, 1, 1], [], []>} : vector<16x16xf32>, vector<16x32xf32>, vector<16x32xf32> -> vector<16x32xf32>
    %132 = arith.addf %129, %131 : vector<16x32xf32>
    %133 = arith.addf %132, %6 : vector<16x32xf32>
    %134 = math.tanh %133 : vector<16x32xf32>
    %cst_42 = arith.constant 1.000000e+00 : f32
    %135 = vector.broadcast %cst_42 : f32 to vector<16x32xf32>
    %136 = arith.subf %135, %119 : vector<16x32xf32>
    %137 = arith.mulf %136, %105 : vector<16x32xf32>
    %138 = arith.mulf %119, %134 : vector<16x32xf32>
    %139 = arith.addf %137, %138 : vector<16x32xf32>
    %c3 = arith.constant 3 : index
    %c0_43 = arith.constant 0 : index
    %c0_44 = arith.constant 0 : index
    %140 = vector.load %arg7[%c3, %c0_43, %c0_44] : memref<5x16x32xf32, #tpu.memory_space<vmem>>, vector<1x16x32xf32>
    %141 = vector.shape_cast %140 : vector<1x16x32xf32> to vector<16x32xf32>
    %142 = vector.shape_cast %139 : vector<16x32xf32> to vector<1x16x32xf32>
    tpu.vector_store %arg7[%c3, %c0_43, %c0_44], %142 {strides = array<i32>} : memref<5x16x32xf32, #tpu.memory_space<vmem>>, vector<1x16x32xf32>,
    %cst_45 = arith.constant dense<0.000000e+00> : vector<48x32xf32>
    %143 = tpu.matmul %1, %139, %cst_45 {dimension_numbers = #tpu.dot_dimension_numbers<[1], [0], [0], [1], [0, 0, 1, 1], [], []>} : vector<48x16xf32>, vector<16x32xf32>, vector<48x32xf32> -> vector<48x32xf32>
    %cst_46 = arith.constant dense<0.000000e+00> : vector<32x32xf32>
    %144 = tpu.matmul %2, %139, %cst_46 {dimension_numbers = #tpu.dot_dimension_numbers<[1], [0], [0], [1], [0, 0, 1, 1], [], []>} : vector<32x16xf32>, vector<16x32xf32>, vector<32x32xf32> -> vector<32x32xf32>
    %145 = vector.extract_strided_slice %143 {offsets = [0, 0], sizes = [16, 32], strides = [1, 1]} : vector<48x32xf32> to vector<16x32xf32>
    %146 = vector.extract_strided_slice %144 {offsets = [0, 0], sizes = [16, 32], strides = [1, 1]} : vector<32x32xf32> to vector<16x32xf32>
    %147 = arith.addf %145, %146 : vector<16x32xf32>
    %148 = arith.addf %147, %4 : vector<16x32xf32>
    %149 = arith.negf %148 : vector<16x32xf32>
    %150 = math.exp %149 : vector<16x32xf32>
    %cst_47 = arith.constant 1.000000e+00 : f32
    %151 = vector.broadcast %cst_47 : f32 to vector<16x32xf32>
    %152 = arith.addf %151, %150 : vector<16x32xf32>
    %153 = arith.divf %151, %152 : vector<16x32xf32>
    %154 = vector.extract_strided_slice %143 {offsets = [16, 0], sizes = [16, 32], strides = [1, 1]} : vector<48x32xf32> to vector<16x32xf32>
    %155 = vector.extract_strided_slice %144 {offsets = [16, 0], sizes = [16, 32], strides = [1, 1]} : vector<32x32xf32> to vector<16x32xf32>
    %156 = arith.addf %154, %155 : vector<16x32xf32>
    %157 = arith.addf %156, %5 : vector<16x32xf32>
    %158 = arith.negf %157 : vector<16x32xf32>
    %159 = math.exp %158 : vector<16x32xf32>
    %cst_48 = arith.constant 1.000000e+00 : f32
    %160 = vector.broadcast %cst_48 : f32 to vector<16x32xf32>
    %161 = arith.addf %160, %159 : vector<16x32xf32>
    %162 = arith.divf %160, %161 : vector<16x32xf32>
    %163 = vector.extract_strided_slice %143 {offsets = [32, 0], sizes = [16, 32], strides = [1, 1]} : vector<48x32xf32> to vector<16x32xf32>
    %164 = arith.mulf %162, %139 : vector<16x32xf32>
    %cst_49 = arith.constant dense<0.000000e+00> : vector<16x32xf32>
    %165 = tpu.matmul %3, %164, %cst_49 {dimension_numbers = #tpu.dot_dimension_numbers<[1], [0], [0], [1], [0, 0, 1, 1], [], []>} : vector<16x16xf32>, vector<16x32xf32>, vector<16x32xf32> -> vector<16x32xf32>
    %166 = arith.addf %163, %165 : vector<16x32xf32>
    %167 = arith.addf %166, %6 : vector<16x32xf32>
    %168 = math.tanh %167 : vector<16x32xf32>
    %cst_50 = arith.constant 1.000000e+00 : f32
    %169 = vector.broadcast %cst_50 : f32 to vector<16x32xf32>
    %170 = arith.subf %169, %153 : vector<16x32xf32>
    %171 = arith.mulf %170, %139 : vector<16x32xf32>
    %172 = arith.mulf %153, %168 : vector<16x32xf32>
    %173 = arith.addf %171, %172 : vector<16x32xf32>
    %c4 = arith.constant 4 : index
    %c0_51 = arith.constant 0 : index
    %c0_52 = arith.constant 0 : index
    %174 = vector.load %arg7[%c4, %c0_51, %c0_52] : memref<5x16x32xf32, #tpu.memory_space<vmem>>, vector<1x16x32xf32>
    %175 = vector.shape_cast %174 : vector<1x16x32xf32> to vector<16x32xf32>
    %176 = vector.shape_cast %173 : vector<16x32xf32> to vector<1x16x32xf32>
    tpu.vector_store %arg7[%c4, %c0_51, %c0_52], %176 {strides = array<i32>} : memref<5x16x32xf32, #tpu.memory_space<vmem>>, vector<1x16x32xf32>,
    return
  }
}

module attributes {stable_mosaic.version = 11 : i64} {
  func.func @_state_former_kernel(%arg0: i32, %arg1: memref<1x5x8x11xf32, #tpu.memory_space<vmem>>, %arg2: memref<1x1x36xf32, #tpu.memory_space<vmem>>, %arg3: memref<11x96xf32, #tpu.memory_space<vmem>>, %arg4: memref<1x96xf32, #tpu.memory_space<vmem>>, %arg5: memref<5x11x16xf32, #tpu.memory_space<vmem>>, %arg6: memref<5x16x32xf32, #tpu.memory_space<vmem>>, %arg7: memref<32x384xf32, #tpu.memory_space<vmem>>, %arg8: memref<1x384xf32, #tpu.memory_space<vmem>>, %arg9: memref<128x768xf32, #tpu.memory_space<vmem>>, %arg10: memref<1x768xf32, #tpu.memory_space<vmem>>, %arg11: memref<36x13xf32, #tpu.memory_space<vmem>>, %arg12: memref<256x13xf32, #tpu.memory_space<vmem>>, %arg13: memref<1x13xf32, #tpu.memory_space<vmem>>, %arg14: memref<1x1x13xf32, #tpu.memory_space<vmem>>) attributes {dimension_semantics = [#tpu.dimension_semantics<parallel>], iteration_bounds = array<i64: 2>, scalar_prefetch = 0 : i64, scratch_operands = 0 : i64, tpu.core_type = #tpu.core_type<tc>, window_params = [{transform_indices = @transform_0, window_bounds = array<i64: 1, 5, 8, 11>}, {transform_indices = @transform_1, window_bounds = array<i64: 1, 1, 36>}, {pipeline_mode = #tpu.pipeline_mode<synchronous>, transform_indices = @transform_2, window_bounds = array<i64: 11, 96>}, {pipeline_mode = #tpu.pipeline_mode<synchronous>, transform_indices = @transform_3, window_bounds = array<i64: 1, 96>}, {pipeline_mode = #tpu.pipeline_mode<synchronous>, transform_indices = @transform_4, window_bounds = array<i64: 5, 11, 16>}, {pipeline_mode = #tpu.pipeline_mode<synchronous>, transform_indices = @transform_5, window_bounds = array<i64: 5, 16, 32>}, {pipeline_mode = #tpu.pipeline_mode<synchronous>, transform_indices = @transform_6, window_bounds = array<i64: 32, 384>}, {pipeline_mode = #tpu.pipeline_mode<synchronous>, transform_indices = @transform_7, window_bounds = array<i64: 1, 384>}, {pipeline_mode = #tpu.pipeline_mode<synchronous>, transform_indices = @transform_8, window_bounds = array<i64: 128, 768>}, {pipeline_mode = #tpu.pipeline_mode<synchronous>, transform_indices = @transform_9, window_bounds = array<i64: 1, 768>}, {pipeline_mode = #tpu.pipeline_mode<synchronous>, transform_indices = @transform_10, window_bounds = array<i64: 36, 13>}, {pipeline_mode = #tpu.pipeline_mode<synchronous>, transform_indices = @transform_11, window_bounds = array<i64: 256, 13>}, {pipeline_mode = #tpu.pipeline_mode<synchronous>, transform_indices = @transform_12, window_bounds = array<i64: 1, 13>}, {transform_indices = @transform_13, window_bounds = array<i64: 1, 1, 13>}]} {
    %c0 = arith.constant 0 : index
    %c0_0 = arith.constant 0 : index
    %c0_1 = arith.constant 0 : index
    %c0_2 = arith.constant 0 : index
    %0 = vector.load %arg1[%c0, %c0_0, %c0_1, %c0_2] : memref<1x5x8x11xf32, #tpu.memory_space<vmem>>, vector<1x5x8x11xf32>
    %1 = vector.shape_cast %0 : vector<1x5x8x11xf32> to vector<5x8x11xf32>
    %2 = vector.shape_cast %1 : vector<5x8x11xf32> to vector<40x11xf32>
    %c0_3 = arith.constant 0 : index
    %c0_4 = arith.constant 0 : index
    %3 = vector.load %arg3[%c0_3, %c0_4] : memref<11x96xf32, #tpu.memory_space<vmem>>, vector<11x96xf32>
    %cst = arith.constant dense<0.000000e+00> : vector<40x96xf32>
    %4 = tpu.matmul %2, %3, %cst {dimension_numbers = #tpu.dot_dimension_numbers<[1], [0], [0], [1], [0, 0, 1, 1], [], []>} : vector<40x11xf32>, vector<11x96xf32>, vector<40x96xf32> -> vector<40x96xf32>
    %c0_5 = arith.constant 0 : index
    %c0_6 = arith.constant 0 : index
    %5 = vector.load %arg4[%c0_5, %c0_6] : memref<1x96xf32, #tpu.memory_space<vmem>>, vector<1x96xf32>
    %6 = vector.broadcast %5 : vector<1x96xf32> to vector<40x96xf32>
    %7 = arith.addf %4, %6 : vector<40x96xf32>
    %8 = vector.shape_cast %7 : vector<40x96xf32> to vector<5x8x96xf32>
    %9 = vector.extract_strided_slice %8 {offsets = [0, 0, 0], sizes = [5, 8, 48], strides = [1, 1, 1]} : vector<5x8x96xf32> to vector<5x8x48xf32>
    %10 = vector.extract_strided_slice %8 {offsets = [0, 0, 48], sizes = [5, 8, 48], strides = [1, 1, 1]} : vector<5x8x96xf32> to vector<5x8x48xf32>
    "tpu.trace_start"() <{level = 10 : i32, message = "tnh,tmh->tnm"}> : () -> ()
    %cst_7 = arith.constant dense<0.000000e+00> : vector<5x8x8xf32>
    %11 = tpu.matmul %9, %10, %cst_7 {dimension_numbers = #tpu.dot_dimension_numbers<[2], [2], [1], [1], [0, 0, 0, 1, 1, 1], [0], [0]>} : vector<5x8x48xf32>, vector<5x8x48xf32>, vector<5x8x8xf32> -> vector<5x8x8xf32>
    "tpu.trace_stop"() : () -> ()
    %cst_8 = arith.constant dense<0xFF800000> : vector<5x8xf32>
    %12 = vector.multi_reduction <maximumf>, %11, %cst_8 [2] : vector<5x8x8xf32> to vector<5x8xf32>
    %13 = vector.shape_cast %12 : vector<5x8xf32> to vector<5x8x1xf32>
    %14 = vector.broadcast %13 : vector<5x8x1xf32> to vector<5x8x8xf32>
    %15 = arith.subf %11, %14 : vector<5x8x8xf32>
    %16 = math.exp %15 : vector<5x8x8xf32>
    %cst_9 = arith.constant dense<0.000000e+00> : vector<5x8xf32>
    %17 = vector.multi_reduction <add>, %16, %cst_9 [2] : vector<5x8x8xf32> to vector<5x8xf32>
    %18 = vector.shape_cast %17 : vector<5x8xf32> to vector<5x8x1xf32>
    %19 = tpu.reciprocal %18 {approx = true} : vector<5x8x1xf32> -> vector<5x8x1xf32>
    %20 = vector.broadcast %19 : vector<5x8x1xf32> to vector<5x8x8xf32>
    %21 = arith.mulf %16, %20 : vector<5x8x8xf32>
    %c0_10 = arith.constant 0 : index
    %c0_11 = arith.constant 0 : index
    %c0_12 = arith.constant 0 : index
    %22 = vector.load %arg5[%c0_10, %c0_11, %c0_12] : memref<5x11x16xf32, #tpu.memory_space<vmem>>, vector<5x11x16xf32>
    "tpu.trace_start"() <{level = 10 : i32, message = "tnf,tfo->tno"}> : () -> ()
    %cst_13 = arith.constant dense<0.000000e+00> : vector<5x8x16xf32>
    %23 = tpu.matmul %1, %22, %cst_13 {dimension_numbers = #tpu.dot_dimension_numbers<[2], [1], [1], [2], [0, 0, 0, 1, 1, 2], [0], [0]>} : vector<5x8x11xf32>, vector<5x11x16xf32>, vector<5x8x16xf32> -> vector<5x8x16xf32>
    "tpu.trace_stop"() : () -> ()
    "tpu.trace_start"() <{level = 10 : i32, message = "tnm,tmo->tno"}> : () -> ()
    %cst_14 = arith.constant dense<0.000000e+00> : vector<5x8x16xf32>
    %24 = tpu.matmul %21, %23, %cst_14 {dimension_numbers = #tpu.dot_dimension_numbers<[2], [1], [1], [2], [0, 0, 0, 1, 1, 2], [0], [0]>} : vector<5x8x8xf32>, vector<5x8x16xf32>, vector<5x8x16xf32> -> vector<5x8x16xf32>
    "tpu.trace_stop"() : () -> ()
    %cst_15 = arith.constant 0.000000e+00 : f32
    %25 = vector.broadcast %cst_15 : f32 to vector<5x8x16xf32>
    %26 = arith.maximumf %24, %25 : vector<5x8x16xf32>
    %c0_16 = arith.constant 0 : index
    %c0_17 = arith.constant 0 : index
    %c0_18 = arith.constant 0 : index
    %27 = vector.load %arg6[%c0_16, %c0_17, %c0_18] : memref<5x16x32xf32, #tpu.memory_space<vmem>>, vector<5x16x32xf32>
    "tpu.trace_start"() <{level = 10 : i32, message = "tnf,tfo->tno"}> : () -> ()
    %cst_19 = arith.constant dense<0.000000e+00> : vector<5x8x32xf32>
    %28 = tpu.matmul %26, %27, %cst_19 {dimension_numbers = #tpu.dot_dimension_numbers<[2], [1], [1], [2], [0, 0, 0, 1, 1, 2], [0], [0]>} : vector<5x8x16xf32>, vector<5x16x32xf32>, vector<5x8x32xf32> -> vector<5x8x32xf32>
    "tpu.trace_stop"() : () -> ()
    "tpu.trace_start"() <{level = 10 : i32, message = "tnm,tmo->tno"}> : () -> ()
    %cst_20 = arith.constant dense<0.000000e+00> : vector<5x8x32xf32>
    %29 = tpu.matmul %21, %28, %cst_20 {dimension_numbers = #tpu.dot_dimension_numbers<[2], [1], [1], [2], [0, 0, 0, 1, 1, 2], [0], [0]>} : vector<5x8x8xf32>, vector<5x8x32xf32>, vector<5x8x32xf32> -> vector<5x8x32xf32>
    "tpu.trace_stop"() : () -> ()
    %cst_21 = arith.constant 0.000000e+00 : f32
    %30 = vector.broadcast %cst_21 : f32 to vector<5x8x32xf32>
    %31 = arith.maximumf %29, %30 : vector<5x8x32xf32>
    %32 = vector.shape_cast %31 : vector<5x8x32xf32> to vector<40x32xf32>
    %c0_22 = arith.constant 0 : index
    %c0_23 = arith.constant 0 : index
    %33 = vector.load %arg7[%c0_22, %c0_23] : memref<32x384xf32, #tpu.memory_space<vmem>>, vector<32x384xf32>
    %cst_24 = arith.constant dense<0.000000e+00> : vector<40x384xf32>
    %34 = tpu.matmul %32, %33, %cst_24 {dimension_numbers = #tpu.dot_dimension_numbers<[1], [0], [0], [1], [0, 0, 1, 1], [], []>} : vector<40x32xf32>, vector<32x384xf32>, vector<40x384xf32> -> vector<40x384xf32>
    %c0_25 = arith.constant 0 : index
    %c0_26 = arith.constant 0 : index
    %35 = vector.load %arg8[%c0_25, %c0_26] : memref<1x384xf32, #tpu.memory_space<vmem>>, vector<1x384xf32>
    %36 = vector.broadcast %35 : vector<1x384xf32> to vector<40x384xf32>
    %37 = arith.addf %34, %36 : vector<40x384xf32>
    %38 = vector.shape_cast %37 : vector<40x384xf32> to vector<5x8x384xf32>
    %39 = vector.extract_strided_slice %38 {offsets = [0, 0, 0], sizes = [5, 8, 128], strides = [1, 1, 1]} : vector<5x8x384xf32> to vector<5x8x128xf32>
    %40 = vector.extract_strided_slice %38 {offsets = [0, 0, 128], sizes = [5, 8, 128], strides = [1, 1, 1]} : vector<5x8x384xf32> to vector<5x8x128xf32>
    %41 = vector.extract_strided_slice %38 {offsets = [0, 0, 256], sizes = [5, 8, 128], strides = [1, 1, 1]} : vector<5x8x384xf32> to vector<5x8x128xf32>
    "tpu.trace_start"() <{level = 10 : i32, message = "tnh,tmh->tnm"}> : () -> ()
    %cst_27 = arith.constant dense<0.000000e+00> : vector<5x8x8xf32>
    %42 = tpu.matmul %39, %40, %cst_27 {dimension_numbers = #tpu.dot_dimension_numbers<[2], [2], [1], [1], [0, 0, 0, 1, 1, 1], [0], [0]>} : vector<5x8x128xf32>, vector<5x8x128xf32>, vector<5x8x8xf32> -> vector<5x8x8xf32>
    "tpu.trace_stop"() : () -> ()
    %cst_28 = arith.constant 0.0883883461 : f32
    %43 = vector.broadcast %cst_28 : f32 to vector<5x8x8xf32>
    %44 = arith.mulf %42, %43 : vector<5x8x8xf32>
    %cst_29 = arith.constant dense<0xFF800000> : vector<5x8xf32>
    %45 = vector.multi_reduction <maximumf>, %44, %cst_29 [2] : vector<5x8x8xf32> to vector<5x8xf32>
    %46 = vector.shape_cast %45 : vector<5x8xf32> to vector<5x8x1xf32>
    %47 = vector.broadcast %46 : vector<5x8x1xf32> to vector<5x8x8xf32>
    %48 = arith.subf %44, %47 : vector<5x8x8xf32>
    %49 = math.exp %48 : vector<5x8x8xf32>
    %cst_30 = arith.constant dense<0.000000e+00> : vector<5x8xf32>
    %50 = vector.multi_reduction <add>, %49, %cst_30 [2] : vector<5x8x8xf32> to vector<5x8xf32>
    %51 = vector.shape_cast %50 : vector<5x8xf32> to vector<5x8x1xf32>
    %52 = tpu.reciprocal %51 {approx = true} : vector<5x8x1xf32> -> vector<5x8x1xf32>
    %53 = vector.broadcast %52 : vector<5x8x1xf32> to vector<5x8x8xf32>
    %54 = arith.mulf %49, %53 : vector<5x8x8xf32>
    "tpu.trace_start"() <{level = 10 : i32, message = "tnm,tmh->tnh"}> : () -> ()
    %cst_31 = arith.constant dense<0.000000e+00> : vector<5x8x128xf32>
    %55 = tpu.matmul %54, %41, %cst_31 {dimension_numbers = #tpu.dot_dimension_numbers<[2], [1], [1], [2], [0, 0, 0, 1, 1, 2], [0], [0]>} : vector<5x8x8xf32>, vector<5x8x128xf32>, vector<5x8x128xf32> -> vector<5x8x128xf32>
    "tpu.trace_stop"() : () -> ()
    %cst_32 = arith.constant dense<0.000000e+00> : vector<5x128xf32>
    %56 = vector.multi_reduction <add>, %55, %cst_32 [1] : vector<5x8x128xf32> to vector<5x128xf32>
    %cst_33 = arith.constant 8.000000e+00 : f32
    %57 = vector.broadcast %cst_33 : f32 to vector<5x128xf32>
    %58 = arith.divf %56, %57 : vector<5x128xf32>
    %c0_34 = arith.constant 0 : index
    %c0_35 = arith.constant 0 : index
    %59 = vector.load %arg9[%c0_34, %c0_35] : memref<128x768xf32, #tpu.memory_space<vmem>>, vector<128x768xf32>
    %cst_36 = arith.constant dense<0.000000e+00> : vector<5x768xf32>
    %60 = tpu.matmul %58, %59, %cst_36 {dimension_numbers = #tpu.dot_dimension_numbers<[1], [0], [0], [1], [0, 0, 1, 1], [], []>} : vector<5x128xf32>, vector<128x768xf32>, vector<5x768xf32> -> vector<5x768xf32>
    %c0_37 = arith.constant 0 : index
    %c0_38 = arith.constant 0 : index
    %61 = vector.load %arg10[%c0_37, %c0_38] : memref<1x768xf32, #tpu.memory_space<vmem>>, vector<1x768xf32>
    %62 = vector.broadcast %61 : vector<1x768xf32> to vector<5x768xf32>
    %63 = arith.addf %60, %62 : vector<5x768xf32>
    %64 = vector.extract_strided_slice %63 {offsets = [0, 0], sizes = [5, 256], strides = [1, 1]} : vector<5x768xf32> to vector<5x256xf32>
    %65 = vector.extract_strided_slice %63 {offsets = [0, 256], sizes = [5, 256], strides = [1, 1]} : vector<5x768xf32> to vector<5x256xf32>
    %66 = vector.extract_strided_slice %63 {offsets = [0, 512], sizes = [5, 256], strides = [1, 1]} : vector<5x768xf32> to vector<5x256xf32>
    %67 = tpu.transpose %65, [1, 0] : vector<5x256xf32> -> vector<256x5xf32>
    %cst_39 = arith.constant dense<0.000000e+00> : vector<5x5xf32>
    %68 = tpu.matmul %64, %67, %cst_39 {dimension_numbers = #tpu.dot_dimension_numbers<[1], [0], [0], [1], [0, 0, 1, 1], [], []>} : vector<5x256xf32>, vector<256x5xf32>, vector<5x5xf32> -> vector<5x5xf32>
    %cst_40 = arith.constant 6.250000e-02 : f32
    %69 = vector.broadcast %cst_40 : f32 to vector<5x5xf32>
    %70 = arith.mulf %68, %69 : vector<5x5xf32>
    %cst_41 = arith.constant dense<0xFF800000> : vector<5xf32>
    %71 = vector.multi_reduction <maximumf>, %70, %cst_41 [1] : vector<5x5xf32> to vector<5xf32>
    %72 = vector.shape_cast %71 : vector<5xf32> to vector<5x1xf32>
    %73 = vector.broadcast %72 : vector<5x1xf32> to vector<5x5xf32>
    %74 = arith.subf %70, %73 : vector<5x5xf32>
    %75 = math.exp %74 : vector<5x5xf32>
    %cst_42 = arith.constant dense<0.000000e+00> : vector<5xf32>
    %76 = vector.multi_reduction <add>, %75, %cst_42 [1] : vector<5x5xf32> to vector<5xf32>
    %77 = vector.shape_cast %76 : vector<5xf32> to vector<5x1xf32>
    %78 = tpu.reciprocal %77 {approx = true} : vector<5x1xf32> -> vector<5x1xf32>
    %79 = vector.broadcast %78 : vector<5x1xf32> to vector<5x5xf32>
    %80 = arith.mulf %75, %79 : vector<5x5xf32>
    %cst_43 = arith.constant dense<0.000000e+00> : vector<5x256xf32>
    %81 = tpu.matmul %80, %66, %cst_43 {dimension_numbers = #tpu.dot_dimension_numbers<[1], [0], [0], [1], [0, 0, 1, 1], [], []>} : vector<5x5xf32>, vector<5x256xf32>, vector<5x256xf32> -> vector<5x256xf32>
    %cst_44 = arith.constant dense<0.000000e+00> : vector<256xf32>
    %82 = vector.multi_reduction <add>, %81, %cst_44 [0] : vector<5x256xf32> to vector<256xf32>
    %83 = vector.shape_cast %82 : vector<256xf32> to vector<1x256xf32>
    %cst_45 = arith.constant 5.000000e+00 : f32
    %84 = vector.broadcast %cst_45 : f32 to vector<1x256xf32>
    %85 = arith.divf %83, %84 : vector<1x256xf32>
    %c0_46 = arith.constant 0 : index
    %c0_47 = arith.constant 0 : index
    %c0_48 = arith.constant 0 : index
    %86 = vector.load %arg2[%c0_46, %c0_47, %c0_48] : memref<1x1x36xf32, #tpu.memory_space<vmem>>, vector<1x1x36xf32>
    %87 = vector.shape_cast %86 : vector<1x1x36xf32> to vector<1x36xf32>
    %c0_49 = arith.constant 0 : index
    %c0_50 = arith.constant 0 : index
    %88 = vector.load %arg11[%c0_49, %c0_50] : memref<36x13xf32, #tpu.memory_space<vmem>>, vector<36x13xf32>
    %cst_51 = arith.constant dense<0.000000e+00> : vector<1x13xf32>
    %89 = tpu.matmul %87, %88, %cst_51 {dimension_numbers = #tpu.dot_dimension_numbers<[1], [0], [0], [1], [0, 0, 1, 1], [], []>} : vector<1x36xf32>, vector<36x13xf32>, vector<1x13xf32> -> vector<1x13xf32>
    %c0_52 = arith.constant 0 : index
    %c0_53 = arith.constant 0 : index
    %90 = vector.load %arg12[%c0_52, %c0_53] : memref<256x13xf32, #tpu.memory_space<vmem>>, vector<256x13xf32>
    %cst_54 = arith.constant dense<0.000000e+00> : vector<1x13xf32>
    %91 = tpu.matmul %85, %90, %cst_54 {dimension_numbers = #tpu.dot_dimension_numbers<[1], [0], [0], [1], [0, 0, 1, 1], [], []>} : vector<1x256xf32>, vector<256x13xf32>, vector<1x13xf32> -> vector<1x13xf32>
    %92 = arith.addf %89, %91 : vector<1x13xf32>
    %c0_55 = arith.constant 0 : index
    %c0_56 = arith.constant 0 : index
    %93 = vector.load %arg13[%c0_55, %c0_56] : memref<1x13xf32, #tpu.memory_space<vmem>>, vector<1x13xf32>
    %94 = arith.addf %92, %93 : vector<1x13xf32>
    %c0_57 = arith.constant 0 : index
    %c0_58 = arith.constant 0 : index
    %c0_59 = arith.constant 0 : index
    %95 = vector.load %arg14[%c0_57, %c0_58, %c0_59] : memref<1x1x13xf32, #tpu.memory_space<vmem>>, vector<1x1x13xf32>
    %96 = vector.shape_cast %95 : vector<1x1x13xf32> to vector<1x13xf32>
    %97 = vector.shape_cast %94 : vector<1x13xf32> to vector<1x1x13xf32>
    tpu.vector_store %arg14[%c0_57, %c0_58, %c0_59], %97 {strides = array<i32>} : memref<1x1x13xf32, #tpu.memory_space<vmem>>, vector<1x1x13xf32>,
    return
  }
  func.func @transform_0(%arg0: i32) -> (i32, i32, i32, i32) {
    %c0_i32 = arith.constant 0 : i32
    %c0_i32_0 = arith.constant 0 : i32
    %c0_i32_1 = arith.constant 0 : i32
    %c0_i32_2 = arith.constant 0 : i32
    return %arg0, %c0_i32, %c0_i32_0, %c0_i32_1 : i32, i32, i32, i32
  }
  func.func @transform_1(%arg0: i32) -> (i32, i32, i32) {
    %c0_i32 = arith.constant 0 : i32
    %c0_i32_0 = arith.constant 0 : i32
    %c0_i32_1 = arith.constant 0 : i32
    return %arg0, %c0_i32, %c0_i32_0 : i32, i32, i32
  }
  func.func @transform_2(%arg0: i32) -> (i32, i32) {
    %c0_i32 = arith.constant 0 : i32
    %c0_i32_0 = arith.constant 0 : i32
    %c0_i32_1 = arith.constant 0 : i32
    return %c0_i32, %c0_i32_0 : i32, i32
  }
  func.func @transform_3(%arg0: i32) -> (i32, i32) {
    %c0_i32 = arith.constant 0 : i32
    %c0_i32_0 = arith.constant 0 : i32
    %c0_i32_1 = arith.constant 0 : i32
    return %c0_i32, %c0_i32_0 : i32, i32
  }
  func.func @transform_4(%arg0: i32) -> (i32, i32, i32) {
    %c0_i32 = arith.constant 0 : i32
    %c0_i32_0 = arith.constant 0 : i32
    %c0_i32_1 = arith.constant 0 : i32
    %c0_i32_2 = arith.constant 0 : i32
    return %c0_i32, %c0_i32_0, %c0_i32_1 : i32, i32, i32
  }
  func.func @transform_5(%arg0: i32) -> (i32, i32, i32) {
    %c0_i32 = arith.constant 0 : i32
    %c0_i32_0 = arith.constant 0 : i32
    %c0_i32_1 = arith.constant 0 : i32
    %c0_i32_2 = arith.constant 0 : i32
    return %c0_i32, %c0_i32_0, %c0_i32_1 : i32, i32, i32
  }
  func.func @transform_6(%arg0: i32) -> (i32, i32) {
    %c0_i32 = arith.constant 0 : i32
    %c0_i32_0 = arith.constant 0 : i32
    %c0_i32_1 = arith.constant 0 : i32
    return %c0_i32, %c0_i32_0 : i32, i32
  }
  func.func @transform_7(%arg0: i32) -> (i32, i32) {
    %c0_i32 = arith.constant 0 : i32
    %c0_i32_0 = arith.constant 0 : i32
    %c0_i32_1 = arith.constant 0 : i32
    return %c0_i32, %c0_i32_0 : i32, i32
  }
  func.func @transform_8(%arg0: i32) -> (i32, i32) {
    %c0_i32 = arith.constant 0 : i32
    %c0_i32_0 = arith.constant 0 : i32
    %c0_i32_1 = arith.constant 0 : i32
    return %c0_i32, %c0_i32_0 : i32, i32
  }
  func.func @transform_9(%arg0: i32) -> (i32, i32) {
    %c0_i32 = arith.constant 0 : i32
    %c0_i32_0 = arith.constant 0 : i32
    %c0_i32_1 = arith.constant 0 : i32
    return %c0_i32, %c0_i32_0 : i32, i32
  }
  func.func @transform_10(%arg0: i32) -> (i32, i32) {
    %c0_i32 = arith.constant 0 : i32
    %c0_i32_0 = arith.constant 0 : i32
    %c0_i32_1 = arith.constant 0 : i32
    return %c0_i32, %c0_i32_0 : i32, i32
  }
  func.func @transform_11(%arg0: i32) -> (i32, i32) {
    %c0_i32 = arith.constant 0 : i32
    %c0_i32_0 = arith.constant 0 : i32
    %c0_i32_1 = arith.constant 0 : i32
    return %c0_i32, %c0_i32_0 : i32, i32
  }
  func.func @transform_12(%arg0: i32) -> (i32, i32) {
    %c0_i32 = arith.constant 0 : i32
    %c0_i32_0 = arith.constant 0 : i32
    %c0_i32_1 = arith.constant 0 : i32
    return %c0_i32, %c0_i32_0 : i32, i32
  }
  func.func @transform_13(%arg0: i32) -> (i32, i32, i32) {
    %c0_i32 = arith.constant 0 : i32
    %c0_i32_0 = arith.constant 0 : i32
    %c0_i32_1 = arith.constant 0 : i32
    return %arg0, %c0_i32, %c0_i32_0 : i32, i32, i32
  }
}

</mosaic_0001>

<bundles_post_ra>
// kernel: state_former_forward.3
= control target key start
LH: loop header
LB: loop body
LE: loop exit
PB: predicated region body
PF: predicated region fallthrough
CT: control target
= control target key end

     0   :  { %12 = vsyncpa [#allocation3], 0  ;;  %s2962_s0 = inlined_call_operand.hbm [shape: f32[11,16], index: 0, kind: input, shape index: {}]   ;;  %s2963_s1 = inlined_call_operand.vmem [shape: f32[33,11], index: 1, kind: input, shape index: {}]   ;;  %s2964_s2 = inlined_call_operand.vmem [shape: f32[22,11], index: 2, kind: input, shape index: {}]   ;;  %s2965_s3 = inlined_call_operand.hbm [shape: f32[11,11], index: 3, kind: input, shape index: {}]   ;;  %s2966_s4 = inlined_call_operand.hbm [shape: f32[11,16], index: 4, kind: input, shape index: {}]   ;;  %s2967_s5 = inlined_call_operand.hbm [shape: f32[11,16], index: 5, kind: input, shape index: {}]   ;;  %s2968_s6 = inlined_call_operand.hbm [shape: f32[11,16], index: 6, kind: input, shape index: {}]   ;;  %s2969_s7 = inlined_call_operand.vmem [shape: f32[5,11,16], index: 7, kind: output, shape index: {}]  }
   0x1   :  { %13 = vsyncpa [#allocation5], 0 }
   0x2   :  { %14 = vsyncpa [#allocation8], 0  ;;  %s2428_s24 = smov [#allocation4]   ;;  %s2429_s26 = smov [#allocation7]  }
   0x3   :  { %s36_s25 = sshll.u32 %s2428_s24, 4  ;;  %s60_s27 = sshll.u32 %s2429_s26, 4  ;;  %s37_s25 = int_to_ptr.vmem [resolvable:$true] %s36_s25  ;;  %s61_s27 = int_to_ptr.vmem [resolvable:$true] %s60_s27 }
   0x4   :  { %s2330_s28 = scalar_lea.vmem %s37_s25, 256  ;;  %p2335_p1 = scmp.lt.s32.totalorder %s37_s25, %s37_s25 }
   0x5   :  { %p2331_p0 = scmp.ne.s32.totalorder %s37_s25, %s2330_s28  ;;  %p2336_p2 = scmp.lt.s32.totalorder %s2330_s28, %s2330_s28 }
   0x7   :  { %p2337_p3 = por %p2336_p2, %p2335_p1 }
   0x9   :  { %p2338_p4 = pnand %p2337_p3, %p2331_p0 }
   0xb   :  { %2341 = shalt.err (!%p2338_p4)
}
   0xc   :  { %s2430_s29 = smov 128   ;;  %s2431_s30 = smov 8  }
   0xd   :  { %42 = dma.hbm_to_vmem [thread:$0]  %s2965_s3, 256, %s37_s25, [#allocation5], %s2430_s29, %s2430_s29, %s2431_s30  }
   0xe   :  { %s2350_s10 = scalar_lea.vmem %s61_s27, 256  ;;  %p2355_p6 = scmp.lt.s32.totalorder %s61_s27, %s61_s27 }
   0xf   :  { %p2351_p5 = scmp.ne.s32.totalorder %s61_s27, %s2350_s10  ;;  %p2356_p7 = scmp.lt.s32.totalorder %s2350_s10, %s2350_s10 }
  0x11   :  { %p2357_p8 = por %p2356_p7, %p2355_p6 }
  0x13   :  { %p2358_p9 = pnand %p2357_p8, %p2351_p5 }
  0x15   :  { %2361 = shalt.err (!%p2358_p9)
}
  0x16   :  { %66 = dma.hbm_to_vmem [thread:$0]  %s2967_s5, 256, %s61_s27, [#allocation8], %s2430_s29, %s2430_s29, %s2431_s30  }
  0x17   :  { %s2432_s13 = smov [#allocation2]   ;;  %s2433_s15 = smov [#allocation6]  }
  0x18   :  { %s20_s14 = sshll.u32 %s2432_s13, 4  ;;  %s48_s16 = sshll.u32 %s2433_s15, 4  ;;  %s21_s14 = int_to_ptr.vmem [resolvable:$true] %s20_s14  ;;  %s49_s16 = int_to_ptr.vmem [resolvable:$true] %s48_s16 }
  0x19   :  { %s2370_s3 = scalar_lea.vmem %s21_s14, 256  ;;  %p2375_p11 = scmp.lt.s32.totalorder %s21_s14, %s21_s14 }
  0x1a   :  { %p2371_p10 = scmp.ne.s32.totalorder %s21_s14, %s2370_s3  ;;  %p2376_p12 = scmp.lt.s32.totalorder %s2370_s3, %s2370_s3 }
  0x1c   :  { %p2377_p13 = por %p2376_p12, %p2375_p11 }
  0x1e   :  { %p2378_p0 = pnand %p2377_p13, %p2371_p10 }
  0x20   :  { %2381 = shalt.err (!%p2378_p0)
}
  0x21   :  { %26 = dma.hbm_to_vmem [thread:$0]  %s2962_s0, 256, %s21_s14, [#allocation3], %s2430_s29, %s2430_s29, %s2431_s30  }
  0x22   :  { %s2390_s5 = scalar_lea.vmem %s49_s16, 256  ;;  %p2395_p2 = scmp.lt.s32.totalorder %s49_s16, %s49_s16 }
  0x23   :  { %p2391_p1 = scmp.ne.s32.totalorder %s49_s16, %s2390_s5  ;;  %p2396_p3 = scmp.lt.s32.totalorder %s2390_s5, %s2390_s5 }
  0x25   :  { %p2397_p4 = por %p2396_p3, %p2395_p2 }
  0x27   :  { %p2398_p5 = pnand %p2397_p4, %p2391_p1 }
  0x29   :  { %2401 = shalt.err (!%p2398_p5)
}
  0x2a   :  { %54 = dma.hbm_to_vmem [thread:$0]  %s2966_s4, 256, %s49_s16, [#allocation5], %s2430_s29, %s2430_s29, %s2431_s30  }
  0x2b   :  { %s2434_s21 = smov [#allocation9]  }
  0x2c   :  { %s72_s22 = sshll.u32 %s2434_s21, 4  ;;  %s73_s22 = int_to_ptr.vmem [resolvable:$true] %s72_s22 }
  0x2d   :  { %s2410_s23 = scalar_lea.vmem %s73_s22, 256  ;;  %p2415_p7 = scmp.lt.s32.totalorder %s73_s22, %s73_s22 }
  0x2e   :  { %p2411_p6 = scmp.ne.s32.totalorder %s73_s22, %s2410_s23  ;;  %p2416_p8 = scmp.lt.s32.totalorder %s2410_s23, %s2410_s23 }
  0x30   :  { %p2417_p9 = por %p2416_p8, %p2415_p7 }
  0x32   :  { %p2418_p10 = pnand %p2417_p9, %p2411_p6 }
  0x34   :  { %2421 = shalt.err (!%p2418_p10)
}
  0x35   :  { %78 = dma.hbm_to_vmem [thread:$0]  %s2968_s6, 256, %s73_s22, [#allocation8], %s2430_s29, %s2430_s29, %s2431_s30  }
  0x36   :  { %2422 = dma.done.wait [#allocation3], 256  }
  0x37   :  { %2423 = vsyncadd [#allocation3], 4294967040 }
  0x38   :  { %2424 = dma.done.wait [#allocation5], 512  }
  0x39   :  { %2425 = vsyncadd [#allocation5], 4294966784 }
  0x3a   :  { %2426 = dma.done.wait [#allocation8], 512  }
  0x3b   :  { %2427 = vsyncadd [#allocation8], 4294966784  ;;  %v2435_v0 = vmov 0.0   ;;  %vm2436_vm0 = vmmov 0   ;;  %vm128_vm1 = vcmask 1042432   ;;  %v2515_v2 = vld [vmem:[#allocation2] sm:$0xff] }
  0x3c   :  { %2008 = vmatprep.subr.mxu0 %v2435_v0  ;;  %2027 = vmatprep.subr.mxu1 %v2435_v0  ;;  %v2513_v1 = vld [vmem:[#allocation2 + $0x8] sm:$0x7]  ;;  %v2524_v3 = vld [vmem:[%s2963_s1] sm:$0xff]  ;;  %vm112_vm2 = vcmask 89088   ;;  %v2565_v7 = vld [vmem:[%s2963_s1 + $0x10] sm:$0xff]  ;;  %v350_v41 = vrot.slane %v2515_v2, 5 }
  0x3d   :  { %2012 = vmatprep.mubr.msk.f32.mxu0 %vm2436_vm0, %v2435_v0  ;;  %2031 = vmatprep.mubr.msk.f32.mxu1 %vm2436_vm0, %v2435_v0  ;;  %v2529_v4 = vld [vmem:[%s2964_s2] sm:$0xff]  ;;  %v2546_v5 = vld [vmem:[%s2963_s1 + $0x8] sm:$0xff]  ;;  %v2570_v8 = vld [vmem:[%s2964_s2 + $0x10] sm:$0x3f]  ;;  %v351_v40 = vrot.slane %v2513_v1, 5  ;;  %vm359_vm3 = vcmask 1044480  }
  0x3e   :  { %2009 = vmatpush3.msk.msra.mxu0 %vm128_vm1, %v2513_v1  ;;  %2028 = vmatpush3.msk.msra.mxu1 %vm128_vm1, %v2513_v1  ;;  %v2551_v6 = vld [vmem:[%s2964_s2 + $0x8] sm:$0xff]  ;;  %v2581_v9 = vld [vmem:[%s2963_s1 + $0x18] sm:$0xff]  ;;  %v2585_v10 = vld [vmem:[#allocation4] sm:$0xff]  ;;  %vm449_vm4 = vcmask 1045504   ;;  %vm480_vm5 = vcmask 1041408   ;;  %vm494_vm6 = vcmask 124928  }
  0x3f   :  { %2010 = vmatprep.subr.mxu0 %v2435_v0  ;;  %2029 = vmatprep.subr.mxu1 %v2435_v0  ;;  %v2594_v11 = vld [vmem:[%s2963_s1 + $0x20] sm:$0x1]  ;;  %v108_v14 = vld [vmem:[#allocation7] sm:$0xff]  ;;  %v109_v16 = vld [vmem:[#allocation7 + $0x8] sm:$0x7]  ;;  %v352_v43 = vsel %vm128_vm1, %v350_v41, %v351_v40  ;;  %vm492_vm7 = vcmask 130048  }
  0x40   :  { %2011 = vmatpush3.msra.mxu0 %v2515_v2  ;;  %2030 = vmatpush3.msra.mxu1 %v2515_v2  ;;  %v2600_v19 = vrot.slane %v108_v14, 5  ;;  %v331_v22 = vrot.slane %v109_v16, 5  ;;  %v2617_v50 = vld [vmem:[#allocation4 + $0x8] sm:$0x7]  ;;  %v2624_v55 = vld [vmem:[#allocation6] sm:$0xff] }
  0x41   :  { %2013 = vmatmul.mubr.msk.f32.vlgmr.msra.gmra.mxu0 %vm112_vm2, %v2524_v3  ;;  %2032 = vmatmul.mubr.msk.f32.vlgmr.msra.gmra.mxu1 %vm112_vm2, %v2529_v4  ;;  %v2626_v56 = vld [vmem:[#allocation6 + $0x8] sm:$0x7]  ;;  %v110_v62 = vld [vmem:[#allocation9] sm:$0xff] }
  0x42   :  { %2015 = vmatprep.mubr.msk.f32.mxu0 %vm2436_vm0, %v2435_v0  ;;  %2034 = vmatprep.mubr.msk.f32.mxu1 %vm2436_vm0, %v2435_v0  ;;  %v2607_v29 = vsel %vm128_vm1, %v2600_v19, %v331_v22  ;;  %v111_v61 = vld [vmem:[#allocation9 + $0x8] sm:$0x7] }
  0x43   :  { %2066 = vmatprep.subr.mxu0 %v2435_v0  ;;  %v2630_v16 = vrot.slane %v111_v61, 2 }
  0x45   :  { %2016 = vmatmul.mubr.msk.f32.gmra.mxu0 %vm112_vm2, %v2546_v5  ;;  %2035 = vmatmul.mubr.msk.f32.gmra.mxu1 %vm112_vm2, %v2551_v6 }
  0x46   :  { %2018 = vmatprep.mubr.msk.f32.mxu0 %vm2436_vm0, %v2435_v0  ;;  %2037 = vmatprep.mubr.msk.f32.mxu1 %vm2436_vm0, %v2435_v0 }
  0x49   :  { %2019 = vmatmul.mubr.msk.f32.gmra.mxu0 %vm112_vm2, %v2565_v7  ;;  %2038 = vmatmul.mubr.msk.f32.gmra.mxu1 %vm112_vm2, %v2570_v8 }
  0x4a   :  { %2021 = vmatprep.mubr.msk.f32.mxu0 %vm2436_vm0, %v2435_v0  ;;  %2044 = vmatprep.mubr.msk.f32.mxu1 %vm112_vm2, %v2585_v10 }
  0x4d   :  { %2022 = vmatmul.mubr.msk.f32.gmra.mxu0 %vm112_vm2, %v2581_v9 }
  0x4e   :  { %2024 = vmatprep.mubr.msk.f32.mxu0 %vm2436_vm0, %v2435_v0 }
  0x51   :  { %2025 = vmatmul.mubr.msk.f32.gmra.mxu0 %vm112_vm2, %v2594_v11 }
  0x52   :  { %2070 = vmatprep.mubr.msk.f32.mxu0 %vm2436_vm0, %v2435_v0 }
 0x101   :  { %v198_v12 = vpop.f32.mrf.mxu0  ;;  %v297_v13 = vpop.f32.mrf.mxu1 }
 0x102   :  { %v311_v15 = vadd.f32 %v297_v13, %v198_v12 }
 0x103   :  { %v2014_v17 = vpop.f32.mrf.mxu0  ;;  %v2033_v18 = vpop.f32.mrf.mxu1 }
 0x104   :  { %v313_v57 = vadd.f32 %v311_v15, %v2624_v55  ;;  %v2632_v17 = vrot.slane %v110_v62, 2 }
 0x105   :  { %v203_v20 = vpop.f32.mrf.mxu0  ;;  %v302_v21 = vpop.f32.mrf.mxu1 }
 0x106   :  { %v312_v23 = vadd.f32 %v302_v21, %v203_v20  ;;  %v1845_v59 = vmul.f32 -1.442695, %v313_v57 }
 0x107   :  { %v2017_v24 = vpop.f32.mrf.mxu0  ;;  %v2036_v25 = vpop.f32.mrf.mxu1 }
 0x108   :  { %v335_v26 = vadd.f32 %v2600_v19, %v312_v23  ;;  %v314_v58 = vadd.f32 %v312_v23, %v2626_v56 }
 0x109   :  { %v2603_v27 = vpop.f32.mrf.mxu0  ;;  %v307_v28 = vpop.f32.mrf.mxu1 }
 0x10a   :  { %v1847_v30 = vmul.f32 -1.442695, %v335_v26  ;;  %v327_v31 = vadd.f32 %v307_v28, %v2603_v27  ;;  %v1846_v60 = vmul.f32 -1.442695, %v314_v58  ;;  %v2640_v26 = vsel %vm449_vm4, %v2632_v17, %v2630_v16 }
 0x10b   :  { %v2020_v32 = vpop.f32.mrf.mxu0  ;;  %v2039_v33 = vpop.f32.mrf.mxu1 }
 0x10c   :  { %v336_v34 = vadd.f32 %v2607_v29, %v327_v31  ;;  %2212 = vpow2.f32 %v1847_v30 }
 0x10d   :  { %v213_v51 = vpop.f32.mrf.mxu0 }
 0x10e   :  { %v1848_v35 = vmul.f32 -1.442695, %v336_v34 }
 0x10f   :  { %v2023_v52 = vpop.f32.mrf.mxu0 }
 0x110   :  { %2214 = vpow2.f32 %v1848_v35 }
 0x111   :  { %v218_v53 = vpop.f32.mrf.mxu0 }
 0x113   :  { %v2026_v54 = vpop.f32.mrf.mxu0 }
 0x119   :  { %v2213_v36 = vpop.eup %2212 }
 0x11a   :  { %v343_v37 = vadd.f32 1.0, %v2213_v36 }
 0x11c   :  { %2216 = vrcp.f32 %v343_v37 }
 0x11d   :  { %v2215_v38 = vpop.eup %2214 }
 0x11e   :  { %v344_v39 = vadd.f32 1.0, %v2215_v38 }
 0x120   :  { %2218 = vrcp.f32 %v344_v39 }
 0x121   :  { %2220 = vpow2.f32 %v1845_v59 }
 0x122   :  { %2222 = vpow2.f32 %v1846_v60 }
 0x129   :  { %v2217_v42 = vpop.eup %2216 }
 0x12a   :  { %v355_v44 = vmul.f32 %v2217_v42, %v350_v41 }
 0x12c   :  { %v360_v48 = vrot.slane %v355_v44, 3 }
 0x12d   :  { %v2219_v45 = vpop.eup %2218 }
 0x12e   :  { %v356_v46 = vmul.f32 %v2219_v45, %v352_v43  ;;  %v2221_v63 = vpop.eup %2220 }
 0x12f   :  { %v2223_v12 = vpop.eup %2222  ;;  %v321_v18 = vadd.f32 1.0, %v2221_v63 }
 0x130   :  { %v361_v47 = vrot.slane %v356_v46, 3  ;;  %v322_v15 = vadd.f32 1.0, %v2223_v12 }
 0x131   :  { %2224 = vrcp.f32 %v321_v18 }
 0x132   :  { %2040 = vmatprep.subr.msk.mxu1 %vm128_vm1, %v361_v47  ;;  %v362_v49 = vsel %vm359_vm3, %v360_v48, %v361_v47  ;;  %2226 = vrcp.f32 %v322_v15 }
 0x133   :  { %2041 = vmatpush3.msk.msra.mxu1 %vm128_vm1, %v361_v47 }
 0x134   :  { %2042 = vmatprep.subr.mxu1 %v362_v49 }
 0x135   :  { %2043 = vmatpush3.msra.mxu1 %v362_v49 }
 0x136   :  { %2045 = vmatmul.mubr.msk.f32.vlgmr.msra.gmra.mxu1 %vm112_vm2, %v2617_v50  ;;  %2047 = vmatprep.subr.mxu1 %v2435_v0 }
 0x137   :  { %2051 = vmatprep.mubr.msk.f32.mxu1 %vm2436_vm0, %v2435_v0 }
 0x13e   :  { %v2225_v32 = vpop.eup %2224 }
 0x13f   :  { %v2227_v33 = vpop.eup %2226  ;;  %v473_v38 = vsub.f32 1.0, %v2225_v32 }
 0x140   :  { %v474_v37 = vsub.f32 1.0, %v2227_v33 }
 0x141   :  { %v475_v45 = vmul.f32 %v473_v38, %v2515_v2 }
 0x142   :  { %v476_v43 = vmul.f32 %v474_v37, %v2513_v1 }
 0x1f6   :  { %v2046_v13 = vpop.f32.mrf.mxu1 }
 0x1f7   :  { %v451_v14 = vrot.slane %v2046_v13, 2 }
 0x1f8   :  { %v438_v20 = vpop.f32.mrf.mxu1 }
 0x1f9   :  { %v458_v21 = vadd.f32 %v451_v14, %v218_v53  ;;  %v450_v22 = vrot.slane %v438_v20, 2 }
 0x1fb   :  { %v469_v23 = vadd.f32 %v2630_v16, %v458_v21  ;;  %v452_v24 = vsel %vm449_vm4, %v450_v22, %v451_v14  ;;  %v456_v25 = vadd.f32 %v450_v22, %v2603_v27 }
 0x1fc   :  { %v457_v28 = vadd.f32 %v452_v24, %v213_v51 }
 0x1fd   :  { %v467_v30 = vadd.f32 %v2632_v17, %v456_v25  ;;  %2228 = vtanh.f32 %v469_v23 }
 0x1fe   :  { %v468_v31 = vadd.f32 %v2640_v26, %v457_v28 }
 0x1ff   :  { %2230 = vtanh.f32 %v467_v30 }
 0x200   :  { %2232 = vtanh.f32 %v468_v31 }
 0x20a   :  { %v2229_v34 = vpop.eup %2228 }
 0x20b   :  { %v484_v39 = vrot.slane %v2229_v34, 6 }
 0x20c   :  { %v2231_v35 = vpop.eup %2230 }
 0x20d   :  { %v2233_v27 = vpop.eup %2232  ;;  %v481_v36 = vrot.slane %v2231_v35, 6 }
 0x20e   :  { %v482_v40 = vrot.slane %v2233_v27, 6 }
 0x210   :  { %v483_v41 = vsel %vm480_vm5, %v481_v36, %v482_v40  ;;  %v485_v42 = vsel %vm480_vm5, %v482_v40, %v484_v39 }
 0x211   :  { %v489_v44 = vmul.f32 %v2227_v33, %v485_v42  ;;  %v488_v46 = vmul.f32 %v2225_v32, %v483_v41 }
 0x213   :  { %v2648_v47 = vadd.f32 %v489_v44, %v476_v43  ;;  %v2650_v48 = vadd.f32 %v488_v46, %v475_v45 }
 0x215   :  { %495 = vst.msk [vmem:[%s2969_s7 + $0x8] sm:$0x7] %vm494_vm6, %v2648_v47  ;;  %2048 = vmatpush3.msk.msra.mxu1 %vm128_vm1, %v2648_v47  ;;  %2067 = vmatpush3.msk.msra.mxu0 %vm128_vm1, %v2648_v47  ;;  %v701_v28 = vrot.slane %v2650_v48, 5  ;;  %v702_v30 = vrot.slane %v2648_v47, 5 }
 0x216   :  { %493 = vst.msk [vmem:[%s2969_s7] sm:$0xff] %vm492_vm7, %v2650_v48  ;;  %2049 = vmatprep.subr.mxu1 %v2435_v0  ;;  %2068 = vmatprep.subr.mxu0 %v2435_v0 }
 0x217   :  { %2050 = vmatpush3.msra.mxu1 %v2650_v48  ;;  %2069 = vmatpush3.msra.mxu0 %v2650_v48  ;;  %v703_v34 = vsel %vm128_vm1, %v701_v28, %v702_v30 }
 0x218   :  { %2052 = vmatmul.mubr.msk.f32.vlgmr.msra.gmra.mxu1 %vm112_vm2, %v2524_v3  ;;  %2071 = vmatmul.mubr.msk.f32.vlgmr.msra.gmra.mxu0 %vm112_vm2, %v2529_v4 }
 0x219   :  { %2054 = vmatprep.mubr.msk.f32.mxu1 %vm2436_vm0, %v2435_v0  ;;  %2073 = vmatprep.mubr.msk.f32.mxu0 %vm2436_vm0, %v2435_v0 }
 0x21a   :  { %2105 = vmatprep.subr.mxu1 %v2435_v0 }
 0x21c   :  { %2055 = vmatmul.mubr.msk.f32.gmra.mxu1 %vm112_vm2, %v2546_v5  ;;  %2074 = vmatmul.mubr.msk.f32.gmra.mxu0 %vm112_vm2, %v2551_v6 }
 0x21d   :  { %2057 = vmatprep.mubr.msk.f32.mxu1 %vm2436_vm0, %v2435_v0  ;;  %2076 = vmatprep.mubr.msk.f32.mxu0 %vm2436_vm0, %v2435_v0 }
 0x220   :  { %2058 = vmatmul.mubr.msk.f32.gmra.mxu1 %vm112_vm2, %v2565_v7  ;;  %2077 = vmatmul.mubr.msk.f32.gmra.mxu0 %vm112_vm2, %v2570_v8 }
 0x221   :  { %2060 = vmatprep.mubr.msk.f32.mxu1 %vm2436_vm0, %v2435_v0  ;;  %2083 = vmatprep.mubr.msk.f32.mxu0 %vm112_vm2, %v2585_v10 }
 0x224   :  { %2061 = vmatmul.mubr.msk.f32.gmra.mxu1 %vm112_vm2, %v2581_v9 }
 0x225   :  { %2063 = vmatprep.mubr.msk.f32.mxu1 %vm2436_vm0, %v2435_v0 }
 0x228   :  { %2064 = vmatmul.mubr.msk.f32.gmra.mxu1 %vm112_vm2, %v2594_v11 }
 0x229   :  { %2109 = vmatprep.mubr.msk.f32.mxu1 %vm2436_vm0, %v2435_v0 }
 0x2d8   :  { %v565_v1 = vpop.f32.mrf.mxu1  ;;  %v655_v2 = vpop.f32.mrf.mxu0 }
 0x2d9   :  { %v669_v49 = vadd.f32 %v655_v2, %v565_v1 }
 0x2da   :  { %v2053_v51 = vpop.f32.mrf.mxu1  ;;  %v2072_v52 = vpop.f32.mrf.mxu0 }
 0x2db   :  { %v671_v40 = vadd.f32 %v669_v49, %v2624_v55 }
 0x2dc   :  { %v570_v53 = vpop.f32.mrf.mxu1  ;;  %v660_v54 = vpop.f32.mrf.mxu0 }
 0x2dd   :  { %v670_v57 = vadd.f32 %v660_v54, %v570_v53  ;;  %v1862_v42 = vmul.f32 -1.442695, %v671_v40 }
 0x2de   :  { %v2056_v58 = vpop.f32.mrf.mxu1  ;;  %v2075_v59 = vpop.f32.mrf.mxu0 }
 0x2df   :  { %v686_v60 = vadd.f32 %v670_v57, %v2600_v19  ;;  %v672_v41 = vadd.f32 %v670_v57, %v2626_v56 }
 0x2e0   :  { %v575_v61 = vpop.f32.mrf.mxu1  ;;  %v665_v62 = vpop.f32.mrf.mxu0 }
 0x2e1   :  { %v1864_v63 = vmul.f32 -1.442695, %v686_v60  ;;  %v685_v12 = vadd.f32 %v665_v62, %v575_v61  ;;  %v1863_v43 = vmul.f32 -1.442695, %v672_v41 }
 0x2e2   :  { %v2059_v13 = vpop.f32.mrf.mxu1  ;;  %v2078_v14 = vpop.f32.mrf.mxu0 }
 0x2e3   :  { %v687_v18 = vadd.f32 %v685_v12, %v2607_v29  ;;  %2234 = vpow2.f32 %v1864_v63 }
 0x2e4   :  { %v580_v20 = vpop.f32.mrf.mxu1 }
 0x2e5   :  { %v1865_v15 = vmul.f32 -1.442695, %v687_v18 }
 0x2e6   :  { %v2062_v21 = vpop.f32.mrf.mxu1 }
 0x2e7   :  { %2236 = vpow2.f32 %v1865_v15 }
 0x2e8   :  { %v585_v38 = vpop.f32.mrf.mxu1 }
 0x2ea   :  { %v2065_v39 = vpop.f32.mrf.mxu1 }
 0x2f0   :  { %v2235_v22 = vpop.eup %2234 }
 0x2f1   :  { %v694_v23 = vadd.f32 1.0, %v2235_v22 }
 0x2f3   :  { %2238 = vrcp.f32 %v694_v23 }
 0x2f4   :  { %v2237_v24 = vpop.eup %2236 }
 0x2f5   :  { %v695_v25 = vadd.f32 1.0, %v2237_v24 }
 0x2f7   :  { %2240 = vrcp.f32 %v695_v25 }
 0x2f8   :  { %2242 = vpow2.f32 %v1862_v42 }
 0x2f9   :  { %2244 = vpow2.f32 %v1863_v43 }
 0x300   :  { %v2239_v31 = vpop.eup %2238 }
 0x301   :  { %v706_v32 = vmul.f32 %v2239_v31, %v701_v28 }
 0x303   :  { %v710_v36 = vrot.slane %v706_v32, 3 }
 0x304   :  { %v2241_v33 = vpop.eup %2240 }
 0x305   :  { %v707_v35 = vmul.f32 %v2241_v33, %v703_v34  ;;  %v2243_v44 = vpop.eup %2242 }
 0x306   :  { %v2245_v45 = vpop.eup %2244  ;;  %v679_v2 = vadd.f32 1.0, %v2243_v44 }
 0x307   :  { %v711_v27 = vrot.slane %v707_v35, 3  ;;  %v680_v52 = vadd.f32 1.0, %v2245_v45 }
 0x308   :  { %2246 = vrcp.f32 %v679_v2 }
 0x309   :  { %2079 = vmatprep.subr.msk.mxu0 %vm128_vm1, %v711_v27  ;;  %v712_v37 = vsel %vm359_vm3, %v710_v36, %v711_v27  ;;  %2248 = vrcp.f32 %v680_v52 }
 0x30a   :  { %2080 = vmatpush3.msk.msra.mxu0 %vm128_vm1, %v711_v27 }
 0x30b   :  { %2081 = vmatprep.subr.mxu0 %v712_v37 }
 0x30c   :  { %2082 = vmatpush3.msra.mxu0 %v712_v37 }
 0x30d   :  { %2084 = vmatmul.mubr.msk.f32.vlgmr.msra.gmra.mxu0 %vm112_vm2, %v2617_v50  ;;  %2086 = vmatprep.subr.mxu0 %v2435_v0 }
 0x30e   :  { %2090 = vmatprep.mubr.msk.f32.mxu0 %vm2436_vm0, %v2435_v0 }
 0x315   :  { %v2247_v63 = vpop.eup %2246 }
 0x316   :  { %v2249_v12 = vpop.eup %2248  ;;  %v808_v22 = vsub.f32 1.0, %v2247_v63 }
 0x317   :  { %v809_v21 = vsub.f32 1.0, %v2249_v12 }
 0x318   :  { %v810_v30 = vmul.f32 %v808_v22, %v2650_v48 }
 0x319   :  { %v811_v25 = vmul.f32 %v809_v21, %v2648_v47 }
 0x3cd   :  { %v2085_v46 = vpop.f32.mrf.mxu0 }
 0x3ce   :  { %v794_v1 = vrot.slane %v2085_v46, 2 }
 0x3cf   :  { %v782_v51 = vpop.f32.mrf.mxu0 }
 0x3d0   :  { %v801_v53 = vadd.f32 %v794_v1, %v585_v38  ;;  %v793_v54 = vrot.slane %v782_v51, 2 }
 0x3d2   :  { %v804_v58 = vadd.f32 %v801_v53, %v2630_v16  ;;  %v795_v59 = vsel %vm449_vm4, %v793_v54, %v794_v1  ;;  %v799_v49 = vadd.f32 %v793_v54, %v575_v61 }
 0x3d3   :  { %v800_v57 = vadd.f32 %v795_v59, %v580_v20 }
 0x3d4   :  { %v802_v60 = vadd.f32 %v799_v49, %v2632_v17  ;;  %2250 = vtanh.f32 %v804_v58 }
 0x3d5   :  { %v803_v62 = vadd.f32 %v800_v57, %v2640_v26 }
 0x3d6   :  { %2252 = vtanh.f32 %v802_v60 }
 0x3d7   :  { %2254 = vtanh.f32 %v803_v62 }
 0x3e1   :  { %v2251_v13 = vpop.eup %2250 }
 0x3e2   :  { %v818_v23 = vrot.slane %v2251_v13, 6 }
 0x3e3   :  { %v2253_v14 = vpop.eup %2252 }
 0x3e4   :  { %v2255_v18 = vpop.eup %2254  ;;  %v815_v15 = vrot.slane %v2253_v14, 6 }
 0x3e5   :  { %v816_v61 = vrot.slane %v2255_v18, 6 }
 0x3e7   :  { %v817_v20 = vsel %vm480_vm5, %v815_v15, %v816_v61  ;;  %v819_v24 = vsel %vm480_vm5, %v816_v61, %v818_v23 }
 0x3e8   :  { %v823_v28 = vmul.f32 %v2249_v12, %v819_v24  ;;  %v822_v31 = vmul.f32 %v2247_v63, %v817_v20 }
 0x3ea   :  { %v2726_v32 = vadd.f32 %v823_v28, %v811_v25  ;;  %v2728_v33 = vadd.f32 %v822_v31, %v810_v30 }
 0x3ec   :  { %1870 = vst.msk [vmem:[%s2969_s7 + $0x18] sm:$0x7] %vm494_vm6, %v2726_v32  ;;  %2087 = vmatpush3.msk.msra.mxu0 %vm128_vm1, %v2726_v32  ;;  %2106 = vmatpush3.msk.msra.mxu1 %vm128_vm1, %v2726_v32  ;;  %v1034_v57 = vrot.slane %v2728_v33, 5  ;;  %v1035_v60 = vrot.slane %v2726_v32, 5 }
 0x3ed   :  { %1869 = vst.msk [vmem:[%s2969_s7 + $0x10] sm:$0xff] %vm492_vm7, %v2728_v33  ;;  %2088 = vmatprep.subr.mxu0 %v2435_v0  ;;  %2107 = vmatprep.subr.mxu1 %v2435_v0 }
 0x3ee   :  { %2089 = vmatpush3.msra.mxu0 %v2728_v33  ;;  %2108 = vmatpush3.msra.mxu1 %v2728_v33  ;;  %v1036_v13 = vsel %vm128_vm1, %v1034_v57, %v1035_v60 }
 0x3ef   :  { %2091 = vmatmul.mubr.msk.f32.vlgmr.msra.gmra.mxu0 %vm112_vm2, %v2524_v3  ;;  %2110 = vmatmul.mubr.msk.f32.vlgmr.msra.gmra.mxu1 %vm112_vm2, %v2529_v4 }
 0x3f0   :  { %2093 = vmatprep.mubr.msk.f32.mxu0 %vm2436_vm0, %v2435_v0  ;;  %2112 = vmatprep.mubr.msk.f32.mxu1 %vm2436_vm0, %v2435_v0 }
 0x3f1   :  { %2144 = vmatprep.subr.mxu0 %v2435_v0 }
 0x3f3   :  { %2094 = vmatmul.mubr.msk.f32.gmra.mxu0 %vm112_vm2, %v2546_v5  ;;  %2113 = vmatmul.mubr.msk.f32.gmra.mxu1 %vm112_vm2, %v2551_v6 }
 0x3f4   :  { %2096 = vmatprep.mubr.msk.f32.mxu0 %vm2436_vm0, %v2435_v0  ;;  %2115 = vmatprep.mubr.msk.f32.mxu1 %vm2436_vm0, %v2435_v0 }
 0x3f7   :  { %2097 = vmatmul.mubr.msk.f32.gmra.mxu0 %vm112_vm2, %v2565_v7  ;;  %2116 = vmatmul.mubr.msk.f32.gmra.mxu1 %vm112_vm2, %v2570_v8 }
 0x3f8   :  { %2099 = vmatprep.mubr.msk.f32.mxu0 %vm2436_vm0, %v2435_v0  ;;  %2122 = vmatprep.mubr.msk.f32.mxu1 %vm112_vm2, %v2585_v10 }
 0x3fb   :  { %2100 = vmatmul.mubr.msk.f32.gmra.mxu0 %vm112_vm2, %v2581_v9 }
 0x3fc   :  { %2102 = vmatprep.mubr.msk.f32.mxu0 %vm2436_vm0, %v2435_v0 }
 0x3ff   :  { %2103 = vmatmul.mubr.msk.f32.gmra.mxu0 %vm112_vm2, %v2594_v11 }
 0x400   :  { %2148 = vmatprep.mubr.msk.f32.mxu0 %vm2436_vm0, %v2435_v0 }
 0x4af   :  { %v898_v47 = vpop.f32.mrf.mxu0  ;;  %v988_v48 = vpop.f32.mrf.mxu1 }
 0x4b0   :  { %v1002_v34 = vadd.f32 %v988_v48, %v898_v47 }
 0x4b1   :  { %v2092_v35 = vpop.f32.mrf.mxu0  ;;  %v2111_v27 = vpop.f32.mrf.mxu1 }
 0x4b2   :  { %v1004_v61 = vadd.f32 %v1002_v34, %v2624_v55 }
 0x4b3   :  { %v903_v36 = vpop.f32.mrf.mxu0  ;;  %v993_v37 = vpop.f32.mrf.mxu1 }
 0x4b4   :  { %v1003_v38 = vadd.f32 %v993_v37, %v903_v36  ;;  %v1881_v24 = vmul.f32 -1.442695, %v1004_v61 }
 0x4b5   :  { %v2095_v39 = vpop.f32.mrf.mxu0  ;;  %v2114_v40 = vpop.f32.mrf.mxu1 }
 0x4b6   :  { %v1019_v41 = vadd.f32 %v1003_v38, %v2600_v19  ;;  %v1005_v20 = vadd.f32 %v1003_v38, %v2626_v56 }
 0x4b7   :  { %v908_v42 = vpop.f32.mrf.mxu0  ;;  %v998_v43 = vpop.f32.mrf.mxu1 }
 0x4b8   :  { %v1883_v44 = vmul.f32 -1.442695, %v1019_v41  ;;  %v1018_v45 = vadd.f32 %v998_v43, %v908_v42  ;;  %v1882_v25 = vmul.f32 -1.442695, %v1005_v20 }
 0x4b9   :  { %v2098_v46 = vpop.f32.mrf.mxu0  ;;  %v2117_v1 = vpop.f32.mrf.mxu1 }
 0x4ba   :  { %v1020_v2 = vadd.f32 %v1018_v45, %v2607_v29  ;;  %2256 = vpow2.f32 %v1883_v44 }
 0x4bb   :  { %v913_v51 = vpop.f32.mrf.mxu0 }
 0x4bc   :  { %v1884_v52 = vmul.f32 -1.442695, %v1020_v2 }
 0x4bd   :  { %v2101_v53 = vpop.f32.mrf.mxu0 }
 0x4be   :  { %2258 = vpow2.f32 %v1884_v52 }
 0x4bf   :  { %v918_v22 = vpop.f32.mrf.mxu0 }
 0x4c1   :  { %v2104_v23 = vpop.f32.mrf.mxu0 }
 0x4c7   :  { %v2257_v54 = vpop.eup %2256 }
 0x4c8   :  { %v1027_v58 = vadd.f32 1.0, %v2257_v54 }
 0x4ca   :  { %2260 = vrcp.f32 %v1027_v58 }
 0x4cb   :  { %v2259_v59 = vpop.eup %2258 }
 0x4cc   :  { %v1028_v49 = vadd.f32 1.0, %v2259_v59 }
 0x4ce   :  { %2262 = vrcp.f32 %v1028_v49 }
 0x4cf   :  { %2264 = vpow2.f32 %v1881_v24 }
 0x4d0   :  { %2266 = vpow2.f32 %v1882_v25 }
 0x4d7   :  { %v2261_v62 = vpop.eup %2260 }
 0x4d8   :  { %v1039_v63 = vmul.f32 %v2261_v62, %v1034_v57 }
 0x4da   :  { %v1043_v15 = vrot.slane %v1039_v63, 3 }
 0x4db   :  { %v2263_v12 = vpop.eup %2262 }
 0x4dc   :  { %v1040_v14 = vmul.f32 %v2263_v12, %v1036_v13  ;;  %v2265_v28 = vpop.eup %2264 }
 0x4dd   :  { %v2267_v30 = vpop.eup %2266  ;;  %v1012_v48 = vadd.f32 1.0, %v2265_v28 }
 0x4de   :  { %v1044_v18 = vrot.slane %v1040_v14, 3  ;;  %v1013_v27 = vadd.f32 1.0, %v2267_v30 }
 0x4df   :  { %2268 = vrcp.f32 %v1012_v48 }
 0x4e0   :  { %2118 = vmatprep.subr.msk.mxu1 %vm128_vm1, %v1044_v18  ;;  %v1045_v21 = vsel %vm359_vm3, %v1043_v15, %v1044_v18  ;;  %2270 = vrcp.f32 %v1013_v27 }
 0x4e1   :  { %2119 = vmatpush3.msk.msra.mxu1 %vm128_vm1, %v1044_v18 }
 0x4e2   :  { %2120 = vmatprep.subr.mxu1 %v1045_v21 }
 0x4e3   :  { %2121 = vmatpush3.msra.mxu1 %v1045_v21 }
 0x4e4   :  { %2123 = vmatmul.mubr.msk.f32.vlgmr.msra.gmra.mxu1 %vm112_vm2, %v2617_v50  ;;  %2125 = vmatprep.subr.mxu1 %v2435_v0 }
 0x4e5   :  { %2129 = vmatprep.mubr.msk.f32.mxu1 %vm2436_vm0, %v2435_v0 }
 0x4ec   :  { %v2269_v44 = vpop.eup %2268 }
 0x4ed   :  { %v2271_v45 = vpop.eup %2270  ;;  %v1141_v54 = vsub.f32 1.0, %v2269_v44 }
 0x4ee   :  { %v1142_v53 = vsub.f32 1.0, %v2271_v45 }
 0x4ef   :  { %v1143_v60 = vmul.f32 %v1141_v54, %v2728_v33 }
 0x4f0   :  { %v1144_v49 = vmul.f32 %v1142_v53, %v2726_v32 }
 0x5a4   :  { %v2124_v31 = vpop.f32.mrf.mxu1 }
 0x5a5   :  { %v1127_v47 = vrot.slane %v2124_v31, 2 }
 0x5a6   :  { %v1115_v35 = vpop.f32.mrf.mxu1 }
 0x5a7   :  { %v1134_v36 = vadd.f32 %v1127_v47, %v918_v22  ;;  %v1126_v37 = vrot.slane %v1115_v35, 2 }
 0x5a9   :  { %v1137_v39 = vadd.f32 %v1134_v36, %v2630_v16  ;;  %v1128_v40 = vsel %vm449_vm4, %v1126_v37, %v1127_v47  ;;  %v1132_v34 = vadd.f32 %v1126_v37, %v908_v42 }
 0x5aa   :  { %v1133_v38 = vadd.f32 %v1128_v40, %v913_v51 }
 0x5ab   :  { %v1135_v41 = vadd.f32 %v1132_v34, %v2632_v17  ;;  %2272 = vtanh.f32 %v1137_v39 }
 0x5ac   :  { %v1136_v43 = vadd.f32 %v1133_v38, %v2640_v26 }
 0x5ad   :  { %2274 = vtanh.f32 %v1135_v41 }
 0x5ae   :  { %2276 = vtanh.f32 %v1136_v43 }
 0x5b8   :  { %v2273_v46 = vpop.eup %2272 }
 0x5b9   :  { %v1151_v58 = vrot.slane %v2273_v46, 6 }
 0x5ba   :  { %v2275_v1 = vpop.eup %2274 }
 0x5bb   :  { %v2277_v2 = vpop.eup %2276  ;;  %v1148_v52 = vrot.slane %v2275_v1, 6 }
 0x5bc   :  { %v1149_v42 = vrot.slane %v2277_v2, 6 }
 0x5be   :  { %v1150_v51 = vsel %vm480_vm5, %v1148_v52, %v1149_v42  ;;  %v1152_v59 = vsel %vm480_vm5, %v1149_v42, %v1151_v58 }
 0x5bf   :  { %v1156_v57 = vmul.f32 %v2271_v45, %v1152_v59  ;;  %v1155_v62 = vmul.f32 %v2269_v44, %v1150_v51 }
 0x5c1   :  { %v2804_v63 = vadd.f32 %v1156_v57, %v1144_v49  ;;  %v2806_v12 = vadd.f32 %v1155_v62, %v1143_v60 }
 0x5c3   :  { %1889 = vst.msk [vmem:[%s2969_s7 + $0x28] sm:$0x7] %vm494_vm6, %v2804_v63  ;;  %2126 = vmatpush3.msk.msra.mxu1 %vm128_vm1, %v2804_v63  ;;  %2145 = vmatpush3.msk.msra.mxu0 %vm128_vm1, %v2804_v63  ;;  %v1367_v38 = vrot.slane %v2806_v12, 5  ;;  %v1368_v41 = vrot.slane %v2804_v63, 5 }
 0x5c4   :  { %1888 = vst.msk [vmem:[%s2969_s7 + $0x20] sm:$0xff] %vm492_vm7, %v2806_v12  ;;  %2127 = vmatprep.subr.mxu1 %v2435_v0  ;;  %2146 = vmatprep.subr.mxu0 %v2435_v0 }
 0x5c5   :  { %2128 = vmatpush3.msra.mxu1 %v2806_v12  ;;  %2147 = vmatpush3.msra.mxu0 %v2806_v12  ;;  %v1369_v46 = vsel %vm128_vm1, %v1367_v38, %v1368_v41 }
 0x5c6   :  { %2130 = vmatmul.mubr.msk.f32.vlgmr.msra.gmra.mxu1 %vm112_vm2, %v2524_v3  ;;  %2149 = vmatmul.mubr.msk.f32.vlgmr.msra.gmra.mxu0 %vm112_vm2, %v2529_v4 }
 0x5c7   :  { %2132 = vmatprep.mubr.msk.f32.mxu1 %vm2436_vm0, %v2435_v0  ;;  %2151 = vmatprep.mubr.msk.f32.mxu0 %vm2436_vm0, %v2435_v0 }
 0x5c8   :  { %2183 = vmatprep.subr.mxu1 %v2435_v0 }
 0x5ca   :  { %2133 = vmatmul.mubr.msk.f32.gmra.mxu1 %vm112_vm2, %v2546_v5  ;;  %2152 = vmatmul.mubr.msk.f32.gmra.mxu0 %vm112_vm2, %v2551_v6 }
 0x5cb   :  { %2135 = vmatprep.mubr.msk.f32.mxu1 %vm2436_vm0, %v2435_v0  ;;  %2154 = vmatprep.mubr.msk.f32.mxu0 %vm2436_vm0, %v2435_v0 }
 0x5ce   :  { %2136 = vmatmul.mubr.msk.f32.gmra.mxu1 %vm112_vm2, %v2565_v7  ;;  %2155 = vmatmul.mubr.msk.f32.gmra.mxu0 %vm112_vm2, %v2570_v8 }
 0x5cf   :  { %2138 = vmatprep.mubr.msk.f32.mxu1 %vm2436_vm0, %v2435_v0  ;;  %2161 = vmatprep.mubr.msk.f32.mxu0 %vm112_vm2, %v2585_v10 }
 0x5d2   :  { %2139 = vmatmul.mubr.msk.f32.gmra.mxu1 %vm112_vm2, %v2581_v9 }
 0x5d3   :  { %2141 = vmatprep.mubr.msk.f32.mxu1 %vm2436_vm0, %v2435_v0 }
 0x5d6   :  { %2142 = vmatmul.mubr.msk.f32.gmra.mxu1 %vm112_vm2, %v2594_v11 }
 0x5d7   :  { %2187 = vmatprep.mubr.msk.f32.mxu1 %vm2436_vm0, %v2435_v0 }
 0x686   :  { %v1231_v32 = vpop.f32.mrf.mxu1  ;;  %v1321_v33 = vpop.f32.mrf.mxu0 }
 0x687   :  { %v1335_v13 = vadd.f32 %v1321_v33, %v1231_v32 }
 0x688   :  { %v2131_v14 = vpop.f32.mrf.mxu1  ;;  %v2150_v18 = vpop.f32.mrf.mxu0 }
 0x689   :  { %v1337_v42 = vadd.f32 %v1335_v13, %v2624_v55 }
 0x68a   :  { %v1236_v15 = vpop.f32.mrf.mxu1  ;;  %v1326_v21 = vpop.f32.mrf.mxu0 }
 0x68b   :  { %v1336_v22 = vadd.f32 %v1326_v21, %v1236_v15  ;;  %v1900_v59 = vmul.f32 -1.442695, %v1337_v42 }
 0x68c   :  { %v2134_v23 = vpop.f32.mrf.mxu1  ;;  %v2153_v61 = vpop.f32.mrf.mxu0 }
 0x68d   :  { %v1352_v20 = vadd.f32 %v1336_v22, %v2600_v19  ;;  %v1338_v51 = vadd.f32 %v1336_v22, %v2626_v56 }
 0x68e   :  { %v1241_v24 = vpop.f32.mrf.mxu1  ;;  %v1331_v25 = vpop.f32.mrf.mxu0 }
 0x68f   :  { %v1902_v28 = vmul.f32 -1.442695, %v1352_v20  ;;  %v1351_v30 = vadd.f32 %v1331_v25, %v1241_v24  ;;  %v1901_v49 = vmul.f32 -1.442695, %v1338_v51 }
 0x690   :  { %v2137_v31 = vpop.f32.mrf.mxu1  ;;  %v2156_v47 = vpop.f32.mrf.mxu0 }
 0x691   :  { %v1353_v48 = vadd.f32 %v1351_v30, %v2607_v29  ;;  %2278 = vpow2.f32 %v1902_v28 }
 0x692   :  { %v1246_v35 = vpop.f32.mrf.mxu1 }
 0x693   :  { %v1903_v27 = vmul.f32 -1.442695, %v1353_v48 }
 0x694   :  { %v2140_v36 = vpop.f32.mrf.mxu1 }
 0x695   :  { %2280 = vpow2.f32 %v1903_v27 }
 0x696   :  { %v1251_v54 = vpop.f32.mrf.mxu1 }
 0x698   :  { %v2143_v58 = vpop.f32.mrf.mxu1 }
 0x69e   :  { %v2279_v37 = vpop.eup %2278 }
 0x69f   :  { %v1360_v39 = vadd.f32 1.0, %v2279_v37 }
 0x6a1   :  { %2282 = vrcp.f32 %v1360_v39 }
 0x6a2   :  { %v2281_v40 = vpop.eup %2280 }
 0x6a3   :  { %v1361_v34 = vadd.f32 1.0, %v2281_v40 }
 0x6a5   :  { %2284 = vrcp.f32 %v1361_v34 }
 0x6a6   :  { %2286 = vpow2.f32 %v1900_v59 }
 0x6a7   :  { %2288 = vpow2.f32 %v1901_v49 }
 0x6ae   :  { %v2283_v43 = vpop.eup %2282 }
 0x6af   :  { %v1372_v44 = vmul.f32 %v2283_v43, %v1367_v38 }
 0x6b1   :  { %v1376_v52 = vrot.slane %v1372_v44, 3 }
 0x6b2   :  { %v2285_v45 = vpop.eup %2284 }
 0x6b3   :  { %v1373_v1 = vmul.f32 %v2285_v45, %v1369_v46  ;;  %v2287_v57 = vpop.eup %2286 }
 0x6b4   :  { %v2289_v60 = vpop.eup %2288  ;;  %v1345_v33 = vadd.f32 1.0, %v2287_v57 }
 0x6b5   :  { %v1377_v2 = vrot.slane %v1373_v1, 3  ;;  %v1346_v18 = vadd.f32 1.0, %v2289_v60 }
 0x6b6   :  { %2290 = vrcp.f32 %v1345_v33 }
 0x6b7   :  { %2157 = vmatprep.subr.msk.mxu0 %vm128_vm1, %v1377_v2  ;;  %v1378_v53 = vsel %vm359_vm3, %v1376_v52, %v1377_v2  ;;  %2292 = vrcp.f32 %v1346_v18 }
 0x6b8   :  { %2158 = vmatpush3.msk.msra.mxu0 %vm128_vm1, %v1377_v2 }
 0x6b9   :  { %2159 = vmatprep.subr.mxu0 %v1378_v53 }
 0x6ba   :  { %2160 = vmatpush3.msra.mxu0 %v1378_v53 }
 0x6bb   :  { %2162 = vmatmul.mubr.msk.f32.vlgmr.msra.gmra.mxu0 %vm112_vm2, %v2617_v50  ;;  %2164 = vmatprep.subr.mxu0 %v2435_v0 }
 0x6bc   :  { %2168 = vmatprep.mubr.msk.f32.mxu0 %vm2436_vm0, %v2435_v0 }
 0x6c3   :  { %v2291_v28 = vpop.eup %2290 }
 0x6c4   :  { %v2293_v30 = vpop.eup %2292  ;;  %v1474_v37 = vsub.f32 1.0, %v2291_v28 }
 0x6c5   :  { %v1475_v36 = vsub.f32 1.0, %v2293_v30 }
 0x6c6   :  { %v1476_v41 = vmul.f32 %v1474_v37, %v2806_v12 }
 0x6c7   :  { %v1477_v34 = vmul.f32 %v1475_v36, %v2804_v63 }
 0x77b   :  { %v2163_v62 = vpop.f32.mrf.mxu0 }
 0x77c   :  { %v1460_v32 = vrot.slane %v2163_v62, 2 }
 0x77d   :  { %v1448_v14 = vpop.f32.mrf.mxu0 }
 0x77e   :  { %v1467_v15 = vadd.f32 %v1460_v32, %v1251_v54  ;;  %v1459_v21 = vrot.slane %v1448_v14, 2 }
 0x780   :  { %v1470_v23 = vadd.f32 %v1467_v15, %v2630_v16  ;;  %v1461_v61 = vsel %vm449_vm4, %v1459_v21, %v1460_v32  ;;  %v1465_v13 = vadd.f32 %v1459_v21, %v1241_v24 }
 0x781   :  { %v1466_v22 = vadd.f32 %v1461_v61, %v1246_v35 }
 0x782   :  { %v1468_v20 = vadd.f32 %v1465_v13, %v2632_v17  ;;  %2294 = vtanh.f32 %v1470_v23 }
 0x783   :  { %v1469_v25 = vadd.f32 %v1466_v22, %v2640_v26 }
 0x784   :  { %2296 = vtanh.f32 %v1468_v20 }
 0x785   :  { %2298 = vtanh.f32 %v1469_v25 }
 0x78f   :  { %v2295_v31 = vpop.eup %2294 }
 0x790   :  { %v1484_v39 = vrot.slane %v2295_v31, 6 }
 0x791   :  { %v2297_v47 = vpop.eup %2296 }
 0x792   :  { %v2299_v48 = vpop.eup %2298  ;;  %v1481_v27 = vrot.slane %v2297_v47, 6 }
 0x793   :  { %v1482_v24 = vrot.slane %v2299_v48, 6 }
 0x795   :  { %v1483_v35 = vsel %vm480_vm5, %v1481_v27, %v1482_v24  ;;  %v1485_v40 = vsel %vm480_vm5, %v1482_v24, %v1484_v39 }
 0x796   :  { %v1489_v38 = vmul.f32 %v2293_v30, %v1485_v40  ;;  %v1488_v43 = vmul.f32 %v2291_v28, %v1483_v35 }
 0x798   :  { %v2882_v44 = vadd.f32 %v1489_v38, %v1477_v34  ;;  %v2884_v45 = vadd.f32 %v1488_v43, %v1476_v41 }
 0x79a   :  { %1908 = vst.msk [vmem:[%s2969_s7 + $0x38] sm:$0x7] %vm494_vm6, %v2882_v44  ;;  %2165 = vmatpush3.msk.msra.mxu0 %vm128_vm1, %v2882_v44  ;;  %2184 = vmatpush3.msk.msra.mxu1 %vm128_vm1, %v2882_v44  ;;  %v1700_v57 = vrot.slane %v2884_v45, 5 }
 0x79b   :  { %1907 = vst.msk [vmem:[%s2969_s7 + $0x30] sm:$0xff] %vm492_vm7, %v2884_v45  ;;  %2166 = vmatprep.subr.mxu0 %v2435_v0  ;;  %2185 = vmatprep.subr.mxu1 %v2435_v0 }
 0x79c   :  { %2167 = vmatpush3.msra.mxu0 %v2884_v45  ;;  %2186 = vmatpush3.msra.mxu1 %v2884_v45 }
 0x79d   :  { %2169 = vmatmul.mubr.msk.f32.vlgmr.msra.gmra.mxu0 %vm112_vm2, %v2524_v3  ;;  %2188 = vmatmul.mubr.msk.f32.vlgmr.msra.gmra.mxu1 %vm112_vm2, %v2529_v4 }
 0x79e   :  { %2171 = vmatprep.mubr.msk.f32.mxu0 %vm2436_vm0, %v2435_v0  ;;  %2190 = vmatprep.mubr.msk.f32.mxu1 %vm2436_vm0, %v2435_v0 }
 0x7a1   :  { %2172 = vmatmul.mubr.msk.f32.gmra.mxu0 %vm112_vm2, %v2546_v5  ;;  %2191 = vmatmul.mubr.msk.f32.gmra.mxu1 %vm112_vm2, %v2551_v6 }
 0x7a2   :  { %2174 = vmatprep.mubr.msk.f32.mxu0 %vm2436_vm0, %v2435_v0  ;;  %2193 = vmatprep.mubr.msk.f32.mxu1 %vm2436_vm0, %v2435_v0 }
 0x7a5   :  { %2175 = vmatmul.mubr.msk.f32.gmra.mxu0 %vm112_vm2, %v2565_v7  ;;  %2194 = vmatmul.mubr.msk.f32.gmra.mxu1 %vm112_vm2, %v2570_v8 }
 0x7a6   :  { %2200 = vmatprep.mubr.msk.f32.mxu1 %vm112_vm2, %v2585_v10  ;;  %2177 = vmatprep.mubr.msk.f32.mxu0 %vm2436_vm0, %v2435_v0 }
 0x7a9   :  { %2178 = vmatmul.mubr.msk.f32.gmra.mxu0 %vm112_vm2, %v2581_v9 }
 0x7aa   :  { %2180 = vmatprep.mubr.msk.f32.mxu0 %vm2436_vm0, %v2435_v0 }
 0x7ad   :  { %2181 = vmatmul.mubr.msk.f32.gmra.mxu0 %vm112_vm2, %v2594_v11 }
 0x85d   :  { %v1564_v3 = vpop.f32.mrf.mxu0  ;;  %v1654_v4 = vpop.f32.mrf.mxu1 }
 0x85e   :  { %v1668_v5 = vadd.f32 %v1654_v4, %v1564_v3 }
 0x85f   :  { %v2170_v6 = vpop.f32.mrf.mxu0  ;;  %v2189_v7 = vpop.f32.mrf.mxu1 }
 0x860   :  { %v1670_v22 = vadd.f32 %v1668_v5, %v2624_v55 }
 0x861   :  { %v1569_v8 = vpop.f32.mrf.mxu0  ;;  %v1659_v63 = vpop.f32.mrf.mxu1 }
 0x862   :  { %v1669_v10 = vadd.f32 %v1659_v63, %v1569_v8  ;;  %v1919_v25 = vmul.f32 -1.442695, %v1670_v22 }
 0x863   :  { %v2173_v12 = vpop.f32.mrf.mxu0  ;;  %v2192_v46 = vpop.f32.mrf.mxu1 }
 0x864   :  { %v1685_v1 = vadd.f32 %v1669_v10, %v2600_v19  ;;  %v1701_v19 = vrot.slane %v2882_v44, 5  ;;  %v1671_v20 = vadd.f32 %v1669_v10, %v2626_v56 }
 0x865   :  { %v1574_v2 = vpop.f32.mrf.mxu0  ;;  %v1664_v9 = vpop.f32.mrf.mxu1 }
 0x866   :  { %v1921_v52 = vmul.f32 -1.442695, %v1685_v1  ;;  %v1684_v53 = vadd.f32 %v1664_v9, %v1574_v2  ;;  %v1702_v33 = vsel %vm128_vm1, %v1700_v57, %v1701_v19  ;;  %v1920_v28 = vmul.f32 -1.442695, %v1671_v20 }
 0x867   :  { %v2176_v0 = vpop.f32.mrf.mxu0  ;;  %v2195_v54 = vpop.f32.mrf.mxu1 }
 0x868   :  { %v1686_v11 = vadd.f32 %v1684_v53, %v2607_v29  ;;  %2300 = vpow2.f32 %v1921_v52 }
 0x869   :  { %v1579_v21 = vpop.f32.mrf.mxu0 }
 0x86a   :  { %v1922_v58 = vmul.f32 -1.442695, %v1686_v11 }
 0x86b   :  { %v2179_v23 = vpop.f32.mrf.mxu0 }
 0x86c   :  { %2302 = vpow2.f32 %v1922_v58 }
 0x86d   :  { %v1584_v61 = vpop.f32.mrf.mxu0 }
 0x86f   :  { %v2182_v13 = vpop.f32.mrf.mxu0 }
 0x875   :  { %v2301_v42 = vpop.eup %2300 }
 0x876   :  { %v1693_v51 = vadd.f32 1.0, %v2301_v42 }
 0x878   :  { %2304 = vrcp.f32 %v1693_v51 }
 0x879   :  { %v2303_v59 = vpop.eup %2302 }
 0x87a   :  { %v1694_v49 = vadd.f32 1.0, %v2303_v59 }
 0x87c   :  { %2306 = vrcp.f32 %v1694_v49 }
 0x87d   :  { %2308 = vpow2.f32 %v1919_v25 }
 0x87e   :  { %2310 = vpow2.f32 %v1920_v28 }
 0x885   :  { %v2305_v60 = vpop.eup %2304 }
 0x886   :  { %v1705_v62 = vmul.f32 %v2305_v60, %v1700_v57 }
 0x888   :  { %v1709_v18 = vrot.slane %v1705_v62, 3 }
 0x889   :  { %v2307_v32 = vpop.eup %2306 }
 0x88a   :  { %v1706_v14 = vmul.f32 %v2307_v32, %v1702_v33  ;;  %v2309_v30 = vpop.eup %2308 }
 0x88b   :  { %v2311_v31 = vpop.eup %2310  ;;  %v1678_v27 = vadd.f32 1.0, %v2309_v30 }
 0x88c   :  { %v1710_v29 = vrot.slane %v1706_v14, 3  ;;  %v1679_v37 = vadd.f32 1.0, %v2311_v31 }
 0x88d   :  { %2312 = vrcp.f32 %v1678_v27 }
 0x88e   :  { %2196 = vmatprep.subr.msk.mxu1 %vm128_vm1, %v1710_v29  ;;  %v1711_v15 = vsel %vm359_vm3, %v1709_v18, %v1710_v29  ;;  %2314 = vrcp.f32 %v1679_v37 }
 0x88f   :  { %2197 = vmatpush3.msk.msra.mxu1 %vm128_vm1, %v1710_v29 }
 0x890   :  { %2198 = vmatprep.subr.mxu1 %v1711_v15 }
 0x891   :  { %2199 = vmatpush3.msra.mxu1 %v1711_v15 }
 0x892   :  { %2201 = vmatmul.mubr.msk.f32.vlgmr.msra.gmra.mxu1 %vm112_vm2, %v2617_v50 }
 0x89a   :  { %v2313_v38 = vpop.eup %2312 }
 0x89b   :  { %v2315_v41 = vpop.eup %2314  ;;  %v1807_v5 = vsub.f32 1.0, %v2313_v38 }
 0x89c   :  { %v1808_v7 = vsub.f32 1.0, %v2315_v41 }
 0x89e   :  { %v1810_v12 = vmul.f32 %v1808_v7, %v2882_v44 }
 0x952   :  { %v2202_v47 = vpop.f32.mrf.mxu1 }
 0x953   :  { %v1793_v48 = vrot.slane %v2202_v47, 2 }
 0x954   :  { %v1781_v36 = vpop.f32.mrf.mxu1 }
 0x955   :  { %v1792_v50 = vrot.slane %v1781_v36, 2  ;;  %v1800_v39 = vadd.f32 %v1793_v48, %v1584_v61 }
 0x957   :  { %v1794_v24 = vsel %vm449_vm4, %v1792_v50, %v1793_v48  ;;  %v1798_v35 = vadd.f32 %v1792_v50, %v1574_v2  ;;  %v1803_v55 = vadd.f32 %v1800_v39, %v2630_v16 }
 0x958   :  { %v1799_v56 = vadd.f32 %v1794_v24, %v1579_v21 }
 0x959   :  { %v1801_v40 = vadd.f32 %v1798_v35, %v2632_v17  ;;  %2316 = vtanh.f32 %v1803_v55  ;;  %v1809_v17 = vmul.f32 %v1807_v5, %v2884_v45 }
 0x95a   :  { %v1802_v34 = vadd.f32 %v1799_v56, %v2640_v26 }
 0x95b   :  { %2318 = vtanh.f32 %v1801_v40 }
 0x95c   :  { %2320 = vtanh.f32 %v1802_v34 }
 0x966   :  { %v2317_v43 = vpop.eup %2316 }
 0x967   :  { %v1817_v16 = vrot.slane %v2317_v43, 6 }
 0x968   :  { %v2319_v3 = vpop.eup %2318 }
 0x969   :  { %v2321_v4 = vpop.eup %2320  ;;  %v1814_v6 = vrot.slane %v2319_v3, 6 }
 0x96a   :  { %v1815_v8 = vrot.slane %v2321_v4, 6 }
 0x96c   :  { %v1816_v63 = vsel %vm480_vm5, %v1814_v6, %v1815_v8  ;;  %v1818_v10 = vsel %vm480_vm5, %v1815_v8, %v1817_v16 }
 0x96d   :  { %v1821_v26 = vmul.f32 %v2313_v38, %v1816_v63  ;;  %v1822_v46 = vmul.f32 %v2315_v41, %v1818_v10 }
 0x96f   :  { %v1823_v1 = vadd.f32 %v1821_v26, %v1809_v17  ;;  %v1824_v2 = vadd.f32 %v1822_v46, %v1810_v12 }
 0x971   :  { %1926 = vst.msk [vmem:[%s2969_s7 + $0x40] sm:$0xff] %vm492_vm7, %v1823_v1 }
 0x972   :  { %1927 = vst.msk [vmem:[%s2969_s7 + $0x48] sm:$0x7] %vm494_vm6, %v1824_v2 }
 0x973   :  { %1832 = vsyncpa [#allocation3], 1 }
 0x974   :  { %1833 = vsyncpa [#allocation5], 1 }
 0x975   :  { %1834 = vsyncpa [#allocation8], 1 }

// kernel: state_former_forward.4
= control target key start
LH: loop header
LB: loop body
LE: loop exit
PB: predicated region body
PF: predicated region fallthrough
CT: control target
= control target key end

     0   :  { %12 = vsyncpa [#allocation3], 0  ;;  %s2650_s0 = inlined_call_operand.hbm [shape: f32[16,32], index: 0, kind: input, shape index: {}]   ;;  %s2651_s1 = inlined_call_operand.vmem [shape: f32[48,16], index: 1, kind: input, shape index: {}]   ;;  %s2652_s2 = inlined_call_operand.vmem [shape: f32[32,16], index: 2, kind: input, shape index: {}]   ;;  %s2653_s3 = inlined_call_operand.hbm [shape: f32[16,16], index: 3, kind: input, shape index: {}]   ;;  %s2654_s4 = inlined_call_operand.hbm [shape: f32[16,32], index: 4, kind: input, shape index: {}]   ;;  %s2655_s5 = inlined_call_operand.hbm [shape: f32[16,32], index: 5, kind: input, shape index: {}]   ;;  %s2656_s6 = inlined_call_operand.hbm [shape: f32[16,32], index: 6, kind: input, shape index: {}]   ;;  %s2657_s7 = inlined_call_operand.vmem [shape: f32[5,16,32], index: 7, kind: output, shape index: {}]  }
   0x1   :  { %13 = vsyncpa [#allocation5], 0 }
   0x2   :  { %14 = vsyncpa [#allocation8], 0  ;;  %s2229_s24 = smov [#allocation4]   ;;  %s2230_s26 = smov [#allocation7]  }
   0x3   :  { %s36_s25 = sshll.u32 %s2229_s24, 4  ;;  %s60_s27 = sshll.u32 %s2230_s26, 4  ;;  %s37_s25 = int_to_ptr.vmem [resolvable:$true] %s36_s25  ;;  %s61_s27 = int_to_ptr.vmem [resolvable:$true] %s60_s27 }
   0x4   :  { %s2131_s28 = scalar_lea.vmem %s37_s25, 256  ;;  %p2136_p1 = scmp.lt.s32.totalorder %s37_s25, %s37_s25 }
   0x5   :  { %p2132_p0 = scmp.ne.s32.totalorder %s37_s25, %s2131_s28  ;;  %p2137_p2 = scmp.lt.s32.totalorder %s2131_s28, %s2131_s28 }
   0x7   :  { %p2138_p3 = por %p2137_p2, %p2136_p1 }
   0x9   :  { %p2139_p4 = pnand %p2138_p3, %p2132_p0 }
   0xb   :  { %2142 = shalt.err (!%p2139_p4)
}
   0xc   :  { %s2231_s29 = smov 128   ;;  %s2232_s30 = smov 8  }
   0xd   :  { %42 = dma.hbm_to_vmem [thread:$0]  %s2653_s3, 256, %s37_s25, [#allocation5], %s2231_s29, %s2231_s29, %s2232_s30  }
   0xe   :  { %s2151_s10 = scalar_lea.vmem %s61_s27, 256  ;;  %p2156_p6 = scmp.lt.s32.totalorder %s61_s27, %s61_s27 }
   0xf   :  { %p2152_p5 = scmp.ne.s32.totalorder %s61_s27, %s2151_s10  ;;  %p2157_p7 = scmp.lt.s32.totalorder %s2151_s10, %s2151_s10 }
  0x11   :  { %p2158_p8 = por %p2157_p7, %p2156_p6 }
  0x13   :  { %p2159_p9 = pnand %p2158_p8, %p2152_p5 }
  0x15   :  { %2162 = shalt.err (!%p2159_p9)
}
  0x16   :  { %66 = dma.hbm_to_vmem [thread:$0]  %s2655_s5, 256, %s61_s27, [#allocation8], %s2231_s29, %s2231_s29, %s2232_s30  }
  0x17   :  { %s2233_s13 = smov [#allocation2]   ;;  %s2234_s15 = smov [#allocation6]  }
  0x18   :  { %s20_s14 = sshll.u32 %s2233_s13, 4  ;;  %s48_s16 = sshll.u32 %s2234_s15, 4  ;;  %s21_s14 = int_to_ptr.vmem [resolvable:$true] %s20_s14  ;;  %s49_s16 = int_to_ptr.vmem [resolvable:$true] %s48_s16 }
  0x19   :  { %s2171_s3 = scalar_lea.vmem %s21_s14, 256  ;;  %p2176_p11 = scmp.lt.s32.totalorder %s21_s14, %s21_s14 }
  0x1a   :  { %p2172_p10 = scmp.ne.s32.totalorder %s21_s14, %s2171_s3  ;;  %p2177_p12 = scmp.lt.s32.totalorder %s2171_s3, %s2171_s3 }
  0x1c   :  { %p2178_p13 = por %p2177_p12, %p2176_p11 }
  0x1e   :  { %p2179_p0 = pnand %p2178_p13, %p2172_p10 }
  0x20   :  { %2182 = shalt.err (!%p2179_p0)
}
  0x21   :  { %26 = dma.hbm_to_vmem [thread:$0]  %s2650_s0, 256, %s21_s14, [#allocation3], %s2231_s29, %s2231_s29, %s2232_s30  }
  0x22   :  { %s2191_s5 = scalar_lea.vmem %s49_s16, 256  ;;  %p2196_p2 = scmp.lt.s32.totalorder %s49_s16, %s49_s16 }
  0x23   :  { %p2192_p1 = scmp.ne.s32.totalorder %s49_s16, %s2191_s5  ;;  %p2197_p3 = scmp.lt.s32.totalorder %s2191_s5, %s2191_s5 }
  0x25   :  { %p2198_p4 = por %p2197_p3, %p2196_p2 }
  0x27   :  { %p2199_p5 = pnand %p2198_p4, %p2192_p1 }
  0x29   :  { %2202 = shalt.err (!%p2199_p5)
}
  0x2a   :  { %54 = dma.hbm_to_vmem [thread:$0]  %s2654_s4, 256, %s49_s16, [#allocation5], %s2231_s29, %s2231_s29, %s2232_s30  }
  0x2b   :  { %s2235_s21 = smov [#allocation9]  }
  0x2c   :  { %s72_s22 = sshll.u32 %s2235_s21, 4  ;;  %s73_s22 = int_to_ptr.vmem [resolvable:$true] %s72_s22 }
  0x2d   :  { %s2211_s23 = scalar_lea.vmem %s73_s22, 256  ;;  %p2216_p7 = scmp.lt.s32.totalorder %s73_s22, %s73_s22 }
  0x2e   :  { %p2212_p6 = scmp.ne.s32.totalorder %s73_s22, %s2211_s23  ;;  %p2217_p8 = scmp.lt.s32.totalorder %s2211_s23, %s2211_s23 }
  0x30   :  { %p2218_p9 = por %p2217_p8, %p2216_p7 }
  0x32   :  { %p2219_p10 = pnand %p2218_p9, %p2212_p6 }
  0x34   :  { %2222 = shalt.err (!%p2219_p10)
}
  0x35   :  { %78 = dma.hbm_to_vmem [thread:$0]  %s2656_s6, 256, %s73_s22, [#allocation8], %s2231_s29, %s2231_s29, %s2232_s30  }
  0x36   :  { %2223 = dma.done.wait [#allocation3], 256  }
  0x37   :  { %2224 = vsyncadd [#allocation3], 4294967040 }
  0x38   :  { %2225 = dma.done.wait [#allocation5], 512  }
  0x39   :  { %2226 = vsyncadd [#allocation5], 4294966784 }
  0x3a   :  { %2227 = dma.done.wait [#allocation8], 512  }
  0x3b   :  { %2228 = vsyncadd [#allocation8], 4294966784  ;;  %v2306_v0 = vld [vmem:[#allocation2 + $0x8] sm:$0xff]  ;;  %v2308_v1 = vld [vmem:[#allocation2] sm:$0xff]  ;;  %vm114_vm0 = vcmask 130048   ;;  %vm454_vm1 = vcmask 261120  }
  0x3c   :  { %1866 = vmatprep.subr.mxu0 %v2306_v0  ;;  %1879 = vmatprep.subr.mxu1 %v2306_v0  ;;  %v2315_v2 = vld [vmem:[%s2651_s1] sm:$0xff]  ;;  %v2329_v4 = vld [vmem:[%s2651_s1 + $0x8] sm:$0xff]  ;;  %v2342_v6 = vld [vmem:[%s2651_s1 + $0x10] sm:$0xff] }
  0x3d   :  { %1867 = vmatpush3.msra.mxu0 %v2306_v0  ;;  %1880 = vmatpush3.msra.mxu1 %v2306_v0  ;;  %v2322_v3 = vld [vmem:[%s2652_s2] sm:$0xff]  ;;  %v2334_v5 = vld [vmem:[%s2652_s2 + $0x8] sm:$0xff]  ;;  %v2347_v7 = vld [vmem:[%s2652_s2 + $0x10] sm:$0xff] }
  0x3e   :  { %1868 = vmatprep.subr.mxu0 %v2308_v1  ;;  %1881 = vmatprep.subr.mxu1 %v2308_v1  ;;  %v2363_v8 = vld [vmem:[%s2651_s1 + $0x18] sm:$0xff]  ;;  %v2377_v10 = vld [vmem:[%s2651_s1 + $0x20] sm:$0xff]  ;;  %v2384_v11 = vld [vmem:[%s2651_s1 + $0x28] sm:$0xff] }
  0x3f   :  { %1869 = vmatpush3.msra.mxu0 %v2308_v1  ;;  %1870 = vmatprep.mubr.msk.f32.mxu0 %vm114_vm0, %v2315_v2  ;;  %v2368_v9 = vld [vmem:[%s2652_s2 + $0x18] sm:$0xff]  ;;  %v2388_v12 = vld [vmem:[#allocation4] sm:$0xff]  ;;  %v2408_v40 = vld [vmem:[#allocation6 + $0x8] sm:$0xff] }
  0x40   :  { %1882 = vmatpush3.msra.mxu1 %v2308_v1  ;;  %1883 = vmatprep.mubr.msk.f32.mxu1 %vm114_vm0, %v2322_v3  ;;  %v2394_v20 = vld [vmem:[#allocation7 + $0x8] sm:$0xff]  ;;  %v2396_v24 = vld [vmem:[#allocation7] sm:$0xff]  ;;  %v2410_v41 = vld [vmem:[#allocation6] sm:$0xff] }
  0x41   :  { %1871 = vmatmul.mubr.msk.f32.vlgmr.msra.gmra.mxu0 %vm114_vm0, %v2329_v4  ;;  %1884 = vmatmul.mubr.msk.f32.vlgmr.msra.gmra.mxu1 %vm114_vm0, %v2334_v5  ;;  %v2402_v39 = vld [vmem:[#allocation4 + $0x8] sm:$0xff]  ;;  %v2414_v51 = vld [vmem:[#allocation9 + $0x8] sm:$0xff]  ;;  %v2416_v55 = vld [vmem:[#allocation9] sm:$0xff] }
  0x42   :  { %1873 = vmatprep.mubr.msk.f32.mxu0 %vm114_vm0, %v2342_v6  ;;  %1886 = vmatprep.mubr.msk.f32.mxu1 %vm114_vm0, %v2347_v7 }
  0x45   :  { %1874 = vmatmul.mubr.msk.f32.gmra.mxu0 %vm114_vm0, %v2363_v8  ;;  %1887 = vmatmul.mubr.msk.f32.gmra.mxu1 %vm114_vm0, %v2368_v9 }
  0x46   :  { %1876 = vmatprep.mubr.msk.f32.mxu0 %vm114_vm0, %v2377_v10  ;;  %1893 = vmatprep.mubr.msk.f32.mxu1 %vm114_vm0, %v2388_v12 }
  0x49   :  { %1877 = vmatmul.mubr.msk.f32.gmra.mxu0 %vm114_vm0, %v2384_v11 }
  0x4a   :  { %1900 = vmatprep.mubr.msk.f32.mxu0 %vm114_vm0, %v2315_v2 }
 0x101   :  { %v1872_v13 = vpop.f32.mrf.mxu0  ;;  %v1885_v14 = vpop.f32.mrf.mxu1 }
 0x102   :  { %v326_v15 = vadd.f32 %v1885_v14, %v1872_v13 }
 0x103   :  { %v199_v16 = vpop.f32.mrf.mxu0  ;;  %v306_v17 = vpop.f32.mrf.mxu1 }
 0x104   :  { %v325_v18 = vadd.f32 %v306_v17, %v199_v16  ;;  %v328_v42 = vadd.f32 %v326_v15, %v2408_v40 }
 0x105   :  { %v1875_v19 = vpop.f32.mrf.mxu0  ;;  %v1888_v21 = vpop.f32.mrf.mxu1 }
 0x106   :  { %v342_v22 = vadd.f32 %v1888_v21, %v1875_v19  ;;  %v327_v43 = vadd.f32 %v325_v18, %v2410_v41  ;;  %v1699_v44 = vmul.f32 -1.442695, %v328_v42 }
 0x107   :  { %v209_v23 = vpop.f32.mrf.mxu0  ;;  %v316_v25 = vpop.f32.mrf.mxu1 }
 0x108   :  { %v344_v26 = vadd.f32 %v342_v22, %v2394_v20  ;;  %v341_v27 = vadd.f32 %v316_v25, %v209_v23  ;;  %v1698_v45 = vmul.f32 -1.442695, %v327_v43 }
 0x109   :  { %v1878_v50 = vpop.f32.mrf.mxu0 }
 0x10a   :  { %v1701_v28 = vmul.f32 -1.442695, %v344_v26  ;;  %v343_v29 = vadd.f32 %v341_v27, %v2396_v24 }
 0x10b   :  { %v219_v54 = vpop.f32.mrf.mxu0 }
 0x10c   :  { %2023 = vpow2.f32 %v1701_v28  ;;  %v1700_v30 = vmul.f32 -1.442695, %v343_v29 }
 0x10e   :  { %2025 = vpow2.f32 %v1700_v30 }
 0x119   :  { %v2024_v31 = vpop.eup %2023 }
 0x11a   :  { %v352_v32 = vadd.f32 1.0, %v2024_v31 }
 0x11b   :  { %v2026_v33 = vpop.eup %2025 }
 0x11c   :  { %2027 = vrcp.f32 %v352_v32  ;;  %v351_v34 = vadd.f32 1.0, %v2026_v33 }
 0x11e   :  { %2029 = vrcp.f32 %v351_v34 }
 0x11f   :  { %2031 = vpow2.f32 %v1699_v44 }
 0x120   :  { %2033 = vpow2.f32 %v1698_v45 }
 0x129   :  { %v2028_v35 = vpop.eup %2027 }
 0x12a   :  { %v358_v36 = vmul.f32 %v2028_v35, %v2306_v0 }
 0x12b   :  { %v2030_v37 = vpop.eup %2029 }
 0x12c   :  { %1889 = vmatprep.subr.mxu1 %v358_v36  ;;  %v357_v38 = vmul.f32 %v2030_v37, %v2308_v1  ;;  %v2032_v46 = vpop.eup %2031 }
 0x12d   :  { %1890 = vmatpush3.msra.mxu1 %v358_v36  ;;  %v2034_v47 = vpop.eup %2033  ;;  %v336_v48 = vadd.f32 1.0, %v2032_v46 }
 0x12e   :  { %1891 = vmatprep.subr.mxu1 %v357_v38  ;;  %v335_v49 = vadd.f32 1.0, %v2034_v47 }
 0x12f   :  { %1892 = vmatpush3.msra.mxu1 %v357_v38  ;;  %2035 = vrcp.f32 %v336_v48 }
 0x130   :  { %1894 = vmatmul.mubr.msk.f32.vlgmr.msra.gmra.mxu1 %vm114_vm0, %v2402_v39  ;;  %2037 = vrcp.f32 %v335_v49 }
 0x131   :  { %1913 = vmatprep.mubr.msk.f32.mxu1 %vm114_vm0, %v2322_v3 }
 0x13c   :  { %v2036_v60 = vpop.eup %2035 }
 0x13d   :  { %v2038_v61 = vpop.eup %2037  ;;  %v447_v62 = vsub.f32 1.0, %v2036_v60 }
 0x13e   :  { %v446_v63 = vsub.f32 1.0, %v2038_v61 }
 0x13f   :  { %v449_v14 = vmul.f32 %v447_v62, %v2306_v0 }
 0x140   :  { %v448_v18 = vmul.f32 %v446_v63, %v2308_v1 }
 0x1f0   :  { %v1895_v52 = vpop.f32.mrf.mxu1 }
 0x1f1   :  { %v441_v53 = vadd.f32 %v1895_v52, %v1878_v50 }
 0x1f2   :  { %v431_v56 = vpop.f32.mrf.mxu1 }
 0x1f3   :  { %v443_v57 = vadd.f32 %v441_v53, %v2414_v51  ;;  %v440_v58 = vadd.f32 %v431_v56, %v219_v54 }
 0x1f5   :  { %2039 = vtanh.f32 %v443_v57  ;;  %v442_v59 = vadd.f32 %v440_v58, %v2416_v55 }
 0x1f7   :  { %2041 = vtanh.f32 %v442_v59 }
 0x202   :  { %v2040_v13 = vpop.eup %2039 }
 0x203   :  { %v451_v15 = vmul.f32 %v2040_v13, %v2036_v60 }
 0x204   :  { %v2042_v16 = vpop.eup %2041 }
 0x205   :  { %v2421_v17 = vadd.f32 %v451_v15, %v449_v14  ;;  %v450_v19 = vmul.f32 %v2042_v16, %v2038_v61 }
 0x207   :  { %456 = vst.msk [vmem:[%s2657_s7 + $0x8] sm:$0xff] %vm454_vm1, %v2421_v17  ;;  %v2429_v21 = vadd.f32 %v450_v19, %v448_v18  ;;  %1896 = vmatprep.subr.mxu0 %v2421_v17  ;;  %1909 = vmatprep.subr.mxu1 %v2421_v17 }
 0x208   :  { %1897 = vmatpush3.msra.mxu0 %v2421_v17  ;;  %1910 = vmatpush3.msra.mxu1 %v2421_v17 }
 0x209   :  { %455 = vst.msk [vmem:[%s2657_s7] sm:$0xff] %vm454_vm1, %v2429_v21  ;;  %1898 = vmatprep.subr.mxu0 %v2429_v21  ;;  %1911 = vmatprep.subr.mxu1 %v2429_v21 }
 0x20a   :  { %1899 = vmatpush3.msra.mxu0 %v2429_v21  ;;  %1912 = vmatpush3.msra.mxu1 %v2429_v21 }
 0x20b   :  { %1901 = vmatmul.mubr.msk.f32.vlgmr.msra.gmra.mxu0 %vm114_vm0, %v2329_v4  ;;  %1914 = vmatmul.mubr.msk.f32.vlgmr.msra.gmra.mxu1 %vm114_vm0, %v2334_v5 }
 0x20c   :  { %1903 = vmatprep.mubr.msk.f32.mxu0 %vm114_vm0, %v2342_v6  ;;  %1916 = vmatprep.mubr.msk.f32.mxu1 %vm114_vm0, %v2347_v7 }
 0x20f   :  { %1904 = vmatmul.mubr.msk.f32.gmra.mxu0 %vm114_vm0, %v2363_v8  ;;  %1917 = vmatmul.mubr.msk.f32.gmra.mxu1 %vm114_vm0, %v2368_v9 }
 0x210   :  { %1906 = vmatprep.mubr.msk.f32.mxu0 %vm114_vm0, %v2377_v10  ;;  %1923 = vmatprep.mubr.msk.f32.mxu1 %vm114_vm0, %v2388_v12 }
 0x213   :  { %1907 = vmatmul.mubr.msk.f32.gmra.mxu0 %vm114_vm0, %v2384_v11 }
 0x214   :  { %1930 = vmatprep.mubr.msk.f32.mxu0 %vm114_vm0, %v2315_v2 }
 0x2cb   :  { %v1902_v0 = vpop.f32.mrf.mxu0  ;;  %v1915_v1 = vpop.f32.mrf.mxu1 }
 0x2cc   :  { %v638_v22 = vadd.f32 %v1915_v1, %v1902_v0 }
 0x2cd   :  { %v523_v23 = vpop.f32.mrf.mxu0  ;;  %v618_v25 = vpop.f32.mrf.mxu1 }
 0x2ce   :  { %v637_v26 = vadd.f32 %v618_v25, %v523_v23  ;;  %v640_v48 = vadd.f32 %v638_v22, %v2408_v40 }
 0x2cf   :  { %v1905_v27 = vpop.f32.mrf.mxu0  ;;  %v1918_v28 = vpop.f32.mrf.mxu1 }
 0x2d0   :  { %v654_v29 = vadd.f32 %v1918_v28, %v1905_v27  ;;  %v639_v49 = vadd.f32 %v637_v26, %v2410_v41  ;;  %v1715_v50 = vmul.f32 -1.442695, %v640_v48 }
 0x2d1   :  { %v533_v30 = vpop.f32.mrf.mxu0  ;;  %v628_v31 = vpop.f32.mrf.mxu1 }
 0x2d2   :  { %v656_v32 = vadd.f32 %v654_v29, %v2394_v20  ;;  %v653_v33 = vadd.f32 %v628_v31, %v533_v30  ;;  %v1714_v52 = vmul.f32 -1.442695, %v639_v49 }
 0x2d3   :  { %v1908_v58 = vpop.f32.mrf.mxu0 }
 0x2d4   :  { %v1717_v34 = vmul.f32 -1.442695, %v656_v32  ;;  %v655_v35 = vadd.f32 %v653_v33, %v2396_v24 }
 0x2d5   :  { %v543_v61 = vpop.f32.mrf.mxu0 }
 0x2d6   :  { %2043 = vpow2.f32 %v1717_v34  ;;  %v1716_v36 = vmul.f32 -1.442695, %v655_v35 }
 0x2d8   :  { %2045 = vpow2.f32 %v1716_v36 }
 0x2e3   :  { %v2044_v37 = vpop.eup %2043 }
 0x2e4   :  { %v664_v38 = vadd.f32 1.0, %v2044_v37 }
 0x2e5   :  { %v2046_v42 = vpop.eup %2045 }
 0x2e6   :  { %2047 = vrcp.f32 %v664_v38  ;;  %v663_v43 = vadd.f32 1.0, %v2046_v42 }
 0x2e8   :  { %2049 = vrcp.f32 %v663_v43 }
 0x2e9   :  { %2051 = vpow2.f32 %v1715_v50 }
 0x2ea   :  { %2053 = vpow2.f32 %v1714_v52 }
 0x2f3   :  { %v2048_v44 = vpop.eup %2047 }
 0x2f4   :  { %v670_v45 = vmul.f32 %v2048_v44, %v2421_v17 }
 0x2f5   :  { %v2050_v46 = vpop.eup %2049 }
 0x2f6   :  { %1919 = vmatprep.subr.mxu1 %v670_v45  ;;  %v669_v47 = vmul.f32 %v2050_v46, %v2429_v21  ;;  %v2052_v53 = vpop.eup %2051 }
 0x2f7   :  { %1920 = vmatpush3.msra.mxu1 %v670_v45  ;;  %v2054_v54 = vpop.eup %2053  ;;  %v648_v56 = vadd.f32 1.0, %v2052_v53 }
 0x2f8   :  { %1921 = vmatprep.subr.mxu1 %v669_v47  ;;  %v647_v57 = vadd.f32 1.0, %v2054_v54 }
 0x2f9   :  { %1922 = vmatpush3.msra.mxu1 %v669_v47  ;;  %2055 = vrcp.f32 %v648_v56 }
 0x2fa   :  { %1924 = vmatmul.mubr.msk.f32.vlgmr.msra.gmra.mxu1 %vm114_vm0, %v2402_v39  ;;  %2057 = vrcp.f32 %v647_v57 }
 0x2fb   :  { %1943 = vmatprep.mubr.msk.f32.mxu1 %vm114_vm0, %v2322_v3 }
 0x306   :  { %v2056_v15 = vpop.eup %2055 }
 0x307   :  { %v2058_v16 = vpop.eup %2057  ;;  %v753_v18 = vsub.f32 1.0, %v2056_v15 }
 0x308   :  { %v752_v19 = vsub.f32 1.0, %v2058_v16 }
 0x309   :  { %v755_v1 = vmul.f32 %v753_v18, %v2421_v17 }
 0x30a   :  { %v754_v26 = vmul.f32 %v752_v19, %v2429_v21 }
 0x3ba   :  { %v1925_v59 = vpop.f32.mrf.mxu1 }
 0x3bb   :  { %v747_v60 = vadd.f32 %v1925_v59, %v1908_v58 }
 0x3bc   :  { %v737_v62 = vpop.f32.mrf.mxu1 }
 0x3bd   :  { %v749_v63 = vadd.f32 %v747_v60, %v2414_v51  ;;  %v746_v13 = vadd.f32 %v737_v62, %v543_v61 }
 0x3bf   :  { %2059 = vtanh.f32 %v749_v63  ;;  %v748_v14 = vadd.f32 %v746_v13, %v2416_v55 }
 0x3c1   :  { %2061 = vtanh.f32 %v748_v14 }
 0x3cc   :  { %v2060_v0 = vpop.eup %2059 }
 0x3cd   :  { %v757_v22 = vmul.f32 %v2060_v0, %v2056_v15 }
 0x3ce   :  { %v2062_v23 = vpop.eup %2061 }
 0x3cf   :  { %v2477_v25 = vadd.f32 %v757_v22, %v755_v1  ;;  %v756_v27 = vmul.f32 %v2062_v23, %v2058_v16 }
 0x3d1   :  { %1721 = vst.msk [vmem:[%s2657_s7 + $0x18] sm:$0xff] %vm454_vm1, %v2477_v25  ;;  %v2485_v28 = vadd.f32 %v756_v27, %v754_v26  ;;  %1926 = vmatprep.subr.mxu0 %v2477_v25  ;;  %1939 = vmatprep.subr.mxu1 %v2477_v25 }
 0x3d2   :  { %1927 = vmatpush3.msra.mxu0 %v2477_v25  ;;  %1940 = vmatpush3.msra.mxu1 %v2477_v25 }
 0x3d3   :  { %1720 = vst.msk [vmem:[%s2657_s7 + $0x10] sm:$0xff] %vm454_vm1, %v2485_v28  ;;  %1928 = vmatprep.subr.mxu0 %v2485_v28  ;;  %1941 = vmatprep.subr.mxu1 %v2485_v28 }
 0x3d4   :  { %1929 = vmatpush3.msra.mxu0 %v2485_v28  ;;  %1942 = vmatpush3.msra.mxu1 %v2485_v28 }
 0x3d5   :  { %1931 = vmatmul.mubr.msk.f32.vlgmr.msra.gmra.mxu0 %vm114_vm0, %v2329_v4  ;;  %1944 = vmatmul.mubr.msk.f32.vlgmr.msra.gmra.mxu1 %vm114_vm0, %v2334_v5 }
 0x3d6   :  { %1933 = vmatprep.mubr.msk.f32.mxu0 %vm114_vm0, %v2342_v6  ;;  %1946 = vmatprep.mubr.msk.f32.mxu1 %vm114_vm0, %v2347_v7 }
 0x3d9   :  { %1934 = vmatmul.mubr.msk.f32.gmra.mxu0 %vm114_vm0, %v2363_v8  ;;  %1947 = vmatmul.mubr.msk.f32.gmra.mxu1 %vm114_vm0, %v2368_v9 }
 0x3da   :  { %1936 = vmatprep.mubr.msk.f32.mxu0 %vm114_vm0, %v2377_v10  ;;  %1953 = vmatprep.mubr.msk.f32.mxu1 %vm114_vm0, %v2388_v12 }
 0x3dd   :  { %1937 = vmatmul.mubr.msk.f32.gmra.mxu0 %vm114_vm0, %v2384_v11 }
 0x3de   :  { %1960 = vmatprep.mubr.msk.f32.mxu0 %vm114_vm0, %v2315_v2 }
 0x495   :  { %v1932_v17 = vpop.f32.mrf.mxu0  ;;  %v1945_v21 = vpop.f32.mrf.mxu1 }
 0x496   :  { %v944_v29 = vadd.f32 %v1945_v21, %v1932_v17 }
 0x497   :  { %v829_v30 = vpop.f32.mrf.mxu0  ;;  %v924_v31 = vpop.f32.mrf.mxu1 }
 0x498   :  { %v943_v32 = vadd.f32 %v924_v31, %v829_v30  ;;  %v946_v56 = vadd.f32 %v944_v29, %v2408_v40 }
 0x499   :  { %v1935_v33 = vpop.f32.mrf.mxu0  ;;  %v1948_v34 = vpop.f32.mrf.mxu1 }
 0x49a   :  { %v960_v35 = vadd.f32 %v1948_v34, %v1935_v33  ;;  %v945_v57 = vadd.f32 %v943_v32, %v2410_v41  ;;  %v1733_v58 = vmul.f32 -1.442695, %v946_v56 }
 0x49b   :  { %v839_v36 = vpop.f32.mrf.mxu0  ;;  %v934_v37 = vpop.f32.mrf.mxu1 }
 0x49c   :  { %v962_v38 = vadd.f32 %v960_v35, %v2394_v20  ;;  %v959_v42 = vadd.f32 %v934_v37, %v839_v36  ;;  %v1732_v59 = vmul.f32 -1.442695, %v945_v57 }
 0x49d   :  { %v1938_v13 = vpop.f32.mrf.mxu0 }
 0x49e   :  { %v1735_v43 = vmul.f32 -1.442695, %v962_v38  ;;  %v961_v44 = vadd.f32 %v959_v42, %v2396_v24 }
 0x49f   :  { %v849_v16 = vpop.f32.mrf.mxu0 }
 0x4a0   :  { %2063 = vpow2.f32 %v1735_v43  ;;  %v1734_v45 = vmul.f32 -1.442695, %v961_v44 }
 0x4a2   :  { %2065 = vpow2.f32 %v1734_v45 }
 0x4ad   :  { %v2064_v46 = vpop.eup %2063 }
 0x4ae   :  { %v970_v47 = vadd.f32 1.0, %v2064_v46 }
 0x4af   :  { %v2066_v48 = vpop.eup %2065 }
 0x4b0   :  { %2067 = vrcp.f32 %v970_v47  ;;  %v969_v49 = vadd.f32 1.0, %v2066_v48 }
 0x4b2   :  { %2069 = vrcp.f32 %v969_v49 }
 0x4b3   :  { %2071 = vpow2.f32 %v1733_v58 }
 0x4b4   :  { %2073 = vpow2.f32 %v1732_v59 }
 0x4bd   :  { %v2068_v50 = vpop.eup %2067 }
 0x4be   :  { %v976_v52 = vmul.f32 %v2068_v50, %v2477_v25 }
 0x4bf   :  { %v2070_v53 = vpop.eup %2069 }
 0x4c0   :  { %1949 = vmatprep.subr.mxu1 %v976_v52  ;;  %v975_v54 = vmul.f32 %v2070_v53, %v2485_v28  ;;  %v2072_v60 = vpop.eup %2071 }
 0x4c1   :  { %1950 = vmatpush3.msra.mxu1 %v976_v52  ;;  %v2074_v61 = vpop.eup %2073  ;;  %v954_v62 = vadd.f32 1.0, %v2072_v60 }
 0x4c2   :  { %1951 = vmatprep.subr.mxu1 %v975_v54  ;;  %v953_v63 = vadd.f32 1.0, %v2074_v61 }
 0x4c3   :  { %1952 = vmatpush3.msra.mxu1 %v975_v54  ;;  %2075 = vrcp.f32 %v954_v62 }
 0x4c4   :  { %1954 = vmatmul.mubr.msk.f32.vlgmr.msra.gmra.mxu1 %vm114_vm0, %v2402_v39  ;;  %2077 = vrcp.f32 %v953_v63 }
 0x4c5   :  { %1973 = vmatprep.mubr.msk.f32.mxu1 %vm114_vm0, %v2322_v3 }
 0x4d0   :  { %v2076_v22 = vpop.eup %2075 }
 0x4d1   :  { %v2078_v23 = vpop.eup %2077  ;;  %v1059_v26 = vsub.f32 1.0, %v2076_v22 }
 0x4d2   :  { %v1058_v27 = vsub.f32 1.0, %v2078_v23 }
 0x4d3   :  { %v1061_v21 = vmul.f32 %v1059_v26, %v2477_v25 }
 0x4d4   :  { %v1060_v32 = vmul.f32 %v1058_v27, %v2485_v28 }
 0x584   :  { %v1955_v14 = vpop.f32.mrf.mxu1 }
 0x585   :  { %v1053_v15 = vadd.f32 %v1955_v14, %v1938_v13 }
 0x586   :  { %v1043_v18 = vpop.f32.mrf.mxu1 }
 0x587   :  { %v1055_v19 = vadd.f32 %v1053_v15, %v2414_v51  ;;  %v1052_v0 = vadd.f32 %v1043_v18, %v849_v16 }
 0x589   :  { %2079 = vtanh.f32 %v1055_v19  ;;  %v1054_v1 = vadd.f32 %v1052_v0, %v2416_v55 }
 0x58b   :  { %2081 = vtanh.f32 %v1054_v1 }
 0x596   :  { %v2080_v17 = vpop.eup %2079 }
 0x597   :  { %v1063_v29 = vmul.f32 %v2080_v17, %v2076_v22 }
 0x598   :  { %v2082_v30 = vpop.eup %2081 }
 0x599   :  { %v2533_v31 = vadd.f32 %v1063_v29, %v1061_v21  ;;  %v1062_v33 = vmul.f32 %v2082_v30, %v2078_v23 }
 0x59b   :  { %1739 = vst.msk [vmem:[%s2657_s7 + $0x28] sm:$0xff] %vm454_vm1, %v2533_v31  ;;  %v2541_v34 = vadd.f32 %v1062_v33, %v1060_v32  ;;  %1956 = vmatprep.subr.mxu0 %v2533_v31  ;;  %1969 = vmatprep.subr.mxu1 %v2533_v31 }
 0x59c   :  { %1957 = vmatpush3.msra.mxu0 %v2533_v31  ;;  %1970 = vmatpush3.msra.mxu1 %v2533_v31 }
 0x59d   :  { %1738 = vst.msk [vmem:[%s2657_s7 + $0x20] sm:$0xff] %vm454_vm1, %v2541_v34  ;;  %1958 = vmatprep.subr.mxu0 %v2541_v34  ;;  %1971 = vmatprep.subr.mxu1 %v2541_v34 }
 0x59e   :  { %1959 = vmatpush3.msra.mxu0 %v2541_v34  ;;  %1972 = vmatpush3.msra.mxu1 %v2541_v34 }
 0x59f   :  { %1961 = vmatmul.mubr.msk.f32.vlgmr.msra.gmra.mxu0 %vm114_vm0, %v2329_v4  ;;  %1974 = vmatmul.mubr.msk.f32.vlgmr.msra.gmra.mxu1 %vm114_vm0, %v2334_v5 }
 0x5a0   :  { %1963 = vmatprep.mubr.msk.f32.mxu0 %vm114_vm0, %v2342_v6  ;;  %1976 = vmatprep.mubr.msk.f32.mxu1 %vm114_vm0, %v2347_v7 }
 0x5a3   :  { %1964 = vmatmul.mubr.msk.f32.gmra.mxu0 %vm114_vm0, %v2363_v8  ;;  %1977 = vmatmul.mubr.msk.f32.gmra.mxu1 %vm114_vm0, %v2368_v9 }
 0x5a4   :  { %1966 = vmatprep.mubr.msk.f32.mxu0 %vm114_vm0, %v2377_v10  ;;  %1983 = vmatprep.mubr.msk.f32.mxu1 %vm114_vm0, %v2388_v12 }
 0x5a7   :  { %1967 = vmatmul.mubr.msk.f32.gmra.mxu0 %vm114_vm0, %v2384_v11 }
 0x5a8   :  { %1990 = vmatprep.mubr.msk.f32.mxu0 %vm114_vm0, %v2315_v2 }
 0x65f   :  { %v1962_v25 = vpop.f32.mrf.mxu0  ;;  %v1975_v28 = vpop.f32.mrf.mxu1 }
 0x660   :  { %v1250_v35 = vadd.f32 %v1975_v28, %v1962_v25 }
 0x661   :  { %v1135_v36 = vpop.f32.mrf.mxu0  ;;  %v1230_v37 = vpop.f32.mrf.mxu1 }
 0x662   :  { %v1249_v38 = vadd.f32 %v1230_v37, %v1135_v36  ;;  %v1252_v61 = vadd.f32 %v1250_v35, %v2408_v40 }
 0x663   :  { %v1965_v42 = vpop.f32.mrf.mxu0  ;;  %v1978_v43 = vpop.f32.mrf.mxu1 }
 0x664   :  { %v1266_v44 = vadd.f32 %v1978_v43, %v1965_v42  ;;  %v1251_v62 = vadd.f32 %v1249_v38, %v2410_v41  ;;  %v1751_v63 = vmul.f32 -1.442695, %v1252_v61 }
 0x665   :  { %v1145_v45 = vpop.f32.mrf.mxu0  ;;  %v1240_v46 = vpop.f32.mrf.mxu1 }
 0x666   :  { %v1268_v47 = vadd.f32 %v1266_v44, %v2394_v20  ;;  %v1265_v48 = vadd.f32 %v1240_v46, %v1145_v45  ;;  %v1750_v13 = vmul.f32 -1.442695, %v1251_v62 }
 0x667   :  { %v1968_v19 = vpop.f32.mrf.mxu0 }
 0x668   :  { %v1753_v49 = vmul.f32 -1.442695, %v1268_v47  ;;  %v1267_v50 = vadd.f32 %v1265_v48, %v2396_v24 }
 0x669   :  { %v1155_v22 = vpop.f32.mrf.mxu0 }
 0x66a   :  { %2083 = vpow2.f32 %v1753_v49  ;;  %v1752_v52 = vmul.f32 -1.442695, %v1267_v50 }
 0x66c   :  { %2085 = vpow2.f32 %v1752_v52 }
 0x677   :  { %v2084_v2 = vpop.eup %2083 }
 0x678   :  { %v1276_v53 = vadd.f32 1.0, %v2084_v2 }
 0x679   :  { %v2086_v54 = vpop.eup %2085 }
 0x67a   :  { %2087 = vrcp.f32 %v1276_v53  ;;  %v1275_v56 = vadd.f32 1.0, %v2086_v54 }
 0x67c   :  { %2089 = vrcp.f32 %v1275_v56 }
 0x67d   :  { %2091 = vpow2.f32 %v1751_v63 }
 0x67e   :  { %2093 = vpow2.f32 %v1750_v13 }
 0x687   :  { %v2088_v57 = vpop.eup %2087 }
 0x688   :  { %v1282_v58 = vmul.f32 %v2088_v57, %v2533_v31 }
 0x689   :  { %v2090_v59 = vpop.eup %2089 }
 0x68a   :  { %1979 = vmatprep.subr.mxu1 %v1282_v58  ;;  %v1281_v60 = vmul.f32 %v2090_v59, %v2541_v34  ;;  %v2092_v14 = vpop.eup %2091 }
 0x68b   :  { %1980 = vmatpush3.msra.mxu1 %v1282_v58  ;;  %v2094_v15 = vpop.eup %2093  ;;  %v1260_v16 = vadd.f32 1.0, %v2092_v14 }
 0x68c   :  { %1981 = vmatprep.subr.mxu1 %v1281_v60  ;;  %v1259_v18 = vadd.f32 1.0, %v2094_v15 }
 0x68d   :  { %1982 = vmatpush3.msra.mxu1 %v1281_v60  ;;  %2095 = vrcp.f32 %v1260_v16 }
 0x68e   :  { %1984 = vmatmul.mubr.msk.f32.vlgmr.msra.gmra.mxu1 %vm114_vm0, %v2402_v39  ;;  %2097 = vrcp.f32 %v1259_v18 }
 0x68f   :  { %2003 = vmatprep.mubr.msk.f32.mxu1 %vm114_vm0, %v2322_v3 }
 0x69a   :  { %v2096_v17 = vpop.eup %2095 }
 0x69b   :  { %v2098_v21 = vpop.eup %2097  ;;  %v1365_v29 = vsub.f32 1.0, %v2096_v17 }
 0x69c   :  { %v1364_v30 = vsub.f32 1.0, %v2098_v21 }
 0x69d   :  { %v1367_v33 = vmul.f32 %v1365_v29, %v2533_v31 }
 0x69e   :  { %v1366_v36 = vmul.f32 %v1364_v30, %v2541_v34 }
 0x74e   :  { %v1985_v0 = vpop.f32.mrf.mxu1 }
 0x74f   :  { %v1359_v1 = vadd.f32 %v1985_v0, %v1968_v19 }
 0x750   :  { %v1349_v23 = vpop.f32.mrf.mxu1 }
 0x751   :  { %v1361_v3 = vadd.f32 %v1359_v1, %v2414_v51  ;;  %v1358_v26 = vadd.f32 %v1349_v23, %v1155_v22 }
 0x753   :  { %2099 = vtanh.f32 %v1361_v3  ;;  %v1360_v27 = vadd.f32 %v1358_v26, %v2416_v55 }
 0x755   :  { %2101 = vtanh.f32 %v1360_v27 }
 0x760   :  { %v2100_v32 = vpop.eup %2099 }
 0x761   :  { %v1369_v25 = vmul.f32 %v2100_v32, %v2096_v17 }
 0x762   :  { %v2102_v28 = vpop.eup %2101 }
 0x763   :  { %v2589_v35 = vadd.f32 %v1369_v25, %v1367_v33  ;;  %v1368_v37 = vmul.f32 %v2102_v28, %v2098_v21 }
 0x765   :  { %1757 = vst.msk [vmem:[%s2657_s7 + $0x38] sm:$0xff] %vm454_vm1, %v2589_v35  ;;  %v2597_v38 = vadd.f32 %v1368_v37, %v1366_v36  ;;  %1986 = vmatprep.subr.mxu0 %v2589_v35  ;;  %1999 = vmatprep.subr.mxu1 %v2589_v35 }
 0x766   :  { %1987 = vmatpush3.msra.mxu0 %v2589_v35  ;;  %2000 = vmatpush3.msra.mxu1 %v2589_v35 }
 0x767   :  { %1756 = vst.msk [vmem:[%s2657_s7 + $0x30] sm:$0xff] %vm454_vm1, %v2597_v38  ;;  %1988 = vmatprep.subr.mxu0 %v2597_v38  ;;  %2001 = vmatprep.subr.mxu1 %v2597_v38 }
 0x768   :  { %1989 = vmatpush3.msra.mxu0 %v2597_v38  ;;  %2002 = vmatpush3.msra.mxu1 %v2597_v38 }
 0x769   :  { %1991 = vmatmul.mubr.msk.f32.vlgmr.msra.gmra.mxu0 %vm114_vm0, %v2329_v4  ;;  %2004 = vmatmul.mubr.msk.f32.vlgmr.msra.gmra.mxu1 %vm114_vm0, %v2334_v5 }
 0x76a   :  { %1993 = vmatprep.mubr.msk.f32.mxu0 %vm114_vm0, %v2342_v6  ;;  %2006 = vmatprep.mubr.msk.f32.mxu1 %vm114_vm0, %v2347_v7 }
 0x76d   :  { %1994 = vmatmul.mubr.msk.f32.gmra.mxu0 %vm114_vm0, %v2363_v8  ;;  %2007 = vmatmul.mubr.msk.f32.gmra.mxu1 %vm114_vm0, %v2368_v9 }
 0x76e   :  { %1996 = vmatprep.mubr.msk.f32.mxu0 %vm114_vm0, %v2377_v10  ;;  %2013 = vmatprep.mubr.msk.f32.mxu1 %vm114_vm0, %v2388_v12 }
 0x771   :  { %1997 = vmatmul.mubr.msk.f32.gmra.mxu0 %vm114_vm0, %v2384_v11 }
 0x829   :  { %v1992_v4 = vpop.f32.mrf.mxu0  ;;  %v2005_v5 = vpop.f32.mrf.mxu1 }
 0x82a   :  { %v1556_v6 = vadd.f32 %v2005_v5, %v1992_v4 }
 0x82b   :  { %v1441_v31 = vpop.f32.mrf.mxu0  ;;  %v1536_v7 = vpop.f32.mrf.mxu1 }
 0x82c   :  { %v1555_v34 = vadd.f32 %v1536_v7, %v1441_v31 }
 0x82d   :  { %v1995_v42 = vpop.f32.mrf.mxu0  ;;  %v2008_v8 = vpop.f32.mrf.mxu1 }
 0x82e   :  { %v1572_v43 = vadd.f32 %v2008_v8, %v1995_v42  ;;  %v1557_v54 = vadd.f32 %v1555_v34, %v2410_v41 }
 0x82f   :  { %v1451_v44 = vpop.f32.mrf.mxu0  ;;  %v1546_v9 = vpop.f32.mrf.mxu1 }
 0x830   :  { %v1574_v45 = vadd.f32 %v1572_v43, %v2394_v20  ;;  %v1571_v10 = vadd.f32 %v1546_v9, %v1451_v44  ;;  %v1768_v57 = vmul.f32 -1.442695, %v1557_v54 }
 0x831   :  { %v1998_v62 = vpop.f32.mrf.mxu0 }
 0x832   :  { %v1771_v46 = vmul.f32 -1.442695, %v1574_v45  ;;  %v1573_v12 = vadd.f32 %v1571_v10, %v2396_v24  ;;  %v1558_v24 = vadd.f32 %v1556_v6, %v2408_v40 }
 0x833   :  { %v1461_v14 = vpop.f32.mrf.mxu0 }
 0x834   :  { %2103 = vpow2.f32 %v1771_v46  ;;  %v1770_v47 = vmul.f32 -1.442695, %v1573_v12  ;;  %v1769_v56 = vmul.f32 -1.442695, %v1558_v24 }
 0x836   :  { %2105 = vpow2.f32 %v1770_v47 }
 0x841   :  { %v2104_v11 = vpop.eup %2103 }
 0x842   :  { %v1582_v48 = vadd.f32 1.0, %v2104_v11 }
 0x843   :  { %v2106_v49 = vpop.eup %2105 }
 0x844   :  { %2107 = vrcp.f32 %v1582_v48  ;;  %v1581_v50 = vadd.f32 1.0, %v2106_v49 }
 0x846   :  { %2109 = vrcp.f32 %v1581_v50 }
 0x847   :  { %2111 = vpow2.f32 %v1769_v56 }
 0x848   :  { %2113 = vpow2.f32 %v1768_v57 }
 0x851   :  { %v2108_v52 = vpop.eup %2107 }
 0x852   :  { %v1588_v2 = vmul.f32 %v2108_v52, %v2589_v35 }
 0x853   :  { %v2110_v53 = vpop.eup %2109 }
 0x854   :  { %2009 = vmatprep.subr.mxu1 %v1588_v2  ;;  %v1587_v20 = vmul.f32 %v2110_v53, %v2597_v38  ;;  %v2112_v58 = vpop.eup %2111 }
 0x855   :  { %2010 = vmatpush3.msra.mxu1 %v1588_v2  ;;  %v2114_v59 = vpop.eup %2113  ;;  %v1566_v60 = vadd.f32 1.0, %v2112_v58 }
 0x856   :  { %2011 = vmatprep.subr.mxu1 %v1587_v20  ;;  %v1565_v61 = vadd.f32 1.0, %v2114_v59 }
 0x857   :  { %2012 = vmatpush3.msra.mxu1 %v1587_v20  ;;  %2115 = vrcp.f32 %v1566_v60 }
 0x858   :  { %2014 = vmatmul.mubr.msk.f32.vlgmr.msra.gmra.mxu1 %vm114_vm0, %v2402_v39  ;;  %2117 = vrcp.f32 %v1565_v61 }
 0x864   :  { %v2116_v16 = vpop.eup %2115 }
 0x865   :  { %v2118_v18 = vpop.eup %2117  ;;  %v1671_v19 = vsub.f32 1.0, %v2116_v16 }
 0x866   :  { %v1670_v0 = vsub.f32 1.0, %v2118_v18 }
 0x867   :  { %v1673_v22 = vmul.f32 %v1671_v19, %v2589_v35 }
 0x868   :  { %v1672_v27 = vmul.f32 %v1670_v0, %v2597_v38 }
 0x918   :  { %v2015_v63 = vpop.f32.mrf.mxu1 }
 0x919   :  { %v1665_v13 = vadd.f32 %v2015_v63, %v1998_v62 }
 0x91a   :  { %v1655_v15 = vpop.f32.mrf.mxu1 }
 0x91b   :  { %v1667_v39 = vadd.f32 %v1665_v13, %v2414_v51  ;;  %v1664_v40 = vadd.f32 %v1655_v15, %v1461_v14 }
 0x91d   :  { %2119 = vtanh.f32 %v1667_v39  ;;  %v1666_v41 = vadd.f32 %v1664_v40, %v2416_v55 }
 0x91f   :  { %2121 = vtanh.f32 %v1666_v41 }
 0x92a   :  { %v2120_v1 = vpop.eup %2119 }
 0x92b   :  { %v1675_v23 = vmul.f32 %v2120_v1, %v2116_v16 }
 0x92c   :  { %v2122_v3 = vpop.eup %2121 }
 0x92d   :  { %v1677_v26 = vadd.f32 %v1675_v23, %v1673_v22  ;;  %v1674_v17 = vmul.f32 %v2122_v3, %v2118_v18 }
 0x92f   :  { %1775 = vst.msk [vmem:[%s2657_s7 + $0x48] sm:$0xff] %vm454_vm1, %v1677_v26  ;;  %v1676_v51 = vadd.f32 %v1674_v17, %v1672_v27 }
 0x931   :  { %1774 = vst.msk [vmem:[%s2657_s7 + $0x40] sm:$0xff] %vm454_vm1, %v1676_v51 }
 0x932   :  { %1685 = vsyncpa [#allocation3], 1 }
 0x933   :  { %1686 = vsyncpa [#allocation5], 1 }
 0x934   :  { %1687 = vsyncpa [#allocation8], 1 }

// kernel: state_former_forward.5
= control target key start
LH: loop header
LB: loop body
LE: loop exit
PB: predicated region body
PF: predicated region fallthrough
CT: control target
= control target key end

     0   :  { %s5937_s0 = inlined_call_operand.vmem [shape: f32[2,5,8,11], index: 0, kind: input, shape index: {}]   ;;  %s5938_s1 = inlined_call_operand.vmem [shape: f32[2,1,36], index: 1, kind: input, shape index: {}]   ;;  %s5939_s2 = inlined_call_operand.vmem [shape: f32[11,96], index: 2, kind: input, shape index: {}]   ;;  %s5940_s3 = inlined_call_operand.vmem [shape: f32[1,96], index: 3, kind: input, shape index: {}]   ;;  %s5941_s4 = inlined_call_operand.vmem [shape: f32[5,11,16], index: 4, kind: input, shape index: {}]   ;;  %s5942_s5 = inlined_call_operand.vmem [shape: f32[5,16,32], index: 5, kind: input, shape index: {}]   ;;  %s5943_s6 = inlined_call_operand.vmem [shape: f32[32,384], index: 6, kind: input, shape index: {}]   ;;  %s5944_s7 = inlined_call_operand.vmem [shape: f32[1,384], index: 7, kind: input, shape index: {}]   ;;  %s5945_s8 = inlined_call_operand.vmem [shape: f32[128,768], index: 8, kind: input, shape index: {}]   ;;  %s5946_s9 = inlined_call_operand.vmem [shape: f32[1,768], index: 9, kind: input, shape index: {}]   ;;  %s5947_s10 = inlined_call_operand.vmem [shape: f32[36,13], index: 10, kind: input, shape index: {}]   ;;  %s5948_s11 = inlined_call_operand.vmem [shape: f32[256,13], index: 11, kind: input, shape index: {}]   ;;  %s5949_s12 = inlined_call_operand.vmem [shape: f32[1,13], index: 12, kind: input, shape index: {}]   ;;  %s5950_s13 = inlined_call_operand.hbm [shape: f32[2,1,13], index: 13, kind: output, shape index: {}]  }
   0x1   :  { %5951 = sst [smem:[#allocation5_spill]] %s5937_s0 }
   0x2   :  { %5952 = sst [smem:[#allocation6_spill]] %s5938_s1 }
   0x3   :  { %5953 = sst [smem:[#allocation7_spill]] %s5939_s2 }
   0x4   :  { %5954 = sst [smem:[#allocation8_spill]] %s5940_s3 }
   0x5   :  { %18 = vsyncpa [#allocation3], 0 }
   0x6   :  { %20 = vsyncpa [#allocation3 + $0x1], 0  ;;  %s5019_s25 = smov 0   ;;  %s5021_s26 = smov 0  }
   0x7   :  { %s5023_s27 = smov 0   ;;  %s5025_s28 = smov 0  }
   0x8 LB: > { %s5040_s29 = sadd.s32 4294967295, %s4943_s28   ;;  %s4339_s30 = sadd.s32 4294967294, %s4943_s28   ;;  %s4943_s28 = sphi %s5025_s28, %s5964_s28   ;;  %s4939_s27 = sphi %s5023_s27, %s5963_s27   ;;  %s4935_s26 = sphi %s5021_s26, %s5962_s26   ;;  %s4931_s25 = sphi %s5019_s25, %s5961_s25  }
   0x9   : > { %s5044_s14 = sadd.s32 1, %s4943_s28   ;;  %s316_s15 = sadd.s32 1, %s4939_s27 }
   0xa   : > { %s313_s16 = ssub.s32 %s4943_s28, %s5044_s14  ;;  %p326_p0 = scmp.ne.s32.totalorder %s4939_s27, %s4935_s26 }
   0xb   : > { %p314_p1 = scmp.eq.s32.totalorder %s313_s16, 0  ;;  %p327_p2 = scmp.eq.s32.totalorder %s5040_s29, 1 }
   0xc   : > { %p332_p3 = scmp.ne.s32.totalorder %s4935_s26, %s4931_s25  ;;  %p333_p4 = scmp.eq.s32.totalorder %s4339_s30, 1 }
   0xd   : > { %s5055_s17 = scalar_select %p314_p1, %s4939_s27, %s316_s15  }
   0xe   : > { %p5057_p5 = por %p327_p2, %p326_p0  ;;  %p5061_p6 = por %p333_p4, %p332_p3 }
   0xf   : > { %p4342_p7 = scmp.ge.s32.totalorder %s4943_s28, 1  ;;  %p398_p8 = scmp.lt.s32.totalorder %s4943_s28, 3 }
  0x11   : > { %p399_p9 = pnand %p4342_p7, %p398_p8 }
  0x12   : > { %s5957_s2 = sld [smem:[#allocation7_spill]] (!%p399_p9)  ;;  %p444_p10 = scmp.lt.s32.totalorder (!%p399_p9), %s5040_s29, 1 }
  0x13   : > { %402 = sbr.rel (%p399_p9) target bundleno = 3497 (0xda9), region = 72  ;;  %s5958_s0 = sld [smem:[#allocation5_spill]] (!%p399_p9) }
  0x14   : > { %s5959_s3 = sld [smem:[#allocation8_spill]] (!%p399_p9)  ;;  %s4947_s23 = smov (!%p399_p9), 80  }
  0x15   : > { %s5960_s1 = sld [smem:[#allocation6_spill]] (!%p399_p9)  ;;  %s4948_s15 = smov (!%p399_p9), [#allocation2]  }
  0x16   : > { %s4887_s16 = sshll.u32 (!%p399_p9), %s4948_s15, 4  ;;  %s4888_s16 = int_to_ptr.vmem [resolvable:$false] %s4887_s16 }
  0x18   : > { %v458_v0 = vld [vmem:[%s5957_s2 + $0x8] sm:$0x7]  ;;  %vm482_vm0 = vcmask 1042432   ;;  %v4945_v1 = vmov 0.0   ;;  %v457_v2 = vld [vmem:[%s5957_s2] sm:$0xff]  ;;  %vm4946_vm1 = vmmov 0  }
  0x19   : > { %4546 = vmatprep.subr.mxu0 %v4945_v1  ;;  %4550 = vmatprep.mubr.msk.f32.mxu0 %vm4946_vm1, %v4945_v1  ;;  %s5081_s24 = scalar_select %p444_p10, %s5040_s29, 1  ;;  %vm466_vm2 = vcmask 89088   ;;  %vm579_vm3 = vcmask 392192   ;;  %v1019_v29 = vld [vmem:[%s5941_s4 + $0x8] sm:$0x7]  ;;  %v1018_v30 = vld [vmem:[%s5941_s4] sm:$0xff] }
  0x1a   : > { %4547 = vmatpush3.msk.msra.mxu0 %vm482_vm0, %v458_v0  ;;  %4565 = vmatprep.subr.mxu1 %v4945_v1  ;;  %v4344_v8 = vld [vmem:[%s5959_s3] ss:$0 sm:$0xff]  ;;  %v1021_v31 = vld [vmem:[%s5941_s4 + $0x18] sm:$0x7]  ;;  %v1020_v32 = vld [vmem:[%s5941_s4 + $0x10] sm:$0xff]  ;;  %vm962_vm4 = vcmask 64512  }
  0x1b   : > { %4548 = vmatprep.subr.mxu0 %v4945_v1  ;;  %4567 = vmatprep.mubr.msk.f32.mxu1 %vm4946_vm1, %v4945_v1  ;;  %s4796_s30 = smul.u32 40, %s5081_s24  ;;  %v1023_v33 = vld [vmem:[%s5941_s4 + $0x28] sm:$0x7]  ;;  %v1025_v34 = vld [vmem:[%s5941_s4 + $0x38] sm:$0x7]  ;;  %v1022_v35 = vld [vmem:[%s5941_s4 + $0x20] sm:$0xff]  ;;  %s451_s3 = scalar_lea.vmem %s5960_s1, %s5081_s24 }
  0x1c   : > { %4549 = vmatpush3.msra.mxu0 %v457_v2  ;;  %v1024_v36 = vld [vmem:[%s5941_s4 + $0x30] sm:$0xff]  ;;  %v1027_v37 = vld [vmem:[%s5941_s4 + $0x48] sm:$0x7]  ;;  %v1026_v38 = vld [vmem:[%s5941_s4 + $0x40] sm:$0xff]  ;;  %vm1773_vm5 = vcmask 130048   ;;  %vm2523_vm6 = vcmask 261120  }
  0x1d   : > { %4590 = vmatprep.subr.mxu0 %v4945_v1  ;;  %s448_s20 = scalar_lea.vmem %s5958_s0, %s4796_s30  ;;  %vm3668_vm7 = vcmask 1041409   ;;  %vm3670_vm8 = vcmask 1042434   ;;  %vm3672_vm9 = vcmask 1043459   ;;  %vm3674_vm10 = vcmask 1044484   ;;  %s442_s24 = sand.u32 1, %s4935_s26  }
  0x1e   : > { %v5090_v3 = vld [vmem:[%s448_s20] sm:$0xff]  ;;  %v5096_v4 = vld [vmem:[%s448_s20 + $0x8] sm:$0xff]  ;;  %v5102_v5 = vld [vmem:[%s448_s20 + $0x10] sm:$0xff]  ;;  %vm3977_vm11 = vcmask 1044480   ;;  %vm3961_vm12 = vcmask 36864   ;;  %vm3973_vm13 = vcmask 39936  }
  0x1f   : > { %4551 = vmatmul.mubr.msk.f32.vlgmr.msra.gmra.mxu0 %vm466_vm2, %v5090_v3  ;;  %v5108_v6 = vld [vmem:[%s448_s20 + $0x18] sm:$0xff]  ;;  %v5114_v7 = vld [vmem:[%s448_s20 + $0x20] sm:$0xff]  ;;  %vm4184_vm14 = vcmask 1043456   ;;  %vm4180_vm15 = vcmask 293888   ;;  %s4406_s20 = sshll.u32 %s5040_s29, 4  ;;  %s443_s0 = scalar_lea.vmem [#allocation2], %s442_s24 }
  0x20   : > { %4553 = vmatprep.mubr.msk.f32.mxu0 %vm4946_vm1, %v4945_v1  ;;  %4591 = vmatpush3.msk.msra.mxu0 %vm482_vm0, %v1019_v29  ;;  %s4275_s21 = sshll.u32 %s443_s0, 4  ;;  %s4263_s30 = scalar_lea.sflag [#allocation3], %s442_s24  ;;  %s4276_s21 = int_to_ptr.vmem [resolvable:$true] %s4275_s21 }
  0x21   : > { %4592 = vmatprep.subr.mxu0 %v4945_v1  ;;  %s4889_s29 = scalar_lea.vmem %s4888_s16, 32  ;;  %p4890_p0 = scmp.lt.s32.totalorder %s4276_s21, %s4888_s16 }
  0x22   : > { %4593 = vmatpush3.msra.mxu0 %v1018_v30 }
  0x23   : > { %4554 = vmatmul.mubr.msk.f32.gmra.mxu0 %vm466_vm2, %v5096_v4  ;;  %4604 = vmatprep.subr.mxu0 %v4945_v1 }
  0x24   : > { %4556 = vmatprep.mubr.msk.f32.mxu0 %vm4946_vm1, %v4945_v1 }
  0x27   : > { %4557 = vmatmul.mubr.msk.f32.gmra.mxu0 %vm466_vm2, %v5102_v5 }
  0x28   : > { %4559 = vmatprep.mubr.msk.f32.mxu0 %vm4946_vm1, %v4945_v1 }
  0x2b   : > { %4560 = vmatmul.mubr.msk.f32.gmra.mxu0 %vm466_vm2, %v5108_v6 }
  0x2c   : > { %4562 = vmatprep.mubr.msk.f32.mxu0 %vm4946_vm1, %v4945_v1 }
  0x2f   : > { %4563 = vmatmul.mubr.msk.f32.gmra.mxu0 %vm466_vm2, %v5114_v7 }
  0x30   : > { %4594 = vmatprep.mubr.msk.f32.mxu0 %vm4946_vm1, %v4945_v1 }
  0x33   : > { %4595 = vmatmul.mubr.msk.f32.vlgmr.msra.gmra.mxu0 %vm466_vm2, %v5090_v3 }
  0x34   : > { %4608 = vmatprep.mubr.msk.f32.mxu0 %vm4946_vm1, %v4945_v1  ;;  %4605 = vmatpush3.msk.msra.mxu0 %vm482_vm0, %v1023_v33 }
  0x35   : > { %4606 = vmatprep.subr.mxu0 %v4945_v1 }
  0x36   : > { %4607 = vmatpush3.msra.mxu0 %v1022_v35 }
  0x37   : > { %4609 = vmatmul.mubr.msk.f32.vlgmr.msra.gmra.mxu0 %vm466_vm2, %v5102_v5  ;;  %4618 = vmatprep.subr.mxu0 %v4945_v1 }
  0x38   : > { %4619 = vmatpush3.msk.msra.mxu0 %vm482_vm0, %v1027_v37  ;;  %4622 = vmatprep.mubr.msk.f32.mxu0 %vm4946_vm1, %v4945_v1 }
  0x39   : > { %4620 = vmatprep.subr.mxu0 %v4945_v1 }
  0x3a   : > { %4621 = vmatpush3.msra.mxu0 %v1026_v38 }
  0x3b   : > { %4623 = vmatmul.mubr.msk.f32.vlgmr.msra.gmra.mxu0 %vm466_vm2, %v5114_v7  ;;  %4630 = vmatprep.subr.mxu0 %v4945_v1 }
  0x3c   : > { %4632 = vmatprep.mubr.msk.f32.mxu0 %vm4946_vm1, %v4945_v1 }
  0xdf   : > { %v552_v9 = vpop.f32.mrf.mxu0 }
  0xe0   : > { %v553_v10 = vadd.f32 %v4344_v8, %v552_v9 }
  0xe1   : > { %v4552_v11 = vpop.f32.mrf.mxu0 }
  0xe2   : > { %577 = vrot.lane.b32.xlu0 %v553_v10, %s4947_s23 }
  0xe3   : > { %v557_v12 = vpop.f32.mrf.mxu0 }
  0xe4   : > { %v558_v13 = vadd.f32 %v4344_v8, %v557_v12 }
  0xe5   : > { %v4555_v14 = vpop.f32.mrf.mxu0 }
  0xe6   : > { %655 = vrot.lane.b32.xlu0 %v558_v13, %s4947_s23 }
  0xe7   : > { %v562_v15 = vpop.f32.mrf.mxu0 }
  0xe8   : > { %v563_v16 = vadd.f32 %v4344_v8, %v562_v15 }
  0xe9   : > { %v4558_v17 = vpop.f32.mrf.mxu0 }
  0xea   : > { %732 = vrot.lane.b32.xlu1 %v563_v16, %s4947_s23 }
  0xeb   : > { %v567_v18 = vpop.f32.mrf.mxu0 }
  0xec   : > { %v568_v19 = vadd.f32 %v4344_v8, %v567_v18 }
  0xed   : > { %v4561_v20 = vpop.f32.mrf.mxu0 }
  0xee   : > { %809 = vrot.lane.b32.xlu1 %v568_v19, %s4947_s23 }
  0xef   : > { %v572_v21 = vpop.f32.mrf.mxu0 }
  0xf0   : > { %v573_v22 = vadd.f32 %v4344_v8, %v572_v21 }
  0xf1   : > { %v4564_v23 = vpop.f32.mrf.mxu0 }
  0xf2   : > { %886 = vrot.lane.b32.xlu0 %v573_v22, %s4947_s23  ;;  %s4273_s23 = scalar_lea.hbm %s5950_s13, %s4406_s20 }
 0x154   : > { %v578_v24 = vpop.permute.xlu0 %577 }
 0x155   : > { %4566 = vmatpush3.xpose.msk.msra.mxu1 %vm579_vm3, %v578_v24 }
 0x156   : > { %4570 = vmatprep.subr.mxu1 %v4945_v1 }
 0x158   : > { %4568 = vmatmul.mubr.msk.f32.vlgmr.msra.gmra.mxu1 %vm579_vm3, %v553_v10  ;;  %v656_v25 = vpop.permute.xlu0 %655 }
 0x159   : > { %4571 = vmatpush3.xpose.msk.msra.mxu1 %vm579_vm3, %v656_v25  ;;  %4572 = vmatprep.mubr.msk.f32.mxu1 %vm4946_vm1, %v4945_v1 }
 0x15a   : > { %4575 = vmatprep.subr.mxu1 %v4945_v1 }
 0x15c   : > { %4573 = vmatmul.mubr.msk.f32.vlgmr.msra.gmra.mxu1 %vm579_vm3, %v558_v13  ;;  %v733_v26 = vpop.permute.xlu1 %732 }
 0x15d   : > { %4576 = vmatpush3.xpose.msk.msra.mxu1 %vm579_vm3, %v733_v26  ;;  %4577 = vmatprep.mubr.msk.f32.mxu1 %vm4946_vm1, %v4945_v1 }
 0x15e   : > { %4580 = vmatprep.subr.mxu1 %v4945_v1 }
 0x160   : > { %4578 = vmatmul.mubr.msk.f32.vlgmr.msra.gmra.mxu1 %vm579_vm3, %v563_v16  ;;  %v810_v27 = vpop.permute.xlu1 %809  ;;  %v1097_v16 = vpop.f32.mrf.mxu0 }
 0x161   : > { %4581 = vmatpush3.xpose.msk.msra.mxu1 %vm579_vm3, %v810_v27  ;;  %4582 = vmatprep.mubr.msk.f32.mxu1 %vm4946_vm1, %v4945_v1 }
 0x162   : > { %4585 = vmatprep.subr.mxu1 %v4945_v1  ;;  %v4596_v17 = vpop.f32.mrf.mxu0 }
 0x163   : > { %v2498_v17 = vld [vmem:[%s5943_s6 + $0x20] sm:$0xff] }
 0x164   : > { %4583 = vmatmul.mubr.msk.f32.vlgmr.msra.gmra.mxu1 %vm579_vm3, %v568_v19  ;;  %v887_v28 = vpop.permute.xlu0 %886  ;;  %v1243_v20 = vpop.f32.mrf.mxu0 }
 0x165   : > { %4586 = vmatpush3.xpose.msk.msra.mxu1 %vm579_vm3, %v887_v28  ;;  %4587 = vmatprep.mubr.msk.f32.mxu1 %vm4946_vm1, %v4945_v1 }
 0x166   : > { %4597 = vmatprep.subr.mxu1 %v4945_v1  ;;  %v4610_v21 = vpop.f32.mrf.mxu0 }
 0x167   : > { %v2499_v21 = vld [vmem:[%s5943_s6 + $0x28] sm:$0xff] }
 0x168   : > { %4588 = vmatmul.mubr.msk.f32.vlgmr.msra.gmra.mxu1 %vm579_vm3, %v573_v22  ;;  %v1389_v24 = vpop.f32.mrf.mxu0 }
 0x169   : > { %4601 = vmatprep.mubr.msk.f32.mxu1 %vm4946_vm1, %v4945_v1  ;;  %4598 = vmatpush3.msk.msra.mxu1 %vm482_vm0, %v1021_v31 }
 0x16a   : > { %4599 = vmatprep.subr.mxu1 %v4945_v1  ;;  %v4624_v25 = vpop.f32.mrf.mxu0 }
 0x16b   : > { %4600 = vmatpush3.msra.mxu1 %v1020_v32 }
 0x16c   : > { %4602 = vmatmul.mubr.msk.f32.vlgmr.msra.gmra.mxu1 %vm466_vm2, %v5096_v4  ;;  %4611 = vmatprep.subr.mxu1 %v4945_v1 }
 0x16d   : > { %4612 = vmatpush3.msk.msra.mxu1 %vm482_vm0, %v1025_v34  ;;  %4615 = vmatprep.mubr.msk.f32.mxu1 %vm4946_vm1, %v4945_v1  ;;  %vm4260_vm0 = vcmask 98304  }
 0x16e   : > { %4613 = vmatprep.subr.mxu1 %v4945_v1 }
 0x16f   : > { %4614 = vmatpush3.msra.mxu1 %v1024_v36 }
 0x170   : > { %4616 = vmatmul.mubr.msk.f32.vlgmr.msra.gmra.mxu1 %vm466_vm2, %v5108_v6  ;;  %4625 = vmatprep.subr.mxu1 %v4945_v1 }
 0x171   : > { %4627 = vmatprep.mubr.msk.f32.mxu1 %vm4946_vm1, %v4945_v1  ;;  %4626 = vmatpush3.msra.mxu1 %v1097_v16  ;;  %v2505_v16 = vld [vmem:[%s5943_s6 + $0x58] sm:$0xff] }
 0x172   : > { %4635 = vmatprep.subr.mxu1 %v4945_v1 }
 0x218   : > { %v650_v39 = vpop.f32.mrf.mxu1 }
 0x219   : > { %v963_v40 = vsel %vm962_vm4, %v650_v39, -inf }
 0x21a   : > { %v4569_v41 = vpop.f32.mrf.mxu1  ;;  %964 = vmax.xlane.f32.xlu1 %v963_v40 }
 0x21b   : > { %v1764_v41 = vld [vmem:[%s5942_s5 + $0x8] sm:$0xff] }
 0x21c   : > { %v727_v42 = vpop.f32.mrf.mxu1 }
 0x21d   : > { %v966_v43 = vsel %vm962_vm4, %v727_v42, -inf }
 0x21e   : > { %v4574_v44 = vpop.f32.mrf.mxu1  ;;  %967 = vmax.xlane.f32.xlu0 %v966_v43  ;;  %v1766_v43 = vld [vmem:[%s5942_s5 + $0x18] sm:$0xff] }
 0x21f   : > { %v1765_v44 = vld [vmem:[%s5942_s5 + $0x10] sm:$0xff] }
 0x220   : > { %v804_v45 = vpop.f32.mrf.mxu1 }
 0x221   : > { %v969_v46 = vsel %vm962_vm4, %v804_v45, -inf }
 0x222   : > { %v4579_v47 = vpop.f32.mrf.mxu1  ;;  %970 = vmax.xlane.f32.xlu0 %v969_v46 }
 0x223   : > { %v1768_v47 = vld [vmem:[%s5942_s5 + $0x28] sm:$0xff] }
 0x224   : > { %v881_v48 = vpop.f32.mrf.mxu1 }
 0x225   : > { %v972_v49 = vsel %vm962_vm4, %v881_v48, -inf }
 0x226   : > { %973 = vmax.xlane.f32.xlu1 %v972_v49  ;;  %v4584_v50 = vpop.f32.mrf.mxu1  ;;  %v1767_v49 = vld [vmem:[%s5942_s5 + $0x20] sm:$0xff] }
 0x228   : > { %v958_v51 = vpop.f32.mrf.mxu1 }
 0x229   : > { %v975_v52 = vsel %vm962_vm4, %v958_v51, -inf }
 0x22a   : > { %976 = vmax.xlane.f32.xlu0 %v975_v52  ;;  %v4589_v53 = vpop.f32.mrf.mxu1  ;;  %v1770_v52 = vld [vmem:[%s5942_s5 + $0x38] sm:$0xff] }
 0x22c   : > { %v1170_v18 = vpop.f32.mrf.mxu1 }
 0x22d   : > { %4631 = vmatpush3.msra.mxu0 %v1170_v18 }
 0x22e   : > { %v4603_v19 = vpop.f32.mrf.mxu1  ;;  %4640 = vmatprep.subr.mxu0 %v4945_v1 }
 0x22f   : > { %v2502_v19 = vld [vmem:[%s5943_s6 + $0x40] sm:$0xff] }
 0x230   : > { %v1316_v22 = vpop.f32.mrf.mxu1 }
 0x232   : > { %v4617_v23 = vpop.f32.mrf.mxu1 }
 0x233   : > { %v2494_v23 = vld [vmem:[%s5943_s6] sm:$0xff] }
 0x2a3   : > { %v965_v54 = vpop.xlane.xlu1 %964 }
 0x2a4   : > { %v978_v55 = vsub.f32 %v650_v39, %v965_v54  ;;  %v1769_v54 = vld [vmem:[%s5942_s5 + $0x30] sm:$0xff] }
 0x2a6   : > { %v983_v56 = vmul.f32 1.442695, %v978_v55 }
 0x2a7   : > { %v968_v57 = vpop.xlane.xlu0 %967 }
 0x2a8   : > { %4839 = vpow2.f32 %v983_v56  ;;  %v979_v58 = vsub.f32 %v727_v42, %v968_v57  ;;  %v1763_v42 = vld [vmem:[%s5942_s5] sm:$0xff]  ;;  %v1772_v57 = vld [vmem:[%s5942_s5 + $0x48] sm:$0xff] }
 0x2aa   : > { %v985_v59 = vmul.f32 1.442695, %v979_v58 }
 0x2ab   : > { %v971_v60 = vpop.xlane.xlu0 %970 }
 0x2ac   : > { %4841 = vpow2.f32 %v985_v59  ;;  %v980_v61 = vsub.f32 %v804_v45, %v971_v60  ;;  %v1771_v59 = vld [vmem:[%s5942_s5 + $0x40] sm:$0xff] }
 0x2ae   : > { %v987_v62 = vmul.f32 1.442695, %v980_v61 }
 0x2af   : > { %v974_v63 = vpop.xlane.xlu1 %973 }
 0x2b0   : > { %4843 = vpow2.f32 %v987_v62  ;;  %v981_v0 = vsub.f32 %v881_v48, %v974_v63 }
 0x2b2   : > { %v989_v2 = vmul.f32 1.442695, %v981_v0 }
 0x2b3   : > { %v977_v3 = vpop.xlane.xlu0 %976 }
 0x2b4   : > { %4845 = vpow2.f32 %v989_v2  ;;  %v982_v4 = vsub.f32 %v958_v51, %v977_v3 }
 0x2b5   : > { %v4840_v5 = vpop.eup %4839 }
 0x2b6   : > { %v991_v6 = vmul.f32 1.442695, %v982_v4  ;;  %v993_v7 = vsel %vm962_vm4, %v4840_v5, 0.0 }
 0x2b7   : > { %994 = vadd.xlane.f32.xlu1 %v993_v7 }
 0x2b8   : > { %4847 = vpow2.f32 %v991_v6 }
 0x2b9   : > { %v4842_v8 = vpop.eup %4841 }
 0x2ba   : > { %v996_v9 = vsel %vm962_vm4, %v4842_v8, 0.0 }
 0x2bb   : > { %997 = vadd.xlane.f32.xlu0 %v996_v9  ;;  %v2504_v9 = vld [vmem:[%s5943_s6 + $0x50] sm:$0xff] }
 0x2bd   : > { %v4844_v10 = vpop.eup %4843 }
 0x2be   : > { %v999_v11 = vsel %vm962_vm4, %v4844_v10, 0.0 }
 0x2bf   : > { %1000 = vadd.xlane.f32.xlu1 %v999_v11  ;;  %v2503_v11 = vld [vmem:[%s5943_s6 + $0x48] sm:$0xff] }
 0x2c1   : > { %v4846_v12 = vpop.eup %4845 }
 0x2c2   : > { %v1002_v13 = vsel %vm962_vm4, %v4846_v12, 0.0 }
 0x2c3   : > { %1003 = vadd.xlane.f32.xlu0 %v1002_v13 }
 0x2c5   : > { %v4848_v14 = vpop.eup %4847 }
 0x2c6   : > { %v1005_v15 = vsel %vm962_vm4, %v4848_v14, 0.0 }
 0x2c7   : > { %1006 = vadd.xlane.f32.xlu1 %v1005_v15 }
 0x340   : > { %v995_v26 = vpop.xlane.xlu1 %994 }
 0x341   : > { %4849 = vrcp.f32 %v995_v26 }
 0x344   : > { %v998_v27 = vpop.xlane.xlu0 %997 }
 0x345   : > { %4851 = vrcp.f32 %v998_v27 }
 0x348   : > { %v1001_v28 = vpop.xlane.xlu1 %1000 }
 0x349   : > { %4853 = vrcp.f32 %v1001_v28 }
 0x34c   : > { %v1004_v29 = vpop.xlane.xlu0 %1003 }
 0x34d   : > { %4855 = vrcp.f32 %v1004_v29 }
 0x34e   : > { %v4850_v30 = vpop.eup %4849 }
 0x34f   : > { %v5225_v31 = vmul.f32 %v4850_v30, %v4840_v5 }
 0x350   : > { %v1007_v32 = vpop.xlane.xlu1 %1006 }
 0x351   : > { %4857 = vrcp.f32 %v1007_v32  ;;  %4628 = vmatmul.mubr.msk.f32.vlgmr.msra.gmra.mxu1 %vm962_vm4, %v5225_v31 }
 0x352   : > { %v4852_v33 = vpop.eup %4851  ;;  %4636 = vmatpush3.msra.mxu1 %v1243_v20  ;;  %4637 = vmatprep.mubr.msk.f32.mxu1 %vm4946_vm1, %v4945_v1  ;;  %v2497_v20 = vld [vmem:[%s5943_s6 + $0x18] sm:$0xff] }
 0x353   : > { %v5231_v34 = vmul.f32 %v4852_v33, %v4842_v8  ;;  %4645 = vmatprep.subr.mxu1 %v4945_v1 }
 0x355   : > { %4633 = vmatmul.mubr.msk.f32.vlgmr.msra.gmra.mxu0 %vm962_vm4, %v5231_v34 }
 0x356   : > { %v4854_v35 = vpop.eup %4853  ;;  %4641 = vmatpush3.msra.mxu0 %v1316_v22  ;;  %4642 = vmatprep.mubr.msk.f32.mxu0 %vm4946_vm1, %v4945_v1  ;;  %v2495_v22 = vld [vmem:[%s5943_s6 + $0x8] sm:$0xff] }
 0x357   : > { %v5238_v36 = vmul.f32 %v4854_v35, %v4844_v10  ;;  %4650 = vmatprep.subr.mxu0 %v4945_v1 }
 0x359   : > { %4638 = vmatmul.mubr.msk.f32.vlgmr.msra.gmra.mxu1 %vm962_vm4, %v5238_v36 }
 0x35a   : > { %v4856_v37 = vpop.eup %4855  ;;  %4646 = vmatpush3.msra.mxu1 %v1389_v24  ;;  %4647 = vmatprep.mubr.msk.f32.mxu1 %vm4946_vm1, %v4945_v1  ;;  %v2496_v24 = vld [vmem:[%s5943_s6 + $0x10] sm:$0xff] }
 0x35b   : > { %v5245_v38 = vmul.f32 %v4856_v37, %v4846_v12  ;;  %4657 = vmatprep.subr.mxu1 %v4945_v1  ;;  %v2501_v12 = vld [vmem:[%s5943_s6 + $0x38] sm:$0xff] }
 0x35d   : > { %4643 = vmatmul.mubr.msk.f32.vlgmr.msra.gmra.mxu0 %vm962_vm4, %v5245_v38 }
 0x35e   : > { %v4858_v39 = vpop.eup %4857  ;;  %4654 = vmatprep.mubr.msk.f32.mxu0 %vm4946_vm1, %v4945_v1  ;;  %4651 = vmatpush3.msra.mxu0 %v1764_v41 }
 0x35f   : > { %v5252_v40 = vmul.f32 %v4858_v39, %v4848_v14  ;;  %4652 = vmatprep.subr.mxu0 %v4945_v1  ;;  %v2500_v14 = vld [vmem:[%s5943_s6 + $0x30] sm:$0xff] }
 0x360   : > { %4653 = vmatpush3.msra.mxu0 %v1763_v42 }
 0x361   : > { %4648 = vmatmul.mubr.msk.f32.vlgmr.msra.gmra.mxu1 %vm962_vm4, %v5252_v40  ;;  %4664 = vmatprep.subr.mxu0 %v4945_v1 }
 0x362   : > { %4661 = vmatprep.mubr.msk.f32.mxu1 %vm4946_vm1, %v4945_v1  ;;  %4658 = vmatpush3.msra.mxu1 %v1766_v43  ;;  %v2506_v43 = vld [vmem:[%s5944_s7] sm:$0x7] }
 0x363   : > { %4659 = vmatprep.subr.mxu1 %v4945_v1 }
 0x364   : > { %4660 = vmatpush3.msra.mxu1 %v1765_v44 }
 0x365   : > { %4671 = vmatprep.subr.mxu1 %v4945_v1 }
 0x411   : > { %v1462_v45 = vpop.f32.mrf.mxu1 }
 0x412   : > { %v1758_v46 = vmax.f32 %v1462_v45, 0.0 }
 0x413   : > { %v4629_v48 = vpop.f32.mrf.mxu1 }
 0x414   : > { %4655 = vmatmul.mubr.msk.f32.vlgmr.msra.gmra.mxu0 %vm1773_vm5, %v1758_v46 }
 0x415   : > { %v1535_v50 = vpop.f32.mrf.mxu0  ;;  %4665 = vmatpush3.msra.mxu0 %v1768_v47  ;;  %4668 = vmatprep.mubr.msk.f32.mxu0 %vm4946_vm1, %v4945_v1 }
 0x416   : > { %v1759_v51 = vmax.f32 %v1535_v50, 0.0  ;;  %4666 = vmatprep.subr.mxu0 %v4945_v1 }
 0x417   : > { %v4634_v53 = vpop.f32.mrf.mxu0  ;;  %4667 = vmatpush3.msra.mxu0 %v1767_v49 }
 0x418   : > { %4662 = vmatmul.mubr.msk.f32.vlgmr.msra.gmra.mxu1 %vm1773_vm5, %v1759_v51  ;;  %4678 = vmatprep.subr.mxu0 %v4945_v1 }
 0x419   : > { %v1608_v55 = vpop.f32.mrf.mxu1  ;;  %4672 = vmatpush3.msra.mxu1 %v1770_v52  ;;  %4675 = vmatprep.mubr.msk.f32.mxu1 %vm4946_vm1, %v4945_v1 }
 0x41a   : > { %v1760_v56 = vmax.f32 %v1608_v55, 0.0  ;;  %4673 = vmatprep.subr.mxu1 %v4945_v1 }
 0x41b   : > { %v4639_v58 = vpop.f32.mrf.mxu1  ;;  %4674 = vmatpush3.msra.mxu1 %v1769_v54 }
 0x41c   : > { %4669 = vmatmul.mubr.msk.f32.vlgmr.msra.gmra.mxu0 %vm1773_vm5, %v1760_v56  ;;  %4685 = vmatprep.subr.mxu1 %v4945_v1 }
 0x41d   : > { %v1681_v60 = vpop.f32.mrf.mxu0  ;;  %4679 = vmatpush3.msra.mxu0 %v1772_v57  ;;  %4682 = vmatprep.mubr.msk.f32.mxu0 %vm4946_vm1, %v4945_v1 }
 0x41e   : > { %v1761_v61 = vmax.f32 %v1681_v60, 0.0  ;;  %4680 = vmatprep.subr.mxu0 %v4945_v1 }
 0x41f   : > { %v4644_v62 = vpop.f32.mrf.mxu0  ;;  %4681 = vmatpush3.msra.mxu0 %v1771_v59 }
 0x420   : > { %4676 = vmatmul.mubr.msk.f32.vlgmr.msra.gmra.mxu1 %vm1773_vm5, %v1761_v61  ;;  %4690 = vmatprep.subr.mxu0 %v4945_v1 }
 0x421   : > { %v1754_v63 = vpop.f32.mrf.mxu1  ;;  %4687 = vmatprep.mubr.msk.f32.mxu1 %vm4946_vm1, %v4945_v1 }
 0x422   : > { %v1762_v0 = vmax.f32 %v1754_v63, 0.0 }
 0x423   : > { %v4649_v2 = vpop.f32.mrf.mxu1 }
 0x424   : > { %4683 = vmatmul.mubr.msk.f32.vlgmr.msra.gmra.mxu0 %vm1773_vm5, %v1762_v0 }
 0x425   : > { %4692 = vmatprep.mubr.msk.f32.mxu0 %vm4946_vm1, %v4945_v1 }
 0x4d4   : > { %v1843_v3 = vpop.f32.mrf.mxu0 }
 0x4d5   : > { %4686 = vmatpush3.msra.mxu1 %v1843_v3 }
 0x4d6   : > { %v4656_v4 = vpop.f32.mrf.mxu0  ;;  %4688 = vmatmul.mubr.msk.f32.vlgmr.msra.gmra.mxu1 %vm962_vm4, %v5225_v31  ;;  %4695 = vmatprep.subr.mxu1 %v4945_v1 }
 0x4d7   : > { %4697 = vmatprep.mubr.msk.f32.mxu1 %vm4946_vm1, %v4945_v1 }
 0x4d8   : > { %v1916_v5 = vpop.f32.mrf.mxu1 }
 0x4d9   : > { %4691 = vmatpush3.msra.mxu0 %v1916_v5 }
 0x4da   : > { %v4663_v6 = vpop.f32.mrf.mxu1  ;;  %4693 = vmatmul.mubr.msk.f32.vlgmr.msra.gmra.mxu0 %vm962_vm4, %v5231_v34  ;;  %4700 = vmatprep.subr.mxu0 %v4945_v1 }
 0x4db   : > { %4702 = vmatprep.mubr.msk.f32.mxu0 %vm4946_vm1, %v4945_v1 }
 0x4dc   : > { %v1989_v7 = vpop.f32.mrf.mxu0 }
 0x4dd   : > { %4696 = vmatpush3.msra.mxu1 %v1989_v7 }
 0x4de   : > { %v4670_v8 = vpop.f32.mrf.mxu0  ;;  %4698 = vmatmul.mubr.msk.f32.vlgmr.msra.gmra.mxu1 %vm962_vm4, %v5238_v36  ;;  %4705 = vmatprep.subr.mxu1 %v4945_v1 }
 0x4df   : > { %4707 = vmatprep.mubr.msk.f32.mxu1 %vm4946_vm1, %v4945_v1 }
 0x4e0   : > { %v2062_v10 = vpop.f32.mrf.mxu1 }
 0x4e1   : > { %4701 = vmatpush3.msra.mxu0 %v2062_v10 }
 0x4e2   : > { %v4677_v13 = vpop.f32.mrf.mxu1  ;;  %4703 = vmatmul.mubr.msk.f32.vlgmr.msra.gmra.mxu0 %vm962_vm4, %v5245_v38  ;;  %2563 = vmatprep.subr.mxu0 %v2504_v9 }
 0x4e3   : > { %2564 = vmatpush1.msra.mxu0 %v2503_v11  ;;  %2603 = vmatprep.mubr.f32.mxu0 %v4945_v1 }
 0x4e4   : > { %v2135_v15 = vpop.f32.mrf.mxu0  ;;  %2565 = vmatprep.subr.mxu0 %v2501_v12 }
 0x4e5   : > { %4706 = vmatpush3.msra.mxu1 %v2135_v15  ;;  %2566 = vmatpush1.msra.mxu0 %v2500_v14 }
 0x4e6   : > { %v4684_v18 = vpop.f32.mrf.mxu0  ;;  %4708 = vmatmul.mubr.msk.f32.vlgmr.msra.gmra.mxu1 %vm962_vm4, %v5252_v40  ;;  %4710 = vmatprep.subr.mxu1 %v4945_v1  ;;  %v2508_v40 = vlaneseq }
 0x4e7   : > { %4711 = vmatpush3.msra.mxu1 %v2505_v16  ;;  %2567 = vmatprep.subr.mxu0 %v2498_v17 }
 0x4e8   : > { %4712 = vmatprep.subr.mxu1 %v4945_v1  ;;  %4718 = vmatprep.mubr.msk.f32.mxu1 %vm4946_vm1, %v4945_v1  ;;  %v5403_v41 = vshrl.u32 %v2508_v40, 7 }
 0x4e9   : > { %4713 = vmatpush3.msra.mxu1 %v2502_v19  ;;  %2568 = vmatpush1.msra.mxu0 %v2497_v20 }
 0x4ea   : > { %4714 = vmatprep.subr.mxu1 %v4945_v1  ;;  %2569 = vmatprep.subr.mxu0 %v2495_v22  ;;  %v2514_v42 = vsub.s32 1, %v5403_v41  ;;  %v2510_v44 = vsub.s32 0, %v5403_v41  ;;  %v2518_v51 = vsub.s32 2, %v5403_v41 }
 0x4eb   : > { %4715 = vmatpush3.msra.mxu1 %v2499_v21  ;;  %2570 = vmatpush1.msra.mxu0 %v2494_v23 }
 0x4ec   : > { %4716 = vmatprep.subr.mxu1 %v4945_v1  ;;  %4733 = vmatprep.subr.mxu0 %v4945_v1  ;;  %v2515_v45 = vrot.slane %v2506_v43, %v2514_v42  ;;  %v2511_v48 = vrot.slane %v2506_v43, %v2510_v44  ;;  %v2519_v58 = vrot.slane %v2506_v43, %v2518_v51 }
 0x4ed   : > { %4717 = vmatpush3.msra.mxu1 %v2496_v24 }
 0x4ee   : > { %4738 = vmatprep.subr.mxu1 %v4945_v1 }
 0x596   : > { %v2205_v25 = vpop.f32.mrf.mxu1 }
 0x597   : > { %v2489_v26 = vmax.f32 %v2205_v25, 0.0 }
 0x598   : > { %v4689_v27 = vpop.f32.mrf.mxu1 }
 0x599   : > { %4386 = vmatmul.mubr.msk.f32.vlgmr.msra.gmra.mxu0 %vm2523_vm6, %v2489_v26  ;;  %4719 = vmatmul.mubr.msk.f32.vlgmr.msra.gmra.mxu1 %vm2523_vm6, %v2489_v26 }
 0x59a   : > { %v2275_v28 = vpop.f32.mrf.mxu0  ;;  %2609 = vmatprep.mubr.f32.mxu0 %v4945_v1  ;;  %4721 = vmatprep.mubr.msk.f32.mxu1 %vm4946_vm1, %v4945_v1 }
 0x59b   : > { %v2490_v29 = vmax.f32 %v2275_v28, 0.0 }
 0x59c   : > { %v4694_v30 = vpop.f32.mrf.mxu0 }
 0x59d   : > { %4387 = vmatmul.mubr.msk.f32.gmra.mxu0 %vm2523_vm6, %v2490_v29  ;;  %4722 = vmatmul.mubr.msk.f32.gmra.mxu1 %vm2523_vm6, %v2490_v29 }
 0x59e   : > { %v2345_v31 = vpop.f32.mrf.mxu1  ;;  %2615 = vmatprep.mubr.f32.mxu0 %v4945_v1  ;;  %4724 = vmatprep.mubr.msk.f32.mxu1 %vm4946_vm1, %v4945_v1 }
 0x59f   : > { %v2491_v32 = vmax.f32 %v2345_v31, 0.0 }
 0x5a0   : > { %v4699_v33 = vpop.f32.mrf.mxu1 }
 0x5a1   : > { %4388 = vmatmul.mubr.msk.f32.gmra.mxu0 %vm2523_vm6, %v2491_v32  ;;  %4725 = vmatmul.mubr.msk.f32.gmra.mxu1 %vm2523_vm6, %v2491_v32 }
 0x5a2   : > { %v2415_v34 = vpop.f32.mrf.mxu0  ;;  %2621 = vmatprep.mubr.f32.mxu0 %v4945_v1  ;;  %4727 = vmatprep.mubr.msk.f32.mxu1 %vm4946_vm1, %v4945_v1 }
 0x5a3   : > { %v2492_v35 = vmax.f32 %v2415_v34, 0.0 }
 0x5a4   : > { %v4704_v36 = vpop.f32.mrf.mxu0 }
 0x5a5   : > { %4389 = vmatmul.mubr.msk.f32.gmra.mxu0 %vm2523_vm6, %v2492_v35  ;;  %4728 = vmatmul.mubr.msk.f32.gmra.mxu1 %vm2523_vm6, %v2492_v35 }
 0x5a6   : > { %v2485_v37 = vpop.f32.mrf.mxu1  ;;  %2627 = vmatprep.mubr.f32.mxu0 %v4945_v1  ;;  %4730 = vmatprep.mubr.msk.f32.mxu1 %vm4946_vm1, %v4945_v1 }
 0x5a7   : > { %v2493_v38 = vmax.f32 %v2485_v37, 0.0 }
 0x5a8   : > { %v4709_v39 = vpop.f32.mrf.mxu1 }
 0x5a9   : > { %4390 = vmatmul.mubr.msk.f32.gmra.mxu0 %vm2523_vm6, %v2493_v38  ;;  %4731 = vmatmul.mubr.msk.f32.gmra.mxu1 %vm2523_vm6, %v2493_v38 }
 0x5aa   : > { %4735 = vmatprep.mubr.msk.f32.mxu0 %vm4946_vm1, %v4945_v1  ;;  %4740 = vmatprep.mubr.msk.f32.mxu1 %vm4946_vm1, %v4945_v1 }
 0x659   : > { %v2605_v46 = vpop.f32.mrf.mxu0  ;;  %v2700_v47 = vpop.f32.mrf.mxu1 }
 0x65a   : > { %v2606_v55 = vadd.f32 %v2605_v46, %v2511_v48  ;;  %v2701_v17 = vadd.f32 %v2700_v47, %v2519_v58 }
 0x65b   : > { %v2607_v49 = vpop.f32.mrf.mxu0  ;;  %v4720_v50 = vpop.f32.mrf.mxu1 }
 0x65c   : > { %v2608_v52 = vadd.f32 %v2607_v49, %v2515_v45 }
 0x65d   : > { %v2611_v53 = vpop.f32.mrf.mxu0  ;;  %v2705_v54 = vpop.f32.mrf.mxu1 }
 0x65e   : > { %4734 = vmatpush3.xpose.msra.mxu0 %v2608_v52  ;;  %v2612_v63 = vadd.f32 %v2611_v53, %v2511_v48  ;;  %v2706_v20 = vadd.f32 %v2705_v54, %v2519_v58 }
 0x65f   : > { %v2613_v56 = vpop.f32.mrf.mxu0  ;;  %v4723_v57 = vpop.f32.mrf.mxu1  ;;  %4743 = vmatprep.subr.mxu0 %v4945_v1 }
 0x660   : > { %v2614_v59 = vadd.f32 %v2613_v56, %v2515_v45 }
 0x661   : > { %v2617_v60 = vpop.f32.mrf.mxu0  ;;  %v2710_v61 = vpop.f32.mrf.mxu1  ;;  %4736 = vmatmul.mubr.f32.vlgmr.msra.gmra.mxu0 %v2606_v55 }
 0x662   : > { %v5418_v62 = vadd.f32 %v2710_v61, %v2519_v58  ;;  %4739 = vmatpush3.xpose.msra.mxu1 %v2614_v59  ;;  %4745 = vmatprep.mubr.msk.f32.mxu0 %vm4946_vm1, %v4945_v1  ;;  %v2618_v7 = vadd.f32 %v2617_v60, %v2511_v48 }
 0x663   : > { %v2619_v0 = vpop.f32.mrf.mxu0  ;;  %v4726_v2 = vpop.f32.mrf.mxu1  ;;  %4748 = vmatprep.subr.mxu1 %v4945_v1 }
 0x664   : > { %v2620_v3 = vadd.f32 %v2619_v0, %v2515_v45 }
 0x665   : > { %v2623_v4 = vpop.f32.mrf.mxu0  ;;  %v2715_v5 = vpop.f32.mrf.mxu1  ;;  %4741 = vmatmul.mubr.f32.vlgmr.msra.gmra.mxu1 %v2612_v63 }
 0x666   : > { %v5423_v6 = vadd.f32 %v2715_v5, %v2519_v58  ;;  %4744 = vmatpush3.xpose.msra.mxu0 %v2620_v3  ;;  %4750 = vmatprep.mubr.msk.f32.mxu1 %vm4946_vm1, %v4945_v1  ;;  %v2624_v14 = vadd.f32 %v2623_v4, %v2511_v48 }
 0x667   : > { %v2625_v8 = vpop.f32.mrf.mxu0  ;;  %v4729_v9 = vpop.f32.mrf.mxu1  ;;  %4753 = vmatprep.subr.mxu0 %v4945_v1 }
 0x668   : > { %v2626_v10 = vadd.f32 %v2625_v8, %v2515_v45 }
 0x669   : > { %v2629_v11 = vpop.f32.mrf.mxu0  ;;  %v2720_v12 = vpop.f32.mrf.mxu1  ;;  %4746 = vmatmul.mubr.f32.vlgmr.msra.gmra.mxu0 %v2618_v7 }
 0x66a   : > { %v5428_v13 = vadd.f32 %v2720_v12, %v2519_v58  ;;  %4749 = vmatpush3.xpose.msra.mxu1 %v2626_v10  ;;  %4755 = vmatprep.mubr.msk.f32.mxu0 %vm4946_vm1, %v4945_v1  ;;  %v2630_v19 = vadd.f32 %v2629_v11, %v2511_v48 }
 0x66b   : > { %v2631_v15 = vpop.f32.mrf.mxu0  ;;  %v4732_v16 = vpop.f32.mrf.mxu1  ;;  %4758 = vmatprep.subr.mxu1 %v4945_v1 }
 0x66c   : > { %v2632_v18 = vadd.f32 %v2631_v15, %v2515_v45 }
 0x66d   : > { %4751 = vmatmul.mubr.f32.vlgmr.msra.gmra.mxu1 %v2624_v14 }
 0x66e   : > { %4754 = vmatpush3.xpose.msra.mxu0 %v2632_v18  ;;  %4759 = vmatpush3.msra.mxu1 %v2701_v17 }
 0x66f   : > { %4763 = vmatprep.subr.mxu0 %v4945_v1  ;;  %4760 = vmatprep.mubr.msk.f32.mxu1 %vm4946_vm1, %v4945_v1 }
 0x670   : > { %4768 = vmatprep.subr.mxu1 %v4945_v1 }
 0x671   : > { %4756 = vmatmul.mubr.f32.vlgmr.msra.gmra.mxu0 %v2630_v19  ;;  %v3626_v19 = vld [vmem:[%s5945_s8 + $0x2d8] sm:$0xff] }
 0x672   : > { %4764 = vmatpush3.msra.mxu0 %v2706_v20  ;;  %4765 = vmatprep.mubr.msk.f32.mxu0 %vm4946_vm1, %v4945_v1 }
 0x673   : > { %4773 = vmatprep.subr.mxu0 %v4945_v1 }
 0x721   : > { %v2790_v21 = vpop.f32.mrf.mxu0 }
 0x722   : > { %v3074_v22 = vmul.f32 0.088388346, %v2790_v21 }
 0x723   : > { %v4737_v23 = vpop.f32.mrf.mxu0 }
 0x724   : > { %v3079_v24 = vsel %vm962_vm4, %v3074_v22, -inf }
 0x725   : > { %v2860_v25 = vpop.f32.mrf.mxu1  ;;  %3080 = vmax.xlane.f32.xlu0 %v3079_v24  ;;  %v3625_v24 = vld [vmem:[%s5945_s8 + $0x2d0] sm:$0xff] }
 0x726   : > { %v3075_v26 = vmul.f32 0.088388346, %v2860_v25  ;;  %v3620_v25 = vld [vmem:[%s5945_s8 + $0x2a8] sm:$0xff] }
 0x727   : > { %v4742_v27 = vpop.f32.mrf.mxu1 }
 0x728   : > { %v3082_v28 = vsel %vm962_vm4, %v3075_v26, -inf  ;;  %v3619_v27 = vld [vmem:[%s5945_s8 + $0x2a0] sm:$0xff] }
 0x729   : > { %3083 = vmax.xlane.f32.xlu1 %v3082_v28  ;;  %v2930_v29 = vpop.f32.mrf.mxu0  ;;  %v3622_v28 = vld [vmem:[%s5945_s8 + $0x2b8] sm:$0xff] }
 0x72a   : > { %v3076_v30 = vmul.f32 0.088388346, %v2930_v29  ;;  %v3614_v29 = vld [vmem:[%s5945_s8 + $0x278] sm:$0xff] }
 0x72b   : > { %v4747_v31 = vpop.f32.mrf.mxu0 }
 0x72c   : > { %v3085_v32 = vsel %vm962_vm4, %v3076_v30, -inf  ;;  %v3613_v31 = vld [vmem:[%s5945_s8 + $0x270] sm:$0xff] }
 0x72d   : > { %v3000_v33 = vpop.f32.mrf.mxu1  ;;  %3086 = vmax.xlane.f32.xlu0 %v3085_v32  ;;  %v3616_v32 = vld [vmem:[%s5945_s8 + $0x288] sm:$0xff] }
 0x72e   : > { %v3077_v34 = vmul.f32 0.088388346, %v3000_v33  ;;  %v3608_v33 = vld [vmem:[%s5945_s8 + $0x248] sm:$0xff] }
 0x72f   : > { %v4752_v35 = vpop.f32.mrf.mxu1 }
 0x730   : > { %v3088_v36 = vsel %vm962_vm4, %v3077_v34, -inf  ;;  %v3607_v35 = vld [vmem:[%s5945_s8 + $0x240] sm:$0xff] }
 0x731   : > { %3089 = vmax.xlane.f32.xlu1 %v3088_v36  ;;  %v3070_v37 = vpop.f32.mrf.mxu0  ;;  %v3610_v36 = vld [vmem:[%s5945_s8 + $0x258] sm:$0xff] }
 0x732   : > { %v3078_v38 = vmul.f32 0.088388346, %v3070_v37  ;;  %v3602_v37 = vld [vmem:[%s5945_s8 + $0x218] sm:$0xff] }
 0x733   : > { %v4757_v39 = vpop.f32.mrf.mxu0 }
 0x734   : > { %v3091_v40 = vsel %vm962_vm4, %v3078_v38, -inf  ;;  %v3601_v39 = vld [vmem:[%s5945_s8 + $0x210] sm:$0xff] }
 0x735   : > { %3092 = vmax.xlane.f32.xlu0 %v3091_v40  ;;  %v3604_v40 = vld [vmem:[%s5945_s8 + $0x228] sm:$0xff] }
 0x7ae   : > { %v3081_v43 = vpop.xlane.xlu0 %3080 }
 0x7af   : > { %v3094_v45 = vsub.f32 %v3074_v22, %v3081_v43  ;;  %v3596_v43 = vld [vmem:[%s5945_s8 + $0x1e8] sm:$0xff] }
 0x7b1   : > { %v3099_v46 = vmul.f32 1.442695, %v3094_v45  ;;  %v3603_v45 = vld [vmem:[%s5945_s8 + $0x220] sm:$0xff] }
 0x7b2   : > { %v3084_v47 = vpop.xlane.xlu1 %3083 }
 0x7b3   : > { %4859 = vpow2.f32 %v3099_v46  ;;  %v3095_v48 = vsub.f32 %v3075_v26, %v3084_v47  ;;  %v3627_v26 = vld [vmem:[%s5945_s8 + $0x2e0] sm:$0xff]  ;;  %v3598_v47 = vld [vmem:[%s5945_s8 + $0x1f8] sm:$0xff] }
 0x7b4   : > { %v3595_v46 = vld [vmem:[%s5945_s8 + $0x1e0] sm:$0xff] }
 0x7b5   : > { %v3101_v49 = vmul.f32 1.442695, %v3095_v48  ;;  %v3590_v48 = vld [vmem:[%s5945_s8 + $0x1b8] sm:$0xff] }
 0x7b6   : > { %v3087_v50 = vpop.xlane.xlu0 %3086 }
 0x7b7   : > { %4861 = vpow2.f32 %v3101_v49  ;;  %v3096_v52 = vsub.f32 %v3076_v30, %v3087_v50  ;;  %v3621_v30 = vld [vmem:[%s5945_s8 + $0x2b0] sm:$0xff] }
 0x7b8   : > { %v3597_v49 = vld [vmem:[%s5945_s8 + $0x1f0] sm:$0xff] }
 0x7b9   : > { %v3103_v53 = vmul.f32 1.442695, %v3096_v52  ;;  %v3589_v50 = vld [vmem:[%s5945_s8 + $0x1b0] sm:$0xff]  ;;  %v3592_v52 = vld [vmem:[%s5945_s8 + $0x1c8] sm:$0xff] }
 0x7ba   : > { %v3090_v54 = vpop.xlane.xlu1 %3089 }
 0x7bb   : > { %4863 = vpow2.f32 %v3103_v53  ;;  %v3097_v55 = vsub.f32 %v3077_v34, %v3090_v54  ;;  %v3615_v34 = vld [vmem:[%s5945_s8 + $0x280] sm:$0xff]  ;;  %v3584_v53 = vld [vmem:[%s5945_s8 + $0x188] sm:$0xff] }
 0x7bc   : > { %v3591_v54 = vld [vmem:[%s5945_s8 + $0x1c0] sm:$0xff] }
 0x7bd   : > { %v3105_v56 = vmul.f32 1.442695, %v3097_v55  ;;  %v3583_v55 = vld [vmem:[%s5945_s8 + $0x180] sm:$0xff] }
 0x7be   : > { %v3093_v57 = vpop.xlane.xlu0 %3092 }
 0x7bf   : > { %4865 = vpow2.f32 %v3105_v56  ;;  %v3098_v58 = vsub.f32 %v3078_v38, %v3093_v57  ;;  %v3609_v38 = vld [vmem:[%s5945_s8 + $0x250] sm:$0xff]  ;;  %v3586_v56 = vld [vmem:[%s5945_s8 + $0x198] sm:$0xff] }
 0x7c0   : > { %v4860_v59 = vpop.eup %4859  ;;  %v3578_v57 = vld [vmem:[%s5945_s8 + $0x158] sm:$0xff] }
 0x7c1   : > { %v3107_v60 = vmul.f32 1.442695, %v3098_v58  ;;  %v3109_v61 = vsel %vm962_vm4, %v4860_v59, 0.0  ;;  %v3585_v58 = vld [vmem:[%s5945_s8 + $0x190] sm:$0xff] }
 0x7c2   : > { %3110 = vadd.xlane.f32.xlu1 %v3109_v61  ;;  %v3572_v61 = vld [vmem:[%s5945_s8 + $0x128] sm:$0xff] }
 0x7c3   : > { %4867 = vpow2.f32 %v3107_v60  ;;  %v3580_v60 = vld [vmem:[%s5945_s8 + $0x168] sm:$0xff] }
 0x7c4   : > { %v4862_v63 = vpop.eup %4861 }
 0x7c5   : > { %v3112_v0 = vsel %vm962_vm4, %v4862_v63, 0.0 }
 0x7c6   : > { %3113 = vadd.xlane.f32.xlu0 %v3112_v0  ;;  %v3571_v0 = vld [vmem:[%s5945_s8 + $0x120] sm:$0xff] }
 0x7c8   : > { %v4864_v2 = vpop.eup %4863 }
 0x7c9   : > { %v3115_v3 = vsel %vm962_vm4, %v4864_v2, 0.0 }
 0x7ca   : > { %3116 = vadd.xlane.f32.xlu1 %v3115_v3  ;;  %v3566_v3 = vld [vmem:[%s5945_s8 + $0xf8] sm:$0xff] }
 0x7cc   : > { %v4866_v4 = vpop.eup %4865 }
 0x7cd   : > { %v3118_v5 = vsel %vm962_vm4, %v4866_v4, 0.0 }
 0x7ce   : > { %3119 = vadd.xlane.f32.xlu0 %v3118_v5  ;;  %v3565_v5 = vld [vmem:[%s5945_s8 + $0xf0] sm:$0xff] }
 0x7d0   : > { %v4868_v7 = vpop.eup %4867 }
 0x7d1   : > { %v3121_v8 = vsel %vm962_vm4, %v4868_v7, 0.0 }
 0x7d2   : > { %3122 = vadd.xlane.f32.xlu1 %v3121_v8  ;;  %v3560_v8 = vld [vmem:[%s5945_s8 + $0xc8] sm:$0xff] }
 0x84b   : > { %v3111_v9 = vpop.xlane.xlu1 %3110 }
 0x84c   : > { %4869 = vrcp.f32 %v3111_v9  ;;  %v3567_v9 = vld [vmem:[%s5945_s8 + $0x100] sm:$0xff] }
 0x84f   : > { %v3114_v10 = vpop.xlane.xlu0 %3113 }
 0x850   : > { %4871 = vrcp.f32 %v3114_v10  ;;  %v3559_v10 = vld [vmem:[%s5945_s8 + $0xc0] sm:$0xff] }
 0x853   : > { %v3117_v11 = vpop.xlane.xlu1 %3116 }
 0x854   : > { %4873 = vrcp.f32 %v3117_v11  ;;  %v3562_v11 = vld [vmem:[%s5945_s8 + $0xd8] sm:$0xff] }
 0x857   : > { %v3120_v12 = vpop.xlane.xlu0 %3119 }
 0x858   : > { %4875 = vrcp.f32 %v3120_v12  ;;  %v3554_v12 = vld [vmem:[%s5945_s8 + $0x98] sm:$0xff] }
 0x859   : > { %v4870_v14 = vpop.eup %4869 }
 0x85a   : > { %v3129_v15 = vmul.f32 %v4870_v14, %v4860_v59  ;;  %v3577_v59 = vld [vmem:[%s5945_s8 + $0x150] sm:$0xff] }
 0x85b   : > { %v3123_v16 = vpop.xlane.xlu1 %3122  ;;  %v3561_v14 = vld [vmem:[%s5945_s8 + $0xd0] sm:$0xff] }
 0x85c   : > { %4877 = vrcp.f32 %v3123_v16  ;;  %4761 = vmatmul.mubr.msk.f32.vlgmr.msra.gmra.mxu1 %vm962_vm4, %v3129_v15  ;;  %v3553_v15 = vld [vmem:[%s5945_s8 + $0x90] sm:$0xff]  ;;  %v3556_v16 = vld [vmem:[%s5945_s8 + $0xa8] sm:$0xff] }
 0x85d   : > { %v4872_v17 = vpop.eup %4871  ;;  %4769 = vmatpush3.msra.mxu1 %v5418_v62  ;;  %4770 = vmatprep.mubr.msk.f32.mxu1 %vm4946_vm1, %v4945_v1 }
 0x85e   : > { %v3130_v18 = vmul.f32 %v4872_v17, %v4862_v63  ;;  %4778 = vmatprep.subr.mxu1 %v4945_v1  ;;  %v3579_v63 = vld [vmem:[%s5945_s8 + $0x160] sm:$0xff]  ;;  %v3548_v17 = vld [vmem:[%s5945_s8 + $0x68] sm:$0xff] }
 0x860   : > { %4766 = vmatmul.mubr.msk.f32.vlgmr.msra.gmra.mxu0 %vm962_vm4, %v3130_v18  ;;  %v3555_v18 = vld [vmem:[%s5945_s8 + $0xa0] sm:$0xff] }
 0x861   : > { %v4874_v20 = vpop.eup %4873  ;;  %4774 = vmatpush3.msra.mxu0 %v5423_v6  ;;  %4775 = vmatprep.mubr.msk.f32.mxu0 %vm4946_vm1, %v4945_v1 }
 0x862   : > { %v3131_v21 = vmul.f32 %v4874_v20, %v4864_v2  ;;  %3677 = vmatprep.subr.mxu0 %v3626_v19  ;;  %v3574_v2 = vld [vmem:[%s5945_s8 + $0x138] sm:$0xff]  ;;  %v3547_v19 = vld [vmem:[%s5945_s8 + $0x60] sm:$0xff] }
 0x863   : > { %v3550_v20 = vld [vmem:[%s5945_s8 + $0x78] sm:$0xff] }
 0x864   : > { %4771 = vmatmul.mubr.msk.f32.vlgmr.msra.gmra.mxu1 %vm962_vm4, %v3131_v21  ;;  %v3542_v21 = vld [vmem:[%s5945_s8 + $0x38] sm:$0xff] }
 0x865   : > { %v4876_v62 = vpop.eup %4875  ;;  %4779 = vmatpush3.msra.mxu1 %v5428_v13  ;;  %4780 = vmatprep.mubr.msk.f32.mxu1 %vm4946_vm1, %v4945_v1  ;;  %v3628_v13 = vld [vmem:[%s5945_s8 + $0x2e8] sm:$0xff] }
 0x866   : > { %v3132_v22 = vmul.f32 %v4876_v62, %v4866_v4  ;;  %3748 = vmatprep.subr.mxu1 %v3628_v13  ;;  %v3573_v4 = vld [vmem:[%s5945_s8 + $0x130] sm:$0xff]  ;;  %v3535_v13 = vld [vmem:[%s5945_s8] sm:$0xff] }
 0x867   : > { %v3549_v62 = vld [vmem:[%s5945_s8 + $0x70] sm:$0xff] }
 0x868   : > { %4776 = vmatmul.mubr.msk.f32.vlgmr.msra.gmra.mxu0 %vm962_vm4, %v3132_v22  ;;  %v3541_v22 = vld [vmem:[%s5945_s8 + $0x30] sm:$0xff] }
 0x869   : > { %v4878_v23 = vpop.eup %4877  ;;  %3741 = vmatprep.mubr.f32.mxu0 %v4945_v1  ;;  %3678 = vmatpush1.msra.mxu0 %v3625_v24  ;;  %v3543_v24 = vld [vmem:[%s5945_s8 + $0x40] sm:$0xff] }
 0x86a   : > { %v3133_v6 = vmul.f32 %v4878_v23, %v4868_v7  ;;  %3679 = vmatprep.subr.mxu0 %v3620_v25  ;;  %v3568_v7 = vld [vmem:[%s5945_s8 + $0x108] sm:$0xff]  ;;  %v3538_v25 = vld [vmem:[%s5945_s8 + $0x18] sm:$0xff] }
 0x86b   : > { %3680 = vmatpush1.msra.mxu0 %v3619_v27  ;;  %v3544_v23 = vld [vmem:[%s5945_s8 + $0x48] sm:$0xff]  ;;  %v3630_v27 = vld [vmem:[%s5945_s8 + $0x2f8] sm:$0xff] }
 0x86c   : > { %4781 = vmatmul.mubr.msk.f32.vlgmr.msra.gmra.mxu1 %vm962_vm4, %v3133_v6  ;;  %3681 = vmatprep.subr.mxu0 %v3614_v29  ;;  %v3536_v6 = vld [vmem:[%s5945_s8 + $0x8] sm:$0xff] }
 0x86d   : > { %3812 = vmatprep.mubr.f32.mxu1 %v4945_v1  ;;  %3749 = vmatpush1.msra.mxu1 %v3627_v26  ;;  %v3537_v26 = vld [vmem:[%s5945_s8 + $0x10] sm:$0xff] }
 0x86e   : > { %3750 = vmatprep.subr.mxu1 %v3622_v28  ;;  %3682 = vmatpush1.msra.mxu0 %v3613_v31 }
 0x86f   : > { %3751 = vmatpush1.msra.mxu1 %v3621_v30  ;;  %3683 = vmatprep.subr.mxu0 %v3608_v33 }
 0x870   : > { %3752 = vmatprep.subr.mxu1 %v3616_v32  ;;  %3684 = vmatpush1.msra.mxu0 %v3607_v35 }
 0x871   : > { %3753 = vmatpush1.msra.mxu1 %v3615_v34  ;;  %3685 = vmatprep.subr.mxu0 %v3602_v37 }
 0x872   : > { %3754 = vmatprep.subr.mxu1 %v3610_v36  ;;  %3686 = vmatpush1.msra.mxu0 %v3601_v39 }
 0x873   : > { %3755 = vmatpush1.msra.mxu1 %v3609_v38  ;;  %3687 = vmatprep.subr.mxu0 %v3596_v43 }
 0x874   : > { %3756 = vmatprep.subr.mxu1 %v3604_v40  ;;  %3688 = vmatpush1.msra.mxu0 %v3595_v46 }
 0x875   : > { %3757 = vmatpush1.msra.mxu1 %v3603_v45  ;;  %3689 = vmatprep.subr.mxu0 %v3590_v48 }
 0x876   : > { %3758 = vmatprep.subr.mxu1 %v3598_v47  ;;  %3690 = vmatpush1.msra.mxu0 %v3589_v50 }
 0x877   : > { %3759 = vmatpush1.msra.mxu1 %v3597_v49  ;;  %3691 = vmatprep.subr.mxu0 %v3584_v53 }
 0x878   : > { %3760 = vmatprep.subr.mxu1 %v3592_v52  ;;  %3692 = vmatpush1.msra.mxu0 %v3583_v55 }
 0x879   : > { %3761 = vmatpush1.msra.mxu1 %v3591_v54  ;;  %3693 = vmatprep.subr.mxu0 %v3578_v57 }
 0x87a   : > { %3762 = vmatprep.subr.mxu1 %v3586_v56  ;;  %3694 = vmatpush1.msra.mxu0 %v3577_v59 }
 0x87b   : > { %3763 = vmatpush1.msra.mxu1 %v3585_v58  ;;  %3695 = vmatprep.subr.mxu0 %v3572_v61 }
 0x87c   : > { %3764 = vmatprep.subr.mxu1 %v3580_v60  ;;  %3696 = vmatpush1.msra.mxu0 %v3571_v0 }
 0x87d   : > { %3765 = vmatpush1.msra.mxu1 %v3579_v63  ;;  %3697 = vmatprep.subr.mxu0 %v3566_v3 }
 0x87e   : > { %3766 = vmatprep.subr.mxu1 %v3574_v2  ;;  %3698 = vmatpush1.msra.mxu0 %v3565_v5 }
 0x87f   : > { %3767 = vmatpush1.msra.mxu1 %v3573_v4  ;;  %3699 = vmatprep.subr.mxu0 %v3560_v8 }
 0x880   : > { %3768 = vmatprep.subr.mxu1 %v3568_v7  ;;  %3700 = vmatpush1.msra.mxu0 %v3559_v10 }
 0x881   : > { %3769 = vmatpush1.msra.mxu1 %v3567_v9  ;;  %3701 = vmatprep.subr.mxu0 %v3554_v12 }
 0x882   : > { %3770 = vmatprep.subr.mxu1 %v3562_v11  ;;  %3702 = vmatpush1.msra.mxu0 %v3553_v15 }
 0x883   : > { %3771 = vmatpush1.msra.mxu1 %v3561_v14  ;;  %3703 = vmatprep.subr.mxu0 %v3548_v17 }
 0x884   : > { %3772 = vmatprep.subr.mxu1 %v3556_v16  ;;  %3704 = vmatpush1.msra.mxu0 %v3547_v19 }
 0x885   : > { %3773 = vmatpush1.msra.mxu1 %v3555_v18  ;;  %3705 = vmatprep.subr.mxu0 %v3542_v21 }
 0x886   : > { %3774 = vmatprep.subr.mxu1 %v3550_v20  ;;  %3706 = vmatpush1.msra.mxu0 %v3541_v22  ;;  %v3629_v20 = vld [vmem:[%s5945_s8 + $0x2f0] sm:$0xff]  ;;  %v3623_v22 = vld [vmem:[%s5945_s8 + $0x2c0] sm:$0xff] }
 0x887   : > { %3775 = vmatpush1.msra.mxu1 %v3549_v62  ;;  %3707 = vmatprep.subr.mxu0 %v3536_v6  ;;  %v3624_v62 = vld [vmem:[%s5945_s8 + $0x2c8] sm:$0xff]  ;;  %v3617_v6 = vld [vmem:[%s5945_s8 + $0x290] sm:$0xff] }
 0x888   : > { %3776 = vmatprep.subr.mxu1 %v3544_v23  ;;  %3708 = vmatpush1.msra.mxu0 %v3535_v13  ;;  %v3618_v23 = vld [vmem:[%s5945_s8 + $0x298] sm:$0xff]  ;;  %v3611_v13 = vld [vmem:[%s5945_s8 + $0x260] sm:$0xff] }
 0x889   : > { %3777 = vmatpush1.msra.mxu1 %v3543_v24  ;;  %3819 = vmatprep.subr.mxu0 %v3630_v27  ;;  %v3612_v24 = vld [vmem:[%s5945_s8 + $0x268] sm:$0xff] }
 0x88a   : > { %3778 = vmatprep.subr.mxu1 %v3538_v25  ;;  %v3606_v25 = vld [vmem:[%s5945_s8 + $0x238] sm:$0xff]  ;;  %v3600_v27 = vld [vmem:[%s5945_s8 + $0x208] sm:$0xff] }
 0x88b   : > { %3779 = vmatpush1.msra.mxu1 %v3537_v26  ;;  %v3605_v26 = vld [vmem:[%s5945_s8 + $0x230] sm:$0xff] }
 0x91c   : > { %v3203_v28 = vpop.f32.mrf.mxu1 }
 0x91d   : > { %v3499_v29 = vrot.slane %v3203_v28, 4 }
 0x91e   : > { %v4762_v30 = vpop.f32.mrf.mxu1 }
 0x91f   : > { %v3500_v33 = vadd.f32 %v3499_v29, %v3203_v28  ;;  %v3599_v28 = vld [vmem:[%s5945_s8 + $0x200] sm:$0xff]  ;;  %v3594_v29 = vld [vmem:[%s5945_s8 + $0x1d8] sm:$0xff]  ;;  %v3593_v30 = vld [vmem:[%s5945_s8 + $0x1d0] sm:$0xff] }
 0x920   : > { %v3276_v31 = vpop.f32.mrf.mxu0 }
 0x921   : > { %v3505_v32 = vrot.slane %v3276_v31, 4  ;;  %v3501_v39 = vrot.slane %v3500_v33, 2 }
 0x922   : > { %v4767_v34 = vpop.f32.mrf.mxu0 }
 0x923   : > { %v3506_v35 = vadd.f32 %v3505_v32, %v3276_v31  ;;  %v3502_v49 = vadd.f32 %v3501_v39, %v3500_v33  ;;  %v3588_v31 = vld [vmem:[%s5945_s8 + $0x1a8] sm:$0xff]  ;;  %v3587_v32 = vld [vmem:[%s5945_s8 + $0x1a0] sm:$0xff]  ;;  %v3582_v33 = vld [vmem:[%s5945_s8 + $0x178] sm:$0xff] }
 0x924   : > { %v3349_v36 = vpop.f32.mrf.mxu1  ;;  %v3581_v34 = vld [vmem:[%s5945_s8 + $0x170] sm:$0xff]  ;;  %v3564_v39 = vld [vmem:[%s5945_s8 + $0xe8] sm:$0xff] }
 0x925   : > { %v3507_v37 = vrot.slane %v3506_v35, 2  ;;  %v3511_v38 = vrot.slane %v3349_v36, 4  ;;  %v3503_v59 = vrot.slane %v3502_v49, 1 }
 0x926   : > { %v4772_v40 = vpop.f32.mrf.mxu1 }
 0x927   : > { %v3512_v43 = vadd.f32 %v3511_v38, %v3349_v36  ;;  %v3508_v45 = vadd.f32 %v3507_v37, %v3506_v35  ;;  %v3504_v5 = vadd.f32 %v3503_v59, %v3502_v49  ;;  %v3576_v35 = vld [vmem:[%s5945_s8 + $0x148] sm:$0xff]  ;;  %v3575_v36 = vld [vmem:[%s5945_s8 + $0x140] sm:$0xff]  ;;  %v3570_v37 = vld [vmem:[%s5945_s8 + $0x118] sm:$0xff] }
 0x928   : > { %v3422_v46 = vpop.f32.mrf.mxu0  ;;  %v3569_v38 = vld [vmem:[%s5945_s8 + $0x110] sm:$0xff]  ;;  %v3563_v40 = vld [vmem:[%s5945_s8 + $0xe0] sm:$0xff] }
 0x929   : > { %v3513_v47 = vrot.slane %v3512_v43, 2  ;;  %v3517_v48 = vrot.slane %v3422_v46, 4  ;;  %v3509_v54 = vrot.slane %v3508_v45, 1  ;;  %v3530_v12 = vmul.f32 0.125, %v3504_v5  ;;  %v3545_v49 = vld [vmem:[%s5945_s8 + $0x50] sm:$0xff] }
 0x92a   : > { %v4777_v50 = vpop.f32.mrf.mxu0 }
 0x92b   : > { %v3514_v52 = vadd.f32 %v3513_v47, %v3512_v43  ;;  %v3518_v53 = vadd.f32 %v3517_v48, %v3422_v46  ;;  %v3510_v0 = vadd.f32 %v3509_v54, %v3508_v45  ;;  %v3558_v43 = vld [vmem:[%s5945_s8 + $0xb8] sm:$0xff]  ;;  %v3557_v45 = vld [vmem:[%s5945_s8 + $0xb0] sm:$0xff]  ;;  %v3552_v46 = vld [vmem:[%s5945_s8 + $0x88] sm:$0xff] }
 0x92c   : > { %v3495_v55 = vpop.f32.mrf.mxu1  ;;  %v3551_v47 = vld [vmem:[%s5945_s8 + $0x80] sm:$0xff]  ;;  %v3546_v48 = vld [vmem:[%s5945_s8 + $0x58] sm:$0xff]  ;;  %v3540_v50 = vld [vmem:[%s5945_s8 + $0x28] sm:$0xff] }
 0x92d   : > { %v3515_v56 = vrot.slane %v3514_v52, 1  ;;  %v3519_v57 = vrot.slane %v3518_v53, 2  ;;  %v3523_v58 = vrot.slane %v3495_v55, 4  ;;  %v3531_v9 = vmul.f32 0.125, %v3510_v0  ;;  %v3631_v54 = vld [vmem:[%s5946_s9] sm:$0x3f] }
 0x92e   : > { %v4782_v60 = vpop.f32.mrf.mxu1 }
 0x92f   : > { %v3520_v61 = vadd.f32 %v3519_v57, %v3518_v53  ;;  %v3524_v63 = vadd.f32 %v3523_v58, %v3495_v55  ;;  %v3516_v2 = vadd.f32 %v3515_v56, %v3514_v52  ;;  %v3669_v16 = vsel %vm3668_vm7, %v3531_v9, %v3530_v12  ;;  %v3539_v52 = vld [vmem:[%s5945_s8 + $0x20] sm:$0xff] }
 0x930   : > { %v3647_v53 = vsub.s32 3, %v5403_v41  ;;  %v3640_v55 = vrot.slane %v3631_v54, %v2514_v42  ;;  %v3644_v58 = vrot.slane %v3631_v54, %v2518_v51  ;;  %v3655_v42 = vsub.s32 5, %v5403_v41 }
 0x931   : > { %v3521_v3 = vrot.slane %v3520_v61, 1  ;;  %v3525_v4 = vrot.slane %v3524_v63, 2  ;;  %v3532_v10 = vmul.f32 0.125, %v3516_v2  ;;  %v3651_v51 = vsub.s32 4, %v5403_v41 }
 0x932   : > { %v3648_v56 = vrot.slane %v3631_v54, %v3647_v53  ;;  %v3656_v5 = vrot.slane %v3631_v54, %v3655_v42  ;;  %v4095_v53 = vld [vmem:[%s5948_s11 + $0x88] sm:$0xff] }
 0x933   : > { %v3522_v7 = vadd.f32 %v3521_v3, %v3520_v61  ;;  %v3526_v8 = vadd.f32 %v3525_v4, %v3524_v63  ;;  %v3671_v18 = vsel %vm3670_vm8, %v3532_v10, %v3669_v16  ;;  %v3636_v63 = vrot.slane %v3631_v54, %v2510_v44 }
 0x935   : > { %v3527_v11 = vrot.slane %v3526_v8, 1  ;;  %v3533_v14 = vmul.f32 0.125, %v3522_v7  ;;  %v3652_v7 = vrot.slane %v3631_v54, %v3651_v51  ;;  %v4079_v54 = vld [vmem:[%s5948_s11 + $0x8] sm:$0xff] }
 0x937   : > { %v3528_v15 = vadd.f32 %v3527_v11, %v3526_v8  ;;  %v3673_v19 = vsel %vm3672_vm9, %v3533_v14, %v3671_v18 }
 0x939   : > { %v3534_v17 = vmul.f32 0.125, %v3528_v15 }
 0x93b   : > { %v5665_v21 = vsel %vm3674_vm10, %v3534_v17, %v3673_v19 }
 0x93c   : > { %3742 = vmatmul.mubr.f32.vlgmr.msra.gmra.mxu0 %v5665_v21  ;;  %3813 = vmatmul.mubr.f32.vlgmr.msra.gmra.mxu1 %v5665_v21 }
 0x93d   : > { %3820 = vmatpush1.msra.mxu0 %v3629_v20  ;;  %3883 = vmatprep.mubr.f32.mxu0 %v4945_v1  ;;  %v4109_v20 = vld [vmem:[%s5948_s11 + $0xf8] sm:$0xff] }
 0x93e   : > { %3821 = vmatprep.subr.mxu0 %v3624_v62 }
 0x93f   : > { %3822 = vmatpush1.msra.mxu0 %v3623_v22 }
 0x940   : > { %3823 = vmatprep.subr.mxu0 %v3618_v23  ;;  %v4093_v23 = vld [vmem:[%s5948_s11 + $0x78] sm:$0xff] }
 0x941   : > { %3824 = vmatpush1.msra.mxu0 %v3617_v6  ;;  %v4108_v6 = vld [vmem:[%s5948_s11 + $0xf0] sm:$0xff] }
 0x942   : > { %3825 = vmatprep.subr.mxu0 %v3612_v24  ;;  %v4092_v24 = vld [vmem:[%s5948_s11 + $0x70] sm:$0xff] }
 0x943   : > { %3826 = vmatpush1.msra.mxu0 %v3611_v13  ;;  %v4107_v13 = vld [vmem:[%s5948_s11 + $0xe8] sm:$0xff] }
 0x944   : > { %3827 = vmatprep.subr.mxu0 %v3606_v25  ;;  %v4091_v25 = vld [vmem:[%s5948_s11 + $0x68] sm:$0xff] }
 0x945   : > { %3828 = vmatpush1.msra.mxu0 %v3605_v26  ;;  %v4106_v26 = vld [vmem:[%s5948_s11 + $0xe0] sm:$0xff] }
 0x946   : > { %3829 = vmatprep.subr.mxu0 %v3600_v27  ;;  %v4090_v27 = vld [vmem:[%s5948_s11 + $0x60] sm:$0xff] }
 0x947   : > { %3830 = vmatpush1.msra.mxu0 %v3599_v28  ;;  %v4105_v28 = vld [vmem:[%s5948_s11 + $0xd8] sm:$0xff] }
 0x948   : > { %3831 = vmatprep.subr.mxu0 %v3594_v29  ;;  %v4089_v29 = vld [vmem:[%s5948_s11 + $0x58] sm:$0xff] }
 0x949   : > { %3832 = vmatpush1.msra.mxu0 %v3593_v30  ;;  %v4104_v30 = vld [vmem:[%s5948_s11 + $0xd0] sm:$0xff] }
 0x94a   : > { %3833 = vmatprep.subr.mxu0 %v3588_v31  ;;  %v4088_v31 = vld [vmem:[%s5948_s11 + $0x50] sm:$0xff] }
 0x94b   : > { %3834 = vmatpush1.msra.mxu0 %v3587_v32  ;;  %v4103_v32 = vld [vmem:[%s5948_s11 + $0xc8] sm:$0xff] }
 0x94c   : > { %3835 = vmatprep.subr.mxu0 %v3582_v33  ;;  %v4087_v33 = vld [vmem:[%s5948_s11 + $0x48] sm:$0xff] }
 0x94d   : > { %3836 = vmatpush1.msra.mxu0 %v3581_v34  ;;  %v4102_v34 = vld [vmem:[%s5948_s11 + $0xc0] sm:$0xff] }
 0x94e   : > { %3837 = vmatprep.subr.mxu0 %v3576_v35  ;;  %v4086_v35 = vld [vmem:[%s5948_s11 + $0x40] sm:$0xff] }
 0x94f   : > { %3838 = vmatpush1.msra.mxu0 %v3575_v36  ;;  %v4101_v36 = vld [vmem:[%s5948_s11 + $0xb8] sm:$0xff] }
 0x950   : > { %3839 = vmatprep.subr.mxu0 %v3570_v37  ;;  %v4085_v37 = vld [vmem:[%s5948_s11 + $0x38] sm:$0xff] }
 0x951   : > { %3840 = vmatpush1.msra.mxu0 %v3569_v38  ;;  %v4100_v38 = vld [vmem:[%s5948_s11 + $0xb0] sm:$0xff] }
 0x952   : > { %3841 = vmatprep.subr.mxu0 %v3564_v39  ;;  %v4084_v39 = vld [vmem:[%s5948_s11 + $0x30] sm:$0xff] }
 0x953   : > { %3842 = vmatpush1.msra.mxu0 %v3563_v40  ;;  %v4099_v40 = vld [vmem:[%s5948_s11 + $0xa8] sm:$0xff] }
 0x954   : > { %3843 = vmatprep.subr.mxu0 %v3558_v43  ;;  %v4083_v43 = vld [vmem:[%s5948_s11 + $0x28] sm:$0xff] }
 0x955   : > { %3844 = vmatpush1.msra.mxu0 %v3557_v45  ;;  %v4098_v45 = vld [vmem:[%s5948_s11 + $0xa0] sm:$0xff] }
 0x956   : > { %3845 = vmatprep.subr.mxu0 %v3552_v46  ;;  %v4082_v46 = vld [vmem:[%s5948_s11 + $0x20] sm:$0xff] }
 0x957   : > { %3846 = vmatpush1.msra.mxu0 %v3551_v47  ;;  %v4097_v47 = vld [vmem:[%s5948_s11 + $0x98] sm:$0xff] }
 0x958   : > { %3847 = vmatprep.subr.mxu0 %v3546_v48  ;;  %v4081_v48 = vld [vmem:[%s5948_s11 + $0x18] sm:$0xff] }
 0x959   : > { %3848 = vmatpush1.msra.mxu0 %v3545_v49  ;;  %v4077_v49 = vld [vmem:[%s5947_s10 + $0x20] sm:$0xf] }
 0x95a   : > { %3849 = vmatprep.subr.mxu0 %v3540_v50  ;;  %v4096_v50 = vld [vmem:[%s5948_s11 + $0x90] sm:$0xff] }
 0x95b   : > { %3850 = vmatpush1.msra.mxu0 %v3539_v52  ;;  %v4080_v52 = vld [vmem:[%s5948_s11 + $0x10] sm:$0xff] }
 0x95c   : > { %3884 = vmatmul.mubr.f32.vlgmr.msra.gmra.mxu0 %v5665_v21  ;;  %4783 = vmatprep.subr.mxu0 %v4945_v1 }
 0x95d   : > { %4793 = vmatprep.mubr.msk.f32.mxu0 %vm4946_vm1, %v4945_v1  ;;  %4784 = vmatpush3.msk.msra.mxu0 %vm4184_vm14, %v4077_v49 }
 0x95e   : > { %4785 = vmatprep.subr.mxu0 %v4945_v1 }
 0x9fc   : > { %v3743_v57 = vpop.f32.mrf.mxu0  ;;  %v3814_v59 = vpop.f32.mrf.mxu1 }
 0x9fd   : > { %v3815_v3 = vadd.f32 %v3814_v59, %v3644_v58  ;;  %v3744_v4 = vadd.f32 %v3743_v57, %v3636_v63  ;;  %v4078_v57 = vld [vmem:[%s5948_s11] sm:$0xff]  ;;  %v4075_v58 = vld [vmem:[%s5947_s10 + $0x10] sm:$0xff]  ;;  %v4074_v59 = vld [vmem:[%s5947_s10 + $0x8] sm:$0xff] }
 0x9fe   : > { %v3745_v60 = vpop.f32.mrf.mxu0  ;;  %v3816_v61 = vpop.f32.mrf.mxu1 }
 0x9ff   : > { %v3746_v0 = vadd.f32 %v3745_v60, %v3640_v55  ;;  %v3817_v2 = vadd.f32 %v3816_v61, %v3648_v56  ;;  %v4076_v55 = vld [vmem:[%s5947_s10 + $0x18] sm:$0xff]  ;;  %v4094_v56 = vld [vmem:[%s5948_s11 + $0x80] sm:$0xff] }
 0xa00   : > { %4786 = vmatpush3.msra.mxu0 %v4076_v55  ;;  %v4073_v60 = vld [vmem:[%s5947_s10] sm:$0xff] }
 0xa01   : > { %3920 = vmatprep.subr.mxu1 %v3817_v2  ;;  %3954 = vmatprep.mubr.f32.mxu1 %v3746_v0  ;;  %v4072_v61 = vld [vmem:[%s451_s3] sm:$0x1]  ;;  %s4883_s3 = scalar_lea.vmem %s4276_s21, 16 }
 0xa02   : > { %3921 = vmatpush1.xpose.msra.mxu1 %v3815_v3  ;;  %4787 = vmatprep.subr.mxu0 %v4945_v1  ;;  %p4884_p11 = scmp.ne.s32.totalorder %s4276_s21, %s4883_s3  ;;  %p4891_p1 = scmp.lt.s32.totalorder %s4889_s29, %s4883_s3 }
 0xa03   : > { %4788 = vmatpush3.msra.mxu0 %v4075_v58 }
 0xa04   : > { %4789 = vmatprep.subr.mxu0 %v4945_v1  ;;  %p4885_p12 = pnand %p4884_p11, %p5057_p5  ;;  %p4892_p2 = por %p4891_p1, %p4890_p0 }
 0xa05   : > { %3955 = vmatmul.mubr.f32.vlgmr.msra.gmra.mxu1 %v3744_v4  ;;  %4790 = vmatpush3.msra.mxu0 %v4074_v59 }
 0xa06   : > { %4048 = vmatprep.mubr.f32.mxu1 %v4945_v1  ;;  %4791 = vmatprep.subr.mxu0 %v4945_v1  ;;  %p4886_p13 = pneg %p4885_p12 }
 0xa07   : > { %4792 = vmatpush3.msra.mxu0 %v4073_v60 }
 0xa08   : > { %4794 = vmatmul.mubr.msk.f32.vlgmr.msra.gmra.mxu0 %vm4180_vm15, %v4072_v61  ;;  %p4893_p3 = pnand %p4892_p2, %p4886_p13 }
 0xa1c   : > { %v3885_v8 = vpop.f32.mrf.mxu0 }
 0xa1d   : > { %v3886_v10 = vadd.f32 %v3885_v8, %v3652_v7 }
 0xa1e   : > { %v3887_v9 = vpop.f32.mrf.mxu0 }
 0xa1f   : > { %v3888_v44 = vadd.f32 %v3887_v9, %v3656_v5 }
 0xa21   : > { %4401 = vmatprep.subr.msk.mxu1 %vm3977_vm11, %v3888_v44 }
 0xa22   : > { %4402 = vmatpush1.msk.msra.mxu1 %vm3977_vm11, %v3886_v10 }
 0xa23   : > { %4505 = vmatprep.subr.mxu1 %v4109_v20  ;;  %v4258_v20 = vld [vmem:[%s5949_s12] sm:$0x1] }
 0xac5   : > { %v3956_v11 = vpop.f32.mrf.mxu1 }
 0xac6   : > { %v3960_v12 = vmul.f32 0.0625, %v3956_v11 }
 0xac7   : > { %v3958_v14 = vpop.f32.mrf.mxu1 }
 0xac8   : > { %v3962_v15 = vsel %vm3961_vm12, %v3960_v12, -inf }
 0xac9   : > { %3963 = vmax.xlane.f32.xlu0 %v3962_v15 }
 0xb52   : > { %v3964_v16 = vpop.xlane.xlu0 %3963 }
 0xb53   : > { %v3965_v17 = vsub.f32 %v3960_v12, %v3964_v16  ;;  %v4254_v16 = vpop.f32.mrf.mxu0 }
 0xb55   : > { %v3966_v41 = vmul.f32 1.442695, %v3965_v17  ;;  %v4795_v17 = vpop.f32.mrf.mxu0 }
 0xb57   : > { %4879 = vpow2.f32 %v3966_v41 }
 0xb64   : > { %v4880_v18 = vpop.eup %4879 }
 0xb65   : > { %v3968_v19 = vsel %vm3961_vm12, %v4880_v18, 0.0 }
 0xb66   : > { %3969 = vadd.xlane.f32.xlu1 %v3968_v19 }
 0xbef   : > { %v3970_v21 = vpop.xlane.xlu1 %3969 }
 0xbf0   : > { %4881 = vrcp.f32 %v3970_v21 }
 0xbfd   : > { %v4882_v62 = vpop.eup %4881 }
 0xbfe   : > { %v3972_v22 = vmul.f32 %v4882_v62, %v4880_v18 }
 0xc00   : > { %4403 = vmatmul.mubr.msk.f32.vlgmr.msra.gmra.mxu1 %vm3973_vm13, %v3972_v22 }
 0xc01   : > { %4506 = vmatpush3.msra.mxu1 %v4093_v23 }
 0xc02   : > { %4507 = vmatprep.subr.mxu1 %v4108_v6 }
 0xc03   : > { %4508 = vmatpush3.msra.mxu1 %v4092_v24 }
 0xc04   : > { %4509 = vmatprep.subr.mxu1 %v4107_v13 }
 0xc05   : > { %4510 = vmatpush3.msra.mxu1 %v4091_v25 }
 0xc06   : > { %4511 = vmatprep.subr.mxu1 %v4106_v26 }
 0xc07   : > { %4512 = vmatpush3.msra.mxu1 %v4090_v27 }
 0xc08   : > { %4513 = vmatprep.subr.mxu1 %v4105_v28 }
 0xc09   : > { %4514 = vmatpush3.msra.mxu1 %v4089_v29 }
 0xc0a   : > { %4515 = vmatprep.subr.mxu1 %v4104_v30 }
 0xc0b   : > { %4516 = vmatpush3.msra.mxu1 %v4088_v31 }
 0xc0c   : > { %4517 = vmatprep.subr.mxu1 %v4103_v32 }
 0xc0d   : > { %4518 = vmatpush3.msra.mxu1 %v4087_v33 }
 0xc0e   : > { %4519 = vmatprep.subr.mxu1 %v4102_v34 }
 0xc0f   : > { %4520 = vmatpush3.msra.mxu1 %v4086_v35 }
 0xc10   : > { %4521 = vmatprep.subr.mxu1 %v4101_v36 }
 0xc11   : > { %4522 = vmatpush3.msra.mxu1 %v4085_v37 }
 0xc12   : > { %4523 = vmatprep.subr.mxu1 %v4100_v38 }
 0xc13   : > { %4524 = vmatpush3.msra.mxu1 %v4084_v39 }
 0xc14   : > { %4525 = vmatprep.subr.mxu1 %v4099_v40 }
 0xc15   : > { %4526 = vmatpush3.msra.mxu1 %v4083_v43 }
 0xc16   : > { %4527 = vmatprep.subr.mxu1 %v4098_v45 }
 0xc17   : > { %4528 = vmatpush3.msra.mxu1 %v4082_v46 }
 0xc18   : > { %4529 = vmatprep.subr.mxu1 %v4097_v47 }
 0xc19   : > { %4530 = vmatpush3.msra.mxu1 %v4081_v48 }
 0xc1a   : > { %4531 = vmatprep.subr.mxu1 %v4096_v50 }
 0xc1b   : > { %4532 = vmatpush3.msra.mxu1 %v4080_v52 }
 0xc1c   : > { %4533 = vmatprep.subr.mxu1 %v4095_v53 }
 0xc1d   : > { %4534 = vmatpush3.msra.mxu1 %v4079_v54 }
 0xc1e   : > { %4535 = vmatprep.subr.mxu1 %v4094_v56 }
 0xc1f   : > { %4536 = vmatpush3.msra.mxu1 %v4078_v57 }
 0xcc0   : > { %v4050_v63 = vpop.f32.mrf.mxu1 }
 0xcc1   : > { %v4055_v0 = vsel %vm3977_vm11, %v4050_v63, 0.0 }
 0xcc2   : > { %v4056_v2 = vrot.slane %v4055_v0, 4  ;;  %v4052_v3 = vpop.f32.mrf.mxu1 }
 0xcc3   : > { %v4062_v4 = vsel %vm3977_vm11, %v4052_v3, 0.0 }
 0xcc4   : > { %v4057_v42 = vadd.f32 %v4056_v2, %v4055_v0  ;;  %v4063_v51 = vrot.slane %v4062_v4, 4 }
 0xcc6   : > { %v4058_v5 = vrot.slane %v4057_v42, 2  ;;  %v4064_v7 = vadd.f32 %v4063_v51, %v4062_v4 }
 0xcc8   : > { %v4059_v8 = vadd.f32 %v4058_v5, %v4057_v42  ;;  %v4065_v9 = vrot.slane %v4064_v7, 2 }
 0xcca   : > { %v4060_v44 = vrot.slane %v4059_v8, 1  ;;  %v4066_v10 = vadd.f32 %v4065_v9, %v4064_v7 }
 0xccc   : > { %v4067_v1 = vrot.slane %v4066_v10, 1  ;;  %v4061_v11 = vadd.f32 %v4060_v44, %v4059_v8 }
 0xcce   : > { %v4068_v12 = vadd.f32 %v4067_v1, %v4066_v10  ;;  %v4070_v15 = vmul.f32 0.2, %v4061_v11 }
 0xcd0   : > { %v4071_v14 = vmul.f32 0.2, %v4068_v12 }
 0xcd2   : > { %4174 = vmatprep.mubr.f32.mxu1 %v4071_v14 }
 0xcd3   : > { %4175 = vmatmul.mubr.f32.vlgmr.msra.gmra.mxu1 %v4070_v15 }
 0xd93   : > { %v4537_v41 = vpop.f32.mrf.mxu1 }
 0xd95   : > { %v4538_v18 = vpop.f32.mrf.mxu1 }
 0xd96   : > { %v4539_v19 = vadd.f32 %v4538_v18, %v4537_v41 }
 0xd98   : > { %v4255_v21 = vadd.f32 %v4539_v19, %v4254_v16 }
 0xd9a   : > { %v4259_v62 = vadd.f32 %v4258_v20, %v4255_v21 }
 0xd9c   : > { %4261 = vst.msk [vmem:[%s443_s0] sm:$0x1] %vm4260_vm0, %v4259_v62 }
 0xd9d   : > { %4896 = shalt.err (!%p4893_p3)
}
 0xd9e   : > { %s4897_s1 = scalar_lea.hbm %s4273_s23, 16  ;;  %s4901_s0 = scalar_lea.hbm %s5950_s13, 32 }
 0xd9f   : > { %p4898_p4 = scmp.ne.s32.totalorder %s4273_s23, %s4897_s1  ;;  %p4902_p9 = scmp.lt.s32.totalorder %s4273_s23, %s5950_s13 }
 0xda0   : > { %p4903_p10 = scmp.lt.s32.totalorder %s4901_s0, %s4897_s1 }
 0xda1   : > { %p4899_p7 = pnand %p4898_p4, %p5057_p5 }
 0xda2   : > { %p4904_p11 = por %p4903_p10, %p4902_p9 }
 0xda3   : > { %p4900_p8 = pneg %p4899_p7 }
 0xda5   : > { %p4905_p12 = pnand %p4904_p11, %p4900_p8 }
 0xda7   : > { %4908 = shalt.err (!%p4905_p12)
}
 0xda8   : > { %4797 = dma.vmem_to_hbm [thread:$0]  (%p5057_p5), %s4276_s21, 16, %s4273_s23, %s4263_s30  }
 0xda9 PF: > { %p4803_p13 = scmp.ge.s32.totalorder %s4943_s28, 2  ;;  %s4287_s3 = sand.u32 1, %s4931_s25  }
 0xdaa   : > { %s4288_s15 = scalar_lea.sflag [#allocation3], %s4287_s3 }
 0xdab   : > { %p4800_p0 = pnand %p4803_p13, %p5061_p6 }
 0xdad   : > { %p4801_p1 = pneg %p4800_p0 }
 0xdaf   : > { %4926 = dma.done.wait (%p4801_p1), %s4288_s15, 16  }
 0xdb0   : > { %4928 = vsyncadd (%p4801_p1), %s4288_s15, 4294967280  ;;  %p23_p2 = scmp.ge.s32.totalorder %s5044_s14, 4   ;;  %s5961_s25 = smov %s4935_s26 }
 0xdb1   : > { %s5962_s26 = smov %s4939_s27  ;;  %s5963_s27 = smov %s5055_s17 }
 0xdb2   : > { %s5964_s28 = smov %s5044_s14  ;;  %25 = sbr.rel (!%p23_p2) target bundleno = 8 (0x8), region = 110 }
 0xdb7   :  { %4292 = vsyncpa [#allocation3], 1 }
 0xdb8   :  { %4294 = vsyncpa [#allocation3 + $0x1], 1 }

</bundles_post_ra>
